<compile_context>
chip_gen: v6e
topology: v6e:2x2x1
jax: 0.10.0
libtpu: 0.0.40
codegen_flags: <defaults>
</compile_context>

<pallas_src>
import jax
import jax.numpy as jnp
from jax.experimental import pallas as pl
from jax.experimental.pallas import tpu as pltpu


def _round_up(v, m):
    return (v + m - 1) // m * m


# ----------------------------------------------------------------------------
# Fused CBAM kernel: one batch element per grid step.
# ----------------------------------------------------------------------------

def _cbam_kernel(x_ref, w1t_ref, w2t_ref, sw_ref, o_ref, pad_ref):
    """x_ref:(1,H,W,C) VMEM  w1t:(C,Hd) VMEM  w2t:(Hd,C) VMEM
       sw_ref:(98,) SMEM (7x7x2 spatial-conv weights, [plane, ky, kx] flat)
       o_ref:(1,H,W,C) VMEM
       pad_ref:(2,7,HPAD,WPAD) VMEM scratch: plane p, pre-shifted by dx."""
    _, H, W, C = x_ref.shape
    WPAD = pad_ref.shape[-1]

    x = x_ref[0]                                          # (H, W, C) f32

    # ---- channel attention: global avg/max pool -> shared MLP -> sigmoid ----
    avg_c = jnp.mean(x, axis=(0, 1))                      # (C,)
    max_c = jnp.max(x, axis=(0, 1))                       # (C,)
    # Pad the stats matrix to 8 sublanes (avoid sub-8 relayout around the MXU).
    stats = jnp.concatenate(
        [avg_c[None, :], max_c[None, :], jnp.zeros((6, C), jnp.float32)],
        axis=0)                                           # (8, C)
    h = jnp.maximum(
        jnp.dot(stats, w1t_ref[...], preferred_element_type=jnp.float32), 0.0)
    mlp = jnp.dot(h, w2t_ref[...], preferred_element_type=jnp.float32)  # (8, C)
    ca = jax.nn.sigmoid(mlp[0:1, :] + mlp[1:2, :])        # (1, C)
    cab = ca[None, :, :]                                  # (1, 1, C)

    # ---- spatial stats of y = x*ca, WITHOUT keeping y live ----
    # (the product is written twice on purpose: each copy is a short-lived
    #  streaming transient consumed by its reduction, no slab stays live)
    avg_s = jnp.mean(x * cab, axis=-1)                    # (H, W), W on lanes
    max_s = jnp.max(x * cab, axis=-1)                     # (H, W)

    # ---- zero halo scratch (lane-dense unmasked stores; re-done every step
    #      so it stays correct when the parallel batch axis is core-split) ----
    pad_ref[...] = jnp.zeros_like(pad_ref)

    # ---- hoisted dx lane shifts: slot d holds the plane shifted by (d-3)
    #      lanes, i.e. slot_d[r, j] = padded_plane[r, j + d].  Only these 14
    #      small stores are lane-misaligned; the 98 taps below are plain
    #      row-offset loads of full 128-lane rows. ----
    planes = (avg_s, max_s)
    for p in range(2):
        for d in range(7):
            if d <= 3:
                pad_ref[p, d, pl.ds(3, H), pl.ds(3 - d, W)] = planes[p]
            else:
                k = d - 3
                pad_ref[p, d, pl.ds(3, H), pl.ds(0, W - k)] = planes[p][:, k:]

    # ---- 7x7 spatial conv (pad=3), fully unrolled: row-offset loads + VPU ----
    acc = jnp.zeros((H, WPAD), jnp.float32)
    for dy in range(7):
        for dx in range(7):
            acc = acc + pad_ref[0, dx, pl.ds(dy, H), :] * sw_ref[dy * 7 + dx]
            acc = acc + pad_ref[1, dx, pl.ds(dy, H), :] * sw_ref[49 + dy * 7 + dx]
    att = jax.nn.sigmoid(acc[:, :W])                      # (H, W)

    # out = SA(CA(x)*x) * x = (x*ca) * att * x = (x*x) * ca * att
    o_ref[0] = x * x * cab * att[:, :, None]


def cbam_nhwc(x_nhwc, params):
    """Fused CBAM on channels-last input (B, H, W, C)."""
    B, H, W, C = x_nhwc.shape
    Hd = params["ca_w1t"].shape[1]
    HPAD = _round_up(H + 6, 8)
    WPAD = _round_up(W + 6, 128)

    blk_bytes = H * W * C * 4
    scratch_bytes = 2 * 7 * HPAD * WPAD * 4
    # 2x(in+out) double-buffered blocks + scratch + slab-sized value temps.
    vmem_limit = int(min(64 << 20,
                         max(16 << 20,
                             10 * blk_bytes + scratch_bytes + (2 << 20))))

    return pl.pallas_call(
        _cbam_kernel,
        grid=(B,),
        out_shape=jax.ShapeDtypeStruct((B, H, W, C), jnp.float32),
        in_specs=[
            pl.BlockSpec((1, H, W, C), lambda b: (b, 0, 0, 0)),
            pl.BlockSpec((C, Hd), lambda b: (0, 0)),
            pl.BlockSpec((Hd, C), lambda b: (0, 0)),
            pl.BlockSpec(memory_space=pltpu.MemorySpace.SMEM),
        ],
        out_specs=pl.BlockSpec((1, H, W, C), lambda b: (b, 0, 0, 0)),
        scratch_shapes=[pltpu.VMEM((2, 7, HPAD, WPAD), jnp.float32)],
        compiler_params=pltpu.CompilerParams(
            dimension_semantics=("parallel",),
            vmem_limit_bytes=vmem_limit),
    )(x_nhwc, params["ca_w1t"], params["ca_w2t"], params["sa_w"])


def cbam_nchw(x_nchw, params):
    """Torch-layout entry point (B, C, H, W).  The NCHW<->NHWC transposes are
    wrapper-side layout plumbing; feed NHWC directly (cbam_nhwc) to skip them."""
    x = jnp.transpose(x_nchw, (0, 2, 3, 1))
    y = cbam_nhwc(x, params)
    return jnp.transpose(y, (0, 3, 1, 2))


# ----------------------------------------------------------------------------
# Parameters (deterministic init; Conv2d weights, no biases, as in the module)
# ----------------------------------------------------------------------------

def init_params(key, C, ratio=8):
    Hd = max(1, C // ratio)
    k1, k2, k3 = jax.random.split(key, 3)
    # Conv2d(C, Hd, 1, bias=False).weight[:, :, 0, 0] -> (Hd, C)
    w1 = jax.random.normal(k1, (Hd, C), jnp.float32) * 0.1
    # Conv2d(Hd, C, 1, bias=False).weight[:, :, 0, 0] -> (C, Hd)
    w2 = jax.random.normal(k2, (C, Hd), jnp.float32) * 0.1
    # Conv2d(2, 1, 7, padding=3, bias=False).weight[0] -> (2, 7, 7)
    sa = jax.random.normal(k3, (2, 7, 7), jnp.float32) * 0.1
    return {
        "ca_w1t": w1.T,            # (C, Hd)  so that (8,C) @ (C,Hd) on MXU
        "ca_w2t": w2.T,            # (Hd, C)
        "sa_w": sa.reshape(-1),    # (98,) flat [plane, ky, kx] -> SMEM scalars
    }


# ----------------------------------------------------------------------------
# Pure-JAX reference (for correctness check only; no Pallas)
# ----------------------------------------------------------------------------

def cbam_ref_nchw(x, params):
    w1t, w2t = params["ca_w1t"], params["ca_w2t"]
    avg = jnp.mean(x, axis=(2, 3))
    mx = jnp.max(x, axis=(2, 3))
    mlp = lambda v: jnp.maximum(v @ w1t, 0.0) @ w2t
    ca = jax.nn.sigmoid(mlp(avg) + mlp(mx))[:, :, None, None]   # (B,C,1,1)
    y = x * ca
    cat = jnp.concatenate([jnp.mean(y, axis=1, keepdims=True),
                           jnp.max(y, axis=1, keepdims=True)], axis=1)
    w = params["sa_w"].reshape(1, 2, 7, 7)
    att = jax.nn.sigmoid(jax.lax.conv_general_dilated(
        cat, w, (1, 1), [(3, 3), (3, 3)],
        dimension_numbers=("NCHW", "OIHW", "NCHW")))
    return y * att * x


# ----------------------------------------------------------------------------

if __name__ == "__main__":
    B, C, H, W = 2, 32, 16, 16

    key = jax.random.PRNGKey(0)
    kx, kp = jax.random.split(key)
    x = jax.random.normal(kx, (B, C, H, W), jnp.float32)
    params = init_params(kp, C)

    out = jax.jit(cbam_nchw)(x, params)
    out = jax.block_until_ready(out)

    assert out.shape == (B, C, H, W), out.shape
    assert bool(jnp.all(jnp.isfinite(out)))

    ref = cbam_ref_nchw(x, params)
    max_err = float(jnp.max(jnp.abs(out - ref)))
    assert max_err < 3e-2, f"mismatch vs reference: {max_err}"

    print("KERNEL_OK")
</pallas_src>

<mosaic_0001>
module attributes {stable_mosaic.version = 11 : i64} {
  func.func @_cbam_kernel(%arg0: i32, %arg1: memref<1x16x16x32xf32, #tpu.memory_space<vmem>>, %arg2: memref<32x4xf32, #tpu.memory_space<vmem>>, %arg3: memref<4x32xf32, #tpu.memory_space<vmem>>, %arg4: memref<98xf32, #tpu.memory_space<smem>>, %arg5: memref<1x16x16x32xf32, #tpu.memory_space<vmem>>, %arg6: memref<2x7x24x128xf32, #tpu.memory_space<vmem>>) attributes {dimension_semantics = [#tpu.dimension_semantics<parallel>], iteration_bounds = array<i64: 2>, scalar_prefetch = 0 : i64, scratch_operands = 1 : i64, tpu.core_type = #tpu.core_type<tc>, window_params = [{transform_indices = @transform_0, window_bounds = array<i64: 1, 16, 16, 32>}, {pipeline_mode = #tpu.pipeline_mode<synchronous>, transform_indices = @transform_1, window_bounds = array<i64: 32, 4>}, {pipeline_mode = #tpu.pipeline_mode<synchronous>, transform_indices = @transform_2, window_bounds = array<i64: 4, 32>}, {transform_indices = @transform_3, window_bounds = array<i64: 98>}, {transform_indices = @transform_4, window_bounds = array<i64: 1, 16, 16, 32>}]} {
    %c0 = arith.constant 0 : index
    %c0_0 = arith.constant 0 : index
    %c0_1 = arith.constant 0 : index
    %c0_2 = arith.constant 0 : index
    %0 = vector.load %arg1[%c0, %c0_0, %c0_1, %c0_2] : memref<1x16x16x32xf32, #tpu.memory_space<vmem>>, vector<1x16x16x32xf32>
    %1 = vector.shape_cast %0 : vector<1x16x16x32xf32> to vector<16x16x32xf32>
    %cst = arith.constant dense<0.000000e+00> : vector<32xf32>
    %2 = vector.multi_reduction <add>, %1, %cst [0, 1] : vector<16x16x32xf32> to vector<32xf32>
    %cst_3 = arith.constant 2.560000e+02 : f32
    %3 = vector.broadcast %cst_3 : f32 to vector<32xf32>
    %4 = arith.divf %2, %3 : vector<32xf32>
    %cst_4 = arith.constant dense<0xFF800000> : vector<32xf32>
    %5 = vector.multi_reduction <maximumf>, %1, %cst_4 [0, 1] : vector<16x16x32xf32> to vector<32xf32>
    %6 = vector.shape_cast %4 : vector<32xf32> to vector<1x32xf32>
    %7 = vector.shape_cast %5 : vector<32xf32> to vector<1x32xf32>
    %cst_5 = arith.constant 0.000000e+00 : f32
    %8 = vector.broadcast %cst_5 : f32 to vector<6x32xf32>
    %9 = tpu.concatenate %6, %7, %8 in 0 : vector<1x32xf32>, vector<1x32xf32>, vector<6x32xf32> -> vector<8x32xf32>
    %c0_6 = arith.constant 0 : index
    %c0_7 = arith.constant 0 : index
    %10 = vector.load %arg2[%c0_6, %c0_7] : memref<32x4xf32, #tpu.memory_space<vmem>>, vector<32x4xf32>
    %cst_8 = arith.constant dense<0.000000e+00> : vector<8x4xf32>
    %11 = tpu.matmul %9, %10, %cst_8 {dimension_numbers = #tpu.dot_dimension_numbers<[1], [0], [0], [1], [0, 0, 1, 1], [], []>} : vector<8x32xf32>, vector<32x4xf32>, vector<8x4xf32> -> vector<8x4xf32>
    %cst_9 = arith.constant 0.000000e+00 : f32
    %12 = vector.broadcast %cst_9 : f32 to vector<8x4xf32>
    %13 = arith.maximumf %11, %12 : vector<8x4xf32>
    %c0_10 = arith.constant 0 : index
    %c0_11 = arith.constant 0 : index
    %14 = vector.load %arg3[%c0_10, %c0_11] : memref<4x32xf32, #tpu.memory_space<vmem>>, vector<4x32xf32>
    %cst_12 = arith.constant dense<0.000000e+00> : vector<8x32xf32>
    %15 = tpu.matmul %13, %14, %cst_12 {dimension_numbers = #tpu.dot_dimension_numbers<[1], [0], [0], [1], [0, 0, 1, 1], [], []>} : vector<8x4xf32>, vector<4x32xf32>, vector<8x32xf32> -> vector<8x32xf32>
    %16 = vector.extract_strided_slice %15 {offsets = [0, 0], sizes = [1, 32], strides = [1, 1]} : vector<8x32xf32> to vector<1x32xf32>
    %17 = vector.extract_strided_slice %15 {offsets = [1, 0], sizes = [1, 32], strides = [1, 1]} : vector<8x32xf32> to vector<1x32xf32>
    %18 = arith.addf %16, %17 : vector<1x32xf32>
    %19 = arith.negf %18 : vector<1x32xf32>
    %20 = math.exp %19 : vector<1x32xf32>
    %cst_13 = arith.constant 1.000000e+00 : f32
    %21 = vector.broadcast %cst_13 : f32 to vector<1x32xf32>
    %22 = arith.addf %21, %20 : vector<1x32xf32>
    %23 = arith.divf %21, %22 : vector<1x32xf32>
    %24 = vector.shape_cast %23 : vector<1x32xf32> to vector<1x1x32xf32>
    %25 = vector.broadcast %24 : vector<1x1x32xf32> to vector<16x16x32xf32>
    %26 = arith.mulf %1, %25 : vector<16x16x32xf32>
    %cst_14 = arith.constant dense<0.000000e+00> : vector<16x16xf32>
    %27 = vector.multi_reduction <add>, %26, %cst_14 [2] : vector<16x16x32xf32> to vector<16x16xf32>
    %cst_15 = arith.constant 3.200000e+01 : f32
    %28 = vector.broadcast %cst_15 : f32 to vector<16x16xf32>
    %29 = arith.divf %27, %28 : vector<16x16xf32>
    %30 = vector.broadcast %24 : vector<1x1x32xf32> to vector<16x16x32xf32>
    %31 = arith.mulf %1, %30 : vector<16x16x32xf32>
    %cst_16 = arith.constant dense<0xFF800000> : vector<16x16xf32>
    %32 = vector.multi_reduction <maximumf>, %31, %cst_16 [2] : vector<16x16x32xf32> to vector<16x16xf32>
    %cst_17 = arith.constant 0.000000e+00 : f32
    %33 = vector.broadcast %cst_17 : f32 to vector<2x7x24x128xf32>
    %c0_18 = arith.constant 0 : index
    %c0_19 = arith.constant 0 : index
    %c0_20 = arith.constant 0 : index
    %c0_21 = arith.constant 0 : index
    %34 = vector.load %arg6[%c0_18, %c0_19, %c0_20, %c0_21] : memref<2x7x24x128xf32, #tpu.memory_space<vmem>>, vector<2x7x24x128xf32>
    tpu.vector_store %arg6[%c0_18, %c0_19, %c0_20, %c0_21], %33 {strides = array<i32>} : memref<2x7x24x128xf32, #tpu.memory_space<vmem>>, vector<2x7x24x128xf32>,
    %c0_22 = arith.constant 0 : index
    %c0_23 = arith.constant 0 : index
    %c3 = arith.constant 3 : index
    %c3_24 = arith.constant 3 : index
    %35 = vector.load %arg6[%c0_22, %c0_23, %c3, %c3_24] : memref<2x7x24x128xf32, #tpu.memory_space<vmem>>, vector<1x1x16x16xf32>
    %36 = vector.shape_cast %35 : vector<1x1x16x16xf32> to vector<16x16xf32>
    %37 = vector.shape_cast %29 : vector<16x16xf32> to vector<1x1x16x16xf32>
    tpu.vector_store %arg6[%c0_22, %c0_23, %c3, %c3_24], %37 {strides = array<i32>} : memref<2x7x24x128xf32, #tpu.memory_space<vmem>>, vector<1x1x16x16xf32>,
    %c0_25 = arith.constant 0 : index
    %c1 = arith.constant 1 : index
    %c3_26 = arith.constant 3 : index
    %c2 = arith.constant 2 : index
    %38 = vector.load %arg6[%c0_25, %c1, %c3_26, %c2] : memref<2x7x24x128xf32, #tpu.memory_space<vmem>>, vector<1x1x16x16xf32>
    %39 = vector.shape_cast %38 : vector<1x1x16x16xf32> to vector<16x16xf32>
    %40 = vector.shape_cast %29 : vector<16x16xf32> to vector<1x1x16x16xf32>
    tpu.vector_store %arg6[%c0_25, %c1, %c3_26, %c2], %40 {strides = array<i32>} : memref<2x7x24x128xf32, #tpu.memory_space<vmem>>, vector<1x1x16x16xf32>,
    %c0_27 = arith.constant 0 : index
    %c2_28 = arith.constant 2 : index
    %c3_29 = arith.constant 3 : index
    %c1_30 = arith.constant 1 : index
    %41 = vector.load %arg6[%c0_27, %c2_28, %c3_29, %c1_30] : memref<2x7x24x128xf32, #tpu.memory_space<vmem>>, vector<1x1x16x16xf32>
    %42 = vector.shape_cast %41 : vector<1x1x16x16xf32> to vector<16x16xf32>
    %43 = vector.shape_cast %29 : vector<16x16xf32> to vector<1x1x16x16xf32>
    tpu.vector_store %arg6[%c0_27, %c2_28, %c3_29, %c1_30], %43 {strides = array<i32>} : memref<2x7x24x128xf32, #tpu.memory_space<vmem>>, vector<1x1x16x16xf32>,
    %c0_31 = arith.constant 0 : index
    %c3_32 = arith.constant 3 : index
    %c3_33 = arith.constant 3 : index
    %c0_34 = arith.constant 0 : index
    %44 = vector.load %arg6[%c0_31, %c3_32, %c3_33, %c0_34] : memref<2x7x24x128xf32, #tpu.memory_space<vmem>>, vector<1x1x16x16xf32>
    %45 = vector.shape_cast %44 : vector<1x1x16x16xf32> to vector<16x16xf32>
    %46 = vector.shape_cast %29 : vector<16x16xf32> to vector<1x1x16x16xf32>
    tpu.vector_store %arg6[%c0_31, %c3_32, %c3_33, %c0_34], %46 {strides = array<i32>} : memref<2x7x24x128xf32, #tpu.memory_space<vmem>>, vector<1x1x16x16xf32>,
    %47 = vector.extract_strided_slice %29 {offsets = [0, 1], sizes = [16, 15], strides = [1, 1]} : vector<16x16xf32> to vector<16x15xf32>
    %c0_35 = arith.constant 0 : index
    %c4 = arith.constant 4 : index
    %c3_36 = arith.constant 3 : index
    %c0_37 = arith.constant 0 : index
    %48 = vector.load %arg6[%c0_35, %c4, %c3_36, %c0_37] : memref<2x7x24x128xf32, #tpu.memory_space<vmem>>, vector<1x1x16x15xf32>
    %49 = vector.shape_cast %48 : vector<1x1x16x15xf32> to vector<16x15xf32>
    %50 = vector.shape_cast %47 : vector<16x15xf32> to vector<1x1x16x15xf32>
    tpu.vector_store %arg6[%c0_35, %c4, %c3_36, %c0_37], %50 {strides = array<i32>} : memref<2x7x24x128xf32, #tpu.memory_space<vmem>>, vector<1x1x16x15xf32>,
    %51 = vector.extract_strided_slice %29 {offsets = [0, 2], sizes = [16, 14], strides = [1, 1]} : vector<16x16xf32> to vector<16x14xf32>
    %c0_38 = arith.constant 0 : index
    %c5 = arith.constant 5 : index
    %c3_39 = arith.constant 3 : index
    %c0_40 = arith.constant 0 : index
    %52 = vector.load %arg6[%c0_38, %c5, %c3_39, %c0_40] : memref<2x7x24x128xf32, #tpu.memory_space<vmem>>, vector<1x1x16x14xf32>
    %53 = vector.shape_cast %52 : vector<1x1x16x14xf32> to vector<16x14xf32>
    %54 = vector.shape_cast %51 : vector<16x14xf32> to vector<1x1x16x14xf32>
    tpu.vector_store %arg6[%c0_38, %c5, %c3_39, %c0_40], %54 {strides = array<i32>} : memref<2x7x24x128xf32, #tpu.memory_space<vmem>>, vector<1x1x16x14xf32>,
    %55 = vector.extract_strided_slice %29 {offsets = [0, 3], sizes = [16, 13], strides = [1, 1]} : vector<16x16xf32> to vector<16x13xf32>
    %c0_41 = arith.constant 0 : index
    %c6 = arith.constant 6 : index
    %c3_42 = arith.constant 3 : index
    %c0_43 = arith.constant 0 : index
    %56 = vector.load %arg6[%c0_41, %c6, %c3_42, %c0_43] : memref<2x7x24x128xf32, #tpu.memory_space<vmem>>, vector<1x1x16x13xf32>
    %57 = vector.shape_cast %56 : vector<1x1x16x13xf32> to vector<16x13xf32>
    %58 = vector.shape_cast %55 : vector<16x13xf32> to vector<1x1x16x13xf32>
    tpu.vector_store %arg6[%c0_41, %c6, %c3_42, %c0_43], %58 {strides = array<i32>} : memref<2x7x24x128xf32, #tpu.memory_space<vmem>>, vector<1x1x16x13xf32>,
    %c1_44 = arith.constant 1 : index
    %c0_45 = arith.constant 0 : index
    %c3_46 = arith.constant 3 : index
    %c3_47 = arith.constant 3 : index
    %59 = vector.load %arg6[%c1_44, %c0_45, %c3_46, %c3_47] : memref<2x7x24x128xf32, #tpu.memory_space<vmem>>, vector<1x1x16x16xf32>
    %60 = vector.shape_cast %59 : vector<1x1x16x16xf32> to vector<16x16xf32>
    %61 = vector.shape_cast %32 : vector<16x16xf32> to vector<1x1x16x16xf32>
    tpu.vector_store %arg6[%c1_44, %c0_45, %c3_46, %c3_47], %61 {strides = array<i32>} : memref<2x7x24x128xf32, #tpu.memory_space<vmem>>, vector<1x1x16x16xf32>,
    %c1_48 = arith.constant 1 : index
    %c1_49 = arith.constant 1 : index
    %c3_50 = arith.constant 3 : index
    %c2_51 = arith.constant 2 : index
    %62 = vector.load %arg6[%c1_48, %c1_49, %c3_50, %c2_51] : memref<2x7x24x128xf32, #tpu.memory_space<vmem>>, vector<1x1x16x16xf32>
    %63 = vector.shape_cast %62 : vector<1x1x16x16xf32> to vector<16x16xf32>
    %64 = vector.shape_cast %32 : vector<16x16xf32> to vector<1x1x16x16xf32>
    tpu.vector_store %arg6[%c1_48, %c1_49, %c3_50, %c2_51], %64 {strides = array<i32>} : memref<2x7x24x128xf32, #tpu.memory_space<vmem>>, vector<1x1x16x16xf32>,
    %c1_52 = arith.constant 1 : index
    %c2_53 = arith.constant 2 : index
    %c3_54 = arith.constant 3 : index
    %c1_55 = arith.constant 1 : index
    %65 = vector.load %arg6[%c1_52, %c2_53, %c3_54, %c1_55] : memref<2x7x24x128xf32, #tpu.memory_space<vmem>>, vector<1x1x16x16xf32>
    %66 = vector.shape_cast %65 : vector<1x1x16x16xf32> to vector<16x16xf32>
    %67 = vector.shape_cast %32 : vector<16x16xf32> to vector<1x1x16x16xf32>
    tpu.vector_store %arg6[%c1_52, %c2_53, %c3_54, %c1_55], %67 {strides = array<i32>} : memref<2x7x24x128xf32, #tpu.memory_space<vmem>>, vector<1x1x16x16xf32>,
    %c1_56 = arith.constant 1 : index
    %c3_57 = arith.constant 3 : index
    %c3_58 = arith.constant 3 : index
    %c0_59 = arith.constant 0 : index
    %68 = vector.load %arg6[%c1_56, %c3_57, %c3_58, %c0_59] : memref<2x7x24x128xf32, #tpu.memory_space<vmem>>, vector<1x1x16x16xf32>
    %69 = vector.shape_cast %68 : vector<1x1x16x16xf32> to vector<16x16xf32>
    %70 = vector.shape_cast %32 : vector<16x16xf32> to vector<1x1x16x16xf32>
    tpu.vector_store %arg6[%c1_56, %c3_57, %c3_58, %c0_59], %70 {strides = array<i32>} : memref<2x7x24x128xf32, #tpu.memory_space<vmem>>, vector<1x1x16x16xf32>,
    %71 = vector.extract_strided_slice %32 {offsets = [0, 1], sizes = [16, 15], strides = [1, 1]} : vector<16x16xf32> to vector<16x15xf32>
    %c1_60 = arith.constant 1 : index
    %c4_61 = arith.constant 4 : index
    %c3_62 = arith.constant 3 : index
    %c0_63 = arith.constant 0 : index
    %72 = vector.load %arg6[%c1_60, %c4_61, %c3_62, %c0_63] : memref<2x7x24x128xf32, #tpu.memory_space<vmem>>, vector<1x1x16x15xf32>
    %73 = vector.shape_cast %72 : vector<1x1x16x15xf32> to vector<16x15xf32>
    %74 = vector.shape_cast %71 : vector<16x15xf32> to vector<1x1x16x15xf32>
    tpu.vector_store %arg6[%c1_60, %c4_61, %c3_62, %c0_63], %74 {strides = array<i32>} : memref<2x7x24x128xf32, #tpu.memory_space<vmem>>, vector<1x1x16x15xf32>,
    %75 = vector.extract_strided_slice %32 {offsets = [0, 2], sizes = [16, 14], strides = [1, 1]} : vector<16x16xf32> to vector<16x14xf32>
    %c1_64 = arith.constant 1 : index
    %c5_65 = arith.constant 5 : index
    %c3_66 = arith.constant 3 : index
    %c0_67 = arith.constant 0 : index
    %76 = vector.load %arg6[%c1_64, %c5_65, %c3_66, %c0_67] : memref<2x7x24x128xf32, #tpu.memory_space<vmem>>, vector<1x1x16x14xf32>
    %77 = vector.shape_cast %76 : vector<1x1x16x14xf32> to vector<16x14xf32>
    %78 = vector.shape_cast %75 : vector<16x14xf32> to vector<1x1x16x14xf32>
    tpu.vector_store %arg6[%c1_64, %c5_65, %c3_66, %c0_67], %78 {strides = array<i32>} : memref<2x7x24x128xf32, #tpu.memory_space<vmem>>, vector<1x1x16x14xf32>,
    %79 = vector.extract_strided_slice %32 {offsets = [0, 3], sizes = [16, 13], strides = [1, 1]} : vector<16x16xf32> to vector<16x13xf32>
    %c1_68 = arith.constant 1 : index
    %c6_69 = arith.constant 6 : index
    %c3_70 = arith.constant 3 : index
    %c0_71 = arith.constant 0 : index
    %80 = vector.load %arg6[%c1_68, %c6_69, %c3_70, %c0_71] : memref<2x7x24x128xf32, #tpu.memory_space<vmem>>, vector<1x1x16x13xf32>
    %81 = vector.shape_cast %80 : vector<1x1x16x13xf32> to vector<16x13xf32>
    %82 = vector.shape_cast %79 : vector<16x13xf32> to vector<1x1x16x13xf32>
    tpu.vector_store %arg6[%c1_68, %c6_69, %c3_70, %c0_71], %82 {strides = array<i32>} : memref<2x7x24x128xf32, #tpu.memory_space<vmem>>, vector<1x1x16x13xf32>,
    %cst_72 = arith.constant 0.000000e+00 : f32
    %83 = vector.broadcast %cst_72 : f32 to vector<16x128xf32>
    %c0_73 = arith.constant 0 : index
    %c0_74 = arith.constant 0 : index
    %c0_75 = arith.constant 0 : index
    %c0_76 = arith.constant 0 : index
    %84 = vector.load %arg6[%c0_73, %c0_74, %c0_75, %c0_76] : memref<2x7x24x128xf32, #tpu.memory_space<vmem>>, vector<1x1x16x128xf32>
    %85 = vector.shape_cast %84 : vector<1x1x16x128xf32> to vector<16x128xf32>
    %c0_77 = arith.constant 0 : index
    %86 = memref.load %arg4[%c0_77] : memref<98xf32, #tpu.memory_space<smem>>
    %87 = vector.broadcast %86 : f32 to vector<16x128xf32>
    %88 = arith.mulf %85, %87 : vector<16x128xf32>
    %89 = arith.addf %83, %88 : vector<16x128xf32>
    %c1_78 = arith.constant 1 : index
    %c0_79 = arith.constant 0 : index
    %c0_80 = arith.constant 0 : index
    %c0_81 = arith.constant 0 : index
    %90 = vector.load %arg6[%c1_78, %c0_79, %c0_80, %c0_81] : memref<2x7x24x128xf32, #tpu.memory_space<vmem>>, vector<1x1x16x128xf32>
    %91 = vector.shape_cast %90 : vector<1x1x16x128xf32> to vector<16x128xf32>
    %c49 = arith.constant 49 : index
    %92 = memref.load %arg4[%c49] : memref<98xf32, #tpu.memory_space<smem>>
    %93 = vector.broadcast %92 : f32 to vector<16x128xf32>
    %94 = arith.mulf %91, %93 : vector<16x128xf32>
    %95 = arith.addf %89, %94 : vector<16x128xf32>
    %c0_82 = arith.constant 0 : index
    %c1_83 = arith.constant 1 : index
    %c0_84 = arith.constant 0 : index
    %c0_85 = arith.constant 0 : index
    %96 = vector.load %arg6[%c0_82, %c1_83, %c0_84, %c0_85] : memref<2x7x24x128xf32, #tpu.memory_space<vmem>>, vector<1x1x16x128xf32>
    %97 = vector.shape_cast %96 : vector<1x1x16x128xf32> to vector<16x128xf32>
    %c1_86 = arith.constant 1 : index
    %98 = memref.load %arg4[%c1_86] : memref<98xf32, #tpu.memory_space<smem>>
    %99 = vector.broadcast %98 : f32 to vector<16x128xf32>
    %100 = arith.mulf %97, %99 : vector<16x128xf32>
    %101 = arith.addf %95, %100 : vector<16x128xf32>
    %c1_87 = arith.constant 1 : index
    %c1_88 = arith.constant 1 : index
    %c0_89 = arith.constant 0 : index
    %c0_90 = arith.constant 0 : index
    %102 = vector.load %arg6[%c1_87, %c1_88, %c0_89, %c0_90] : memref<2x7x24x128xf32, #tpu.memory_space<vmem>>, vector<1x1x16x128xf32>
    %103 = vector.shape_cast %102 : vector<1x1x16x128xf32> to vector<16x128xf32>
    %c50 = arith.constant 50 : index
    %104 = memref.load %arg4[%c50] : memref<98xf32, #tpu.memory_space<smem>>
    %105 = vector.broadcast %104 : f32 to vector<16x128xf32>
    %106 = arith.mulf %103, %105 : vector<16x128xf32>
    %107 = arith.addf %101, %106 : vector<16x128xf32>
    %c0_91 = arith.constant 0 : index
    %c2_92 = arith.constant 2 : index
    %c0_93 = arith.constant 0 : index
    %c0_94 = arith.constant 0 : index
    %108 = vector.load %arg6[%c0_91, %c2_92, %c0_93, %c0_94] : memref<2x7x24x128xf32, #tpu.memory_space<vmem>>, vector<1x1x16x128xf32>
    %109 = vector.shape_cast %108 : vector<1x1x16x128xf32> to vector<16x128xf32>
    %c2_95 = arith.constant 2 : index
    %110 = memref.load %arg4[%c2_95] : memref<98xf32, #tpu.memory_space<smem>>
    %111 = vector.broadcast %110 : f32 to vector<16x128xf32>
    %112 = arith.mulf %109, %111 : vector<16x128xf32>
    %113 = arith.addf %107, %112 : vector<16x128xf32>
    %c1_96 = arith.constant 1 : index
    %c2_97 = arith.constant 2 : index
    %c0_98 = arith.constant 0 : index
    %c0_99 = arith.constant 0 : index
    %114 = vector.load %arg6[%c1_96, %c2_97, %c0_98, %c0_99] : memref<2x7x24x128xf32, #tpu.memory_space<vmem>>, vector<1x1x16x128xf32>
    %115 = vector.shape_cast %114 : vector<1x1x16x128xf32> to vector<16x128xf32>
    %c51 = arith.constant 51 : index
    %116 = memref.load %arg4[%c51] : memref<98xf32, #tpu.memory_space<smem>>
    %117 = vector.broadcast %116 : f32 to vector<16x128xf32>
    %118 = arith.mulf %115, %117 : vector<16x128xf32>
    %119 = arith.addf %113, %118 : vector<16x128xf32>
    %c0_100 = arith.constant 0 : index
    %c3_101 = arith.constant 3 : index
    %c0_102 = arith.constant 0 : index
    %c0_103 = arith.constant 0 : index
    %120 = vector.load %arg6[%c0_100, %c3_101, %c0_102, %c0_103] : memref<2x7x24x128xf32, #tpu.memory_space<vmem>>, vector<1x1x16x128xf32>
    %121 = vector.shape_cast %120 : vector<1x1x16x128xf32> to vector<16x128xf32>
    %c3_104 = arith.constant 3 : index
    %122 = memref.load %arg4[%c3_104] : memref<98xf32, #tpu.memory_space<smem>>
    %123 = vector.broadcast %122 : f32 to vector<16x128xf32>
    %124 = arith.mulf %121, %123 : vector<16x128xf32>
    %125 = arith.addf %119, %124 : vector<16x128xf32>
    %c1_105 = arith.constant 1 : index
    %c3_106 = arith.constant 3 : index
    %c0_107 = arith.constant 0 : index
    %c0_108 = arith.constant 0 : index
    %126 = vector.load %arg6[%c1_105, %c3_106, %c0_107, %c0_108] : memref<2x7x24x128xf32, #tpu.memory_space<vmem>>, vector<1x1x16x128xf32>
    %127 = vector.shape_cast %126 : vector<1x1x16x128xf32> to vector<16x128xf32>
    %c52 = arith.constant 52 : index
    %128 = memref.load %arg4[%c52] : memref<98xf32, #tpu.memory_space<smem>>
    %129 = vector.broadcast %128 : f32 to vector<16x128xf32>
    %130 = arith.mulf %127, %129 : vector<16x128xf32>
    %131 = arith.addf %125, %130 : vector<16x128xf32>
    %c0_109 = arith.constant 0 : index
    %c4_110 = arith.constant 4 : index
    %c0_111 = arith.constant 0 : index
    %c0_112 = arith.constant 0 : index
    %132 = vector.load %arg6[%c0_109, %c4_110, %c0_111, %c0_112] : memref<2x7x24x128xf32, #tpu.memory_space<vmem>>, vector<1x1x16x128xf32>
    %133 = vector.shape_cast %132 : vector<1x1x16x128xf32> to vector<16x128xf32>
    %c4_113 = arith.constant 4 : index
    %134 = memref.load %arg4[%c4_113] : memref<98xf32, #tpu.memory_space<smem>>
    %135 = vector.broadcast %134 : f32 to vector<16x128xf32>
    %136 = arith.mulf %133, %135 : vector<16x128xf32>
    %137 = arith.addf %131, %136 : vector<16x128xf32>
    %c1_114 = arith.constant 1 : index
    %c4_115 = arith.constant 4 : index
    %c0_116 = arith.constant 0 : index
    %c0_117 = arith.constant 0 : index
    %138 = vector.load %arg6[%c1_114, %c4_115, %c0_116, %c0_117] : memref<2x7x24x128xf32, #tpu.memory_space<vmem>>, vector<1x1x16x128xf32>
    %139 = vector.shape_cast %138 : vector<1x1x16x128xf32> to vector<16x128xf32>
    %c53 = arith.constant 53 : index
    %140 = memref.load %arg4[%c53] : memref<98xf32, #tpu.memory_space<smem>>
    %141 = vector.broadcast %140 : f32 to vector<16x128xf32>
    %142 = arith.mulf %139, %141 : vector<16x128xf32>
    %143 = arith.addf %137, %142 : vector<16x128xf32>
    %c0_118 = arith.constant 0 : index
    %c5_119 = arith.constant 5 : index
    %c0_120 = arith.constant 0 : index
    %c0_121 = arith.constant 0 : index
    %144 = vector.load %arg6[%c0_118, %c5_119, %c0_120, %c0_121] : memref<2x7x24x128xf32, #tpu.memory_space<vmem>>, vector<1x1x16x128xf32>
    %145 = vector.shape_cast %144 : vector<1x1x16x128xf32> to vector<16x128xf32>
    %c5_122 = arith.constant 5 : index
    %146 = memref.load %arg4[%c5_122] : memref<98xf32, #tpu.memory_space<smem>>
    %147 = vector.broadcast %146 : f32 to vector<16x128xf32>
    %148 = arith.mulf %145, %147 : vector<16x128xf32>
    %149 = arith.addf %143, %148 : vector<16x128xf32>
    %c1_123 = arith.constant 1 : index
    %c5_124 = arith.constant 5 : index
    %c0_125 = arith.constant 0 : index
    %c0_126 = arith.constant 0 : index
    %150 = vector.load %arg6[%c1_123, %c5_124, %c0_125, %c0_126] : memref<2x7x24x128xf32, #tpu.memory_space<vmem>>, vector<1x1x16x128xf32>
    %151 = vector.shape_cast %150 : vector<1x1x16x128xf32> to vector<16x128xf32>
    %c54 = arith.constant 54 : index
    %152 = memref.load %arg4[%c54] : memref<98xf32, #tpu.memory_space<smem>>
    %153 = vector.broadcast %152 : f32 to vector<16x128xf32>
    %154 = arith.mulf %151, %153 : vector<16x128xf32>
    %155 = arith.addf %149, %154 : vector<16x128xf32>
    %c0_127 = arith.constant 0 : index
    %c6_128 = arith.constant 6 : index
    %c0_129 = arith.constant 0 : index
    %c0_130 = arith.constant 0 : index
    %156 = vector.load %arg6[%c0_127, %c6_128, %c0_129, %c0_130] : memref<2x7x24x128xf32, #tpu.memory_space<vmem>>, vector<1x1x16x128xf32>
    %157 = vector.shape_cast %156 : vector<1x1x16x128xf32> to vector<16x128xf32>
    %c6_131 = arith.constant 6 : index
    %158 = memref.load %arg4[%c6_131] : memref<98xf32, #tpu.memory_space<smem>>
    %159 = vector.broadcast %158 : f32 to vector<16x128xf32>
    %160 = arith.mulf %157, %159 : vector<16x128xf32>
    %161 = arith.addf %155, %160 : vector<16x128xf32>
    %c1_132 = arith.constant 1 : index
    %c6_133 = arith.constant 6 : index
    %c0_134 = arith.constant 0 : index
    %c0_135 = arith.constant 0 : index
    %162 = vector.load %arg6[%c1_132, %c6_133, %c0_134, %c0_135] : memref<2x7x24x128xf32, #tpu.memory_space<vmem>>, vector<1x1x16x128xf32>
    %163 = vector.shape_cast %162 : vector<1x1x16x128xf32> to vector<16x128xf32>
    %c55 = arith.constant 55 : index
    %164 = memref.load %arg4[%c55] : memref<98xf32, #tpu.memory_space<smem>>
    %165 = vector.broadcast %164 : f32 to vector<16x128xf32>
    %166 = arith.mulf %163, %165 : vector<16x128xf32>
    %167 = arith.addf %161, %166 : vector<16x128xf32>
    %c0_136 = arith.constant 0 : index
    %c0_137 = arith.constant 0 : index
    %c1_138 = arith.constant 1 : index
    %c0_139 = arith.constant 0 : index
    %168 = vector.load %arg6[%c0_136, %c0_137, %c1_138, %c0_139] : memref<2x7x24x128xf32, #tpu.memory_space<vmem>>, vector<1x1x16x128xf32>
    %169 = vector.shape_cast %168 : vector<1x1x16x128xf32> to vector<16x128xf32>
    %c7 = arith.constant 7 : index
    %170 = memref.load %arg4[%c7] : memref<98xf32, #tpu.memory_space<smem>>
    %171 = vector.broadcast %170 : f32 to vector<16x128xf32>
    %172 = arith.mulf %169, %171 : vector<16x128xf32>
    %173 = arith.addf %167, %172 : vector<16x128xf32>
    %c1_140 = arith.constant 1 : index
    %c0_141 = arith.constant 0 : index
    %c1_142 = arith.constant 1 : index
    %c0_143 = arith.constant 0 : index
    %174 = vector.load %arg6[%c1_140, %c0_141, %c1_142, %c0_143] : memref<2x7x24x128xf32, #tpu.memory_space<vmem>>, vector<1x1x16x128xf32>
    %175 = vector.shape_cast %174 : vector<1x1x16x128xf32> to vector<16x128xf32>
    %c56 = arith.constant 56 : index
    %176 = memref.load %arg4[%c56] : memref<98xf32, #tpu.memory_space<smem>>
    %177 = vector.broadcast %176 : f32 to vector<16x128xf32>
    %178 = arith.mulf %175, %177 : vector<16x128xf32>
    %179 = arith.addf %173, %178 : vector<16x128xf32>
    %c0_144 = arith.constant 0 : index
    %c1_145 = arith.constant 1 : index
    %c1_146 = arith.constant 1 : index
    %c0_147 = arith.constant 0 : index
    %180 = vector.load %arg6[%c0_144, %c1_145, %c1_146, %c0_147] : memref<2x7x24x128xf32, #tpu.memory_space<vmem>>, vector<1x1x16x128xf32>
    %181 = vector.shape_cast %180 : vector<1x1x16x128xf32> to vector<16x128xf32>
    %c8 = arith.constant 8 : index
    %182 = memref.load %arg4[%c8] : memref<98xf32, #tpu.memory_space<smem>>
    %183 = vector.broadcast %182 : f32 to vector<16x128xf32>
    %184 = arith.mulf %181, %183 : vector<16x128xf32>
    %185 = arith.addf %179, %184 : vector<16x128xf32>
    %c1_148 = arith.constant 1 : index
    %c1_149 = arith.constant 1 : index
    %c1_150 = arith.constant 1 : index
    %c0_151 = arith.constant 0 : index
    %186 = vector.load %arg6[%c1_148, %c1_149, %c1_150, %c0_151] : memref<2x7x24x128xf32, #tpu.memory_space<vmem>>, vector<1x1x16x128xf32>
    %187 = vector.shape_cast %186 : vector<1x1x16x128xf32> to vector<16x128xf32>
    %c57 = arith.constant 57 : index
    %188 = memref.load %arg4[%c57] : memref<98xf32, #tpu.memory_space<smem>>
    %189 = vector.broadcast %188 : f32 to vector<16x128xf32>
    %190 = arith.mulf %187, %189 : vector<16x128xf32>
    %191 = arith.addf %185, %190 : vector<16x128xf32>
    %c0_152 = arith.constant 0 : index
    %c2_153 = arith.constant 2 : index
    %c1_154 = arith.constant 1 : index
    %c0_155 = arith.constant 0 : index
    %192 = vector.load %arg6[%c0_152, %c2_153, %c1_154, %c0_155] : memref<2x7x24x128xf32, #tpu.memory_space<vmem>>, vector<1x1x16x128xf32>
    %193 = vector.shape_cast %192 : vector<1x1x16x128xf32> to vector<16x128xf32>
    %c9 = arith.constant 9 : index
    %194 = memref.load %arg4[%c9] : memref<98xf32, #tpu.memory_space<smem>>
    %195 = vector.broadcast %194 : f32 to vector<16x128xf32>
    %196 = arith.mulf %193, %195 : vector<16x128xf32>
    %197 = arith.addf %191, %196 : vector<16x128xf32>
    %c1_156 = arith.constant 1 : index
    %c2_157 = arith.constant 2 : index
    %c1_158 = arith.constant 1 : index
    %c0_159 = arith.constant 0 : index
    %198 = vector.load %arg6[%c1_156, %c2_157, %c1_158, %c0_159] : memref<2x7x24x128xf32, #tpu.memory_space<vmem>>, vector<1x1x16x128xf32>
    %199 = vector.shape_cast %198 : vector<1x1x16x128xf32> to vector<16x128xf32>
    %c58 = arith.constant 58 : index
    %200 = memref.load %arg4[%c58] : memref<98xf32, #tpu.memory_space<smem>>
    %201 = vector.broadcast %200 : f32 to vector<16x128xf32>
    %202 = arith.mulf %199, %201 : vector<16x128xf32>
    %203 = arith.addf %197, %202 : vector<16x128xf32>
    %c0_160 = arith.constant 0 : index
    %c3_161 = arith.constant 3 : index
    %c1_162 = arith.constant 1 : index
    %c0_163 = arith.constant 0 : index
    %204 = vector.load %arg6[%c0_160, %c3_161, %c1_162, %c0_163] : memref<2x7x24x128xf32, #tpu.memory_space<vmem>>, vector<1x1x16x128xf32>
    %205 = vector.shape_cast %204 : vector<1x1x16x128xf32> to vector<16x128xf32>
    %c10 = arith.constant 10 : index
    %206 = memref.load %arg4[%c10] : memref<98xf32, #tpu.memory_space<smem>>
    %207 = vector.broadcast %206 : f32 to vector<16x128xf32>
    %208 = arith.mulf %205, %207 : vector<16x128xf32>
    %209 = arith.addf %203, %208 : vector<16x128xf32>
    %c1_164 = arith.constant 1 : index
    %c3_165 = arith.constant 3 : index
    %c1_166 = arith.constant 1 : index
    %c0_167 = arith.constant 0 : index
    %210 = vector.load %arg6[%c1_164, %c3_165, %c1_166, %c0_167] : memref<2x7x24x128xf32, #tpu.memory_space<vmem>>, vector<1x1x16x128xf32>
    %211 = vector.shape_cast %210 : vector<1x1x16x128xf32> to vector<16x128xf32>
    %c59 = arith.constant 59 : index
    %212 = memref.load %arg4[%c59] : memref<98xf32, #tpu.memory_space<smem>>
    %213 = vector.broadcast %212 : f32 to vector<16x128xf32>
    %214 = arith.mulf %211, %213 : vector<16x128xf32>
    %215 = arith.addf %209, %214 : vector<16x128xf32>
    %c0_168 = arith.constant 0 : index
    %c4_169 = arith.constant 4 : index
    %c1_170 = arith.constant 1 : index
    %c0_171 = arith.constant 0 : index
    %216 = vector.load %arg6[%c0_168, %c4_169, %c1_170, %c0_171] : memref<2x7x24x128xf32, #tpu.memory_space<vmem>>, vector<1x1x16x128xf32>
    %217 = vector.shape_cast %216 : vector<1x1x16x128xf32> to vector<16x128xf32>
    %c11 = arith.constant 11 : index
    %218 = memref.load %arg4[%c11] : memref<98xf32, #tpu.memory_space<smem>>
    %219 = vector.broadcast %218 : f32 to vector<16x128xf32>
    %220 = arith.mulf %217, %219 : vector<16x128xf32>
    %221 = arith.addf %215, %220 : vector<16x128xf32>
    %c1_172 = arith.constant 1 : index
    %c4_173 = arith.constant 4 : index
    %c1_174 = arith.constant 1 : index
    %c0_175 = arith.constant 0 : index
    %222 = vector.load %arg6[%c1_172, %c4_173, %c1_174, %c0_175] : memref<2x7x24x128xf32, #tpu.memory_space<vmem>>, vector<1x1x16x128xf32>
    %223 = vector.shape_cast %222 : vector<1x1x16x128xf32> to vector<16x128xf32>
    %c60 = arith.constant 60 : index
    %224 = memref.load %arg4[%c60] : memref<98xf32, #tpu.memory_space<smem>>
    %225 = vector.broadcast %224 : f32 to vector<16x128xf32>
    %226 = arith.mulf %223, %225 : vector<16x128xf32>
    %227 = arith.addf %221, %226 : vector<16x128xf32>
    %c0_176 = arith.constant 0 : index
    %c5_177 = arith.constant 5 : index
    %c1_178 = arith.constant 1 : index
    %c0_179 = arith.constant 0 : index
    %228 = vector.load %arg6[%c0_176, %c5_177, %c1_178, %c0_179] : memref<2x7x24x128xf32, #tpu.memory_space<vmem>>, vector<1x1x16x128xf32>
    %229 = vector.shape_cast %228 : vector<1x1x16x128xf32> to vector<16x128xf32>
    %c12 = arith.constant 12 : index
    %230 = memref.load %arg4[%c12] : memref<98xf32, #tpu.memory_space<smem>>
    %231 = vector.broadcast %230 : f32 to vector<16x128xf32>
    %232 = arith.mulf %229, %231 : vector<16x128xf32>
    %233 = arith.addf %227, %232 : vector<16x128xf32>
    %c1_180 = arith.constant 1 : index
    %c5_181 = arith.constant 5 : index
    %c1_182 = arith.constant 1 : index
    %c0_183 = arith.constant 0 : index
    %234 = vector.load %arg6[%c1_180, %c5_181, %c1_182, %c0_183] : memref<2x7x24x128xf32, #tpu.memory_space<vmem>>, vector<1x1x16x128xf32>
    %235 = vector.shape_cast %234 : vector<1x1x16x128xf32> to vector<16x128xf32>
    %c61 = arith.constant 61 : index
    %236 = memref.load %arg4[%c61] : memref<98xf32, #tpu.memory_space<smem>>
    %237 = vector.broadcast %236 : f32 to vector<16x128xf32>
    %238 = arith.mulf %235, %237 : vector<16x128xf32>
    %239 = arith.addf %233, %238 : vector<16x128xf32>
    %c0_184 = arith.constant 0 : index
    %c6_185 = arith.constant 6 : index
    %c1_186 = arith.constant 1 : index
    %c0_187 = arith.constant 0 : index
    %240 = vector.load %arg6[%c0_184, %c6_185, %c1_186, %c0_187] : memref<2x7x24x128xf32, #tpu.memory_space<vmem>>, vector<1x1x16x128xf32>
    %241 = vector.shape_cast %240 : vector<1x1x16x128xf32> to vector<16x128xf32>
    %c13 = arith.constant 13 : index
    %242 = memref.load %arg4[%c13] : memref<98xf32, #tpu.memory_space<smem>>
    %243 = vector.broadcast %242 : f32 to vector<16x128xf32>
    %244 = arith.mulf %241, %243 : vector<16x128xf32>
    %245 = arith.addf %239, %244 : vector<16x128xf32>
    %c1_188 = arith.constant 1 : index
    %c6_189 = arith.constant 6 : index
    %c1_190 = arith.constant 1 : index
    %c0_191 = arith.constant 0 : index
    %246 = vector.load %arg6[%c1_188, %c6_189, %c1_190, %c0_191] : memref<2x7x24x128xf32, #tpu.memory_space<vmem>>, vector<1x1x16x128xf32>
    %247 = vector.shape_cast %246 : vector<1x1x16x128xf32> to vector<16x128xf32>
    %c62 = arith.constant 62 : index
    %248 = memref.load %arg4[%c62] : memref<98xf32, #tpu.memory_space<smem>>
    %249 = vector.broadcast %248 : f32 to vector<16x128xf32>
    %250 = arith.mulf %247, %249 : vector<16x128xf32>
    %251 = arith.addf %245, %250 : vector<16x128xf32>
    %c0_192 = arith.constant 0 : index
    %c0_193 = arith.constant 0 : index
    %c2_194 = arith.constant 2 : index
    %c0_195 = arith.constant 0 : index
    %252 = vector.load %arg6[%c0_192, %c0_193, %c2_194, %c0_195] : memref<2x7x24x128xf32, #tpu.memory_space<vmem>>, vector<1x1x16x128xf32>
    %253 = vector.shape_cast %252 : vector<1x1x16x128xf32> to vector<16x128xf32>
    %c14 = arith.constant 14 : index
    %254 = memref.load %arg4[%c14] : memref<98xf32, #tpu.memory_space<smem>>
    %255 = vector.broadcast %254 : f32 to vector<16x128xf32>
    %256 = arith.mulf %253, %255 : vector<16x128xf32>
    %257 = arith.addf %251, %256 : vector<16x128xf32>
    %c1_196 = arith.constant 1 : index
    %c0_197 = arith.constant 0 : index
    %c2_198 = arith.constant 2 : index
    %c0_199 = arith.constant 0 : index
    %258 = vector.load %arg6[%c1_196, %c0_197, %c2_198, %c0_199] : memref<2x7x24x128xf32, #tpu.memory_space<vmem>>, vector<1x1x16x128xf32>
    %259 = vector.shape_cast %258 : vector<1x1x16x128xf32> to vector<16x128xf32>
    %c63 = arith.constant 63 : index
    %260 = memref.load %arg4[%c63] : memref<98xf32, #tpu.memory_space<smem>>
    %261 = vector.broadcast %260 : f32 to vector<16x128xf32>
    %262 = arith.mulf %259, %261 : vector<16x128xf32>
    %263 = arith.addf %257, %262 : vector<16x128xf32>
    %c0_200 = arith.constant 0 : index
    %c1_201 = arith.constant 1 : index
    %c2_202 = arith.constant 2 : index
    %c0_203 = arith.constant 0 : index
    %264 = vector.load %arg6[%c0_200, %c1_201, %c2_202, %c0_203] : memref<2x7x24x128xf32, #tpu.memory_space<vmem>>, vector<1x1x16x128xf32>
    %265 = vector.shape_cast %264 : vector<1x1x16x128xf32> to vector<16x128xf32>
    %c15 = arith.constant 15 : index
    %266 = memref.load %arg4[%c15] : memref<98xf32, #tpu.memory_space<smem>>
    %267 = vector.broadcast %266 : f32 to vector<16x128xf32>
    %268 = arith.mulf %265, %267 : vector<16x128xf32>
    %269 = arith.addf %263, %268 : vector<16x128xf32>
    %c1_204 = arith.constant 1 : index
    %c1_205 = arith.constant 1 : index
    %c2_206 = arith.constant 2 : index
    %c0_207 = arith.constant 0 : index
    %270 = vector.load %arg6[%c1_204, %c1_205, %c2_206, %c0_207] : memref<2x7x24x128xf32, #tpu.memory_space<vmem>>, vector<1x1x16x128xf32>
    %271 = vector.shape_cast %270 : vector<1x1x16x128xf32> to vector<16x128xf32>
    %c64 = arith.constant 64 : index
    %272 = memref.load %arg4[%c64] : memref<98xf32, #tpu.memory_space<smem>>
    %273 = vector.broadcast %272 : f32 to vector<16x128xf32>
    %274 = arith.mulf %271, %273 : vector<16x128xf32>
    %275 = arith.addf %269, %274 : vector<16x128xf32>
    %c0_208 = arith.constant 0 : index
    %c2_209 = arith.constant 2 : index
    %c2_210 = arith.constant 2 : index
    %c0_211 = arith.constant 0 : index
    %276 = vector.load %arg6[%c0_208, %c2_209, %c2_210, %c0_211] : memref<2x7x24x128xf32, #tpu.memory_space<vmem>>, vector<1x1x16x128xf32>
    %277 = vector.shape_cast %276 : vector<1x1x16x128xf32> to vector<16x128xf32>
    %c16 = arith.constant 16 : index
    %278 = memref.load %arg4[%c16] : memref<98xf32, #tpu.memory_space<smem>>
    %279 = vector.broadcast %278 : f32 to vector<16x128xf32>
    %280 = arith.mulf %277, %279 : vector<16x128xf32>
    %281 = arith.addf %275, %280 : vector<16x128xf32>
    %c1_212 = arith.constant 1 : index
    %c2_213 = arith.constant 2 : index
    %c2_214 = arith.constant 2 : index
    %c0_215 = arith.constant 0 : index
    %282 = vector.load %arg6[%c1_212, %c2_213, %c2_214, %c0_215] : memref<2x7x24x128xf32, #tpu.memory_space<vmem>>, vector<1x1x16x128xf32>
    %283 = vector.shape_cast %282 : vector<1x1x16x128xf32> to vector<16x128xf32>
    %c65 = arith.constant 65 : index
    %284 = memref.load %arg4[%c65] : memref<98xf32, #tpu.memory_space<smem>>
    %285 = vector.broadcast %284 : f32 to vector<16x128xf32>
    %286 = arith.mulf %283, %285 : vector<16x128xf32>
    %287 = arith.addf %281, %286 : vector<16x128xf32>
    %c0_216 = arith.constant 0 : index
    %c3_217 = arith.constant 3 : index
    %c2_218 = arith.constant 2 : index
    %c0_219 = arith.constant 0 : index
    %288 = vector.load %arg6[%c0_216, %c3_217, %c2_218, %c0_219] : memref<2x7x24x128xf32, #tpu.memory_space<vmem>>, vector<1x1x16x128xf32>
    %289 = vector.shape_cast %288 : vector<1x1x16x128xf32> to vector<16x128xf32>
    %c17 = arith.constant 17 : index
    %290 = memref.load %arg4[%c17] : memref<98xf32, #tpu.memory_space<smem>>
    %291 = vector.broadcast %290 : f32 to vector<16x128xf32>
    %292 = arith.mulf %289, %291 : vector<16x128xf32>
    %293 = arith.addf %287, %292 : vector<16x128xf32>
    %c1_220 = arith.constant 1 : index
    %c3_221 = arith.constant 3 : index
    %c2_222 = arith.constant 2 : index
    %c0_223 = arith.constant 0 : index
    %294 = vector.load %arg6[%c1_220, %c3_221, %c2_222, %c0_223] : memref<2x7x24x128xf32, #tpu.memory_space<vmem>>, vector<1x1x16x128xf32>
    %295 = vector.shape_cast %294 : vector<1x1x16x128xf32> to vector<16x128xf32>
    %c66 = arith.constant 66 : index
    %296 = memref.load %arg4[%c66] : memref<98xf32, #tpu.memory_space<smem>>
    %297 = vector.broadcast %296 : f32 to vector<16x128xf32>
    %298 = arith.mulf %295, %297 : vector<16x128xf32>
    %299 = arith.addf %293, %298 : vector<16x128xf32>
    %c0_224 = arith.constant 0 : index
    %c4_225 = arith.constant 4 : index
    %c2_226 = arith.constant 2 : index
    %c0_227 = arith.constant 0 : index
    %300 = vector.load %arg6[%c0_224, %c4_225, %c2_226, %c0_227] : memref<2x7x24x128xf32, #tpu.memory_space<vmem>>, vector<1x1x16x128xf32>
    %301 = vector.shape_cast %300 : vector<1x1x16x128xf32> to vector<16x128xf32>
    %c18 = arith.constant 18 : index
    %302 = memref.load %arg4[%c18] : memref<98xf32, #tpu.memory_space<smem>>
    %303 = vector.broadcast %302 : f32 to vector<16x128xf32>
    %304 = arith.mulf %301, %303 : vector<16x128xf32>
    %305 = arith.addf %299, %304 : vector<16x128xf32>
    %c1_228 = arith.constant 1 : index
    %c4_229 = arith.constant 4 : index
    %c2_230 = arith.constant 2 : index
    %c0_231 = arith.constant 0 : index
    %306 = vector.load %arg6[%c1_228, %c4_229, %c2_230, %c0_231] : memref<2x7x24x128xf32, #tpu.memory_space<vmem>>, vector<1x1x16x128xf32>
    %307 = vector.shape_cast %306 : vector<1x1x16x128xf32> to vector<16x128xf32>
    %c67 = arith.constant 67 : index
    %308 = memref.load %arg4[%c67] : memref<98xf32, #tpu.memory_space<smem>>
    %309 = vector.broadcast %308 : f32 to vector<16x128xf32>
    %310 = arith.mulf %307, %309 : vector<16x128xf32>
    %311 = arith.addf %305, %310 : vector<16x128xf32>
    %c0_232 = arith.constant 0 : index
    %c5_233 = arith.constant 5 : index
    %c2_234 = arith.constant 2 : index
    %c0_235 = arith.constant 0 : index
    %312 = vector.load %arg6[%c0_232, %c5_233, %c2_234, %c0_235] : memref<2x7x24x128xf32, #tpu.memory_space<vmem>>, vector<1x1x16x128xf32>
    %313 = vector.shape_cast %312 : vector<1x1x16x128xf32> to vector<16x128xf32>
    %c19 = arith.constant 19 : index
    %314 = memref.load %arg4[%c19] : memref<98xf32, #tpu.memory_space<smem>>
    %315 = vector.broadcast %314 : f32 to vector<16x128xf32>
    %316 = arith.mulf %313, %315 : vector<16x128xf32>
    %317 = arith.addf %311, %316 : vector<16x128xf32>
    %c1_236 = arith.constant 1 : index
    %c5_237 = arith.constant 5 : index
    %c2_238 = arith.constant 2 : index
    %c0_239 = arith.constant 0 : index
    %318 = vector.load %arg6[%c1_236, %c5_237, %c2_238, %c0_239] : memref<2x7x24x128xf32, #tpu.memory_space<vmem>>, vector<1x1x16x128xf32>
    %319 = vector.shape_cast %318 : vector<1x1x16x128xf32> to vector<16x128xf32>
    %c68 = arith.constant 68 : index
    %320 = memref.load %arg4[%c68] : memref<98xf32, #tpu.memory_space<smem>>
    %321 = vector.broadcast %320 : f32 to vector<16x128xf32>
    %322 = arith.mulf %319, %321 : vector<16x128xf32>
    %323 = arith.addf %317, %322 : vector<16x128xf32>
    %c0_240 = arith.constant 0 : index
    %c6_241 = arith.constant 6 : index
    %c2_242 = arith.constant 2 : index
    %c0_243 = arith.constant 0 : index
    %324 = vector.load %arg6[%c0_240, %c6_241, %c2_242, %c0_243] : memref<2x7x24x128xf32, #tpu.memory_space<vmem>>, vector<1x1x16x128xf32>
    %325 = vector.shape_cast %324 : vector<1x1x16x128xf32> to vector<16x128xf32>
    %c20 = arith.constant 20 : index
    %326 = memref.load %arg4[%c20] : memref<98xf32, #tpu.memory_space<smem>>
    %327 = vector.broadcast %326 : f32 to vector<16x128xf32>
    %328 = arith.mulf %325, %327 : vector<16x128xf32>
    %329 = arith.addf %323, %328 : vector<16x128xf32>
    %c1_244 = arith.constant 1 : index
    %c6_245 = arith.constant 6 : index
    %c2_246 = arith.constant 2 : index
    %c0_247 = arith.constant 0 : index
    %330 = vector.load %arg6[%c1_244, %c6_245, %c2_246, %c0_247] : memref<2x7x24x128xf32, #tpu.memory_space<vmem>>, vector<1x1x16x128xf32>
    %331 = vector.shape_cast %330 : vector<1x1x16x128xf32> to vector<16x128xf32>
    %c69 = arith.constant 69 : index
    %332 = memref.load %arg4[%c69] : memref<98xf32, #tpu.memory_space<smem>>
    %333 = vector.broadcast %332 : f32 to vector<16x128xf32>
    %334 = arith.mulf %331, %333 : vector<16x128xf32>
    %335 = arith.addf %329, %334 : vector<16x128xf32>
    %c0_248 = arith.constant 0 : index
    %c0_249 = arith.constant 0 : index
    %c3_250 = arith.constant 3 : index
    %c0_251 = arith.constant 0 : index
    %336 = vector.load %arg6[%c0_248, %c0_249, %c3_250, %c0_251] : memref<2x7x24x128xf32, #tpu.memory_space<vmem>>, vector<1x1x16x128xf32>
    %337 = vector.shape_cast %336 : vector<1x1x16x128xf32> to vector<16x128xf32>
    %c21 = arith.constant 21 : index
    %338 = memref.load %arg4[%c21] : memref<98xf32, #tpu.memory_space<smem>>
    %339 = vector.broadcast %338 : f32 to vector<16x128xf32>
    %340 = arith.mulf %337, %339 : vector<16x128xf32>
    %341 = arith.addf %335, %340 : vector<16x128xf32>
    %c1_252 = arith.constant 1 : index
    %c0_253 = arith.constant 0 : index
    %c3_254 = arith.constant 3 : index
    %c0_255 = arith.constant 0 : index
    %342 = vector.load %arg6[%c1_252, %c0_253, %c3_254, %c0_255] : memref<2x7x24x128xf32, #tpu.memory_space<vmem>>, vector<1x1x16x128xf32>
    %343 = vector.shape_cast %342 : vector<1x1x16x128xf32> to vector<16x128xf32>
    %c70 = arith.constant 70 : index
    %344 = memref.load %arg4[%c70] : memref<98xf32, #tpu.memory_space<smem>>
    %345 = vector.broadcast %344 : f32 to vector<16x128xf32>
    %346 = arith.mulf %343, %345 : vector<16x128xf32>
    %347 = arith.addf %341, %346 : vector<16x128xf32>
    %c0_256 = arith.constant 0 : index
    %c1_257 = arith.constant 1 : index
    %c3_258 = arith.constant 3 : index
    %c0_259 = arith.constant 0 : index
    %348 = vector.load %arg6[%c0_256, %c1_257, %c3_258, %c0_259] : memref<2x7x24x128xf32, #tpu.memory_space<vmem>>, vector<1x1x16x128xf32>
    %349 = vector.shape_cast %348 : vector<1x1x16x128xf32> to vector<16x128xf32>
    %c22 = arith.constant 22 : index
    %350 = memref.load %arg4[%c22] : memref<98xf32, #tpu.memory_space<smem>>
    %351 = vector.broadcast %350 : f32 to vector<16x128xf32>
    %352 = arith.mulf %349, %351 : vector<16x128xf32>
    %353 = arith.addf %347, %352 : vector<16x128xf32>
    %c1_260 = arith.constant 1 : index
    %c1_261 = arith.constant 1 : index
    %c3_262 = arith.constant 3 : index
    %c0_263 = arith.constant 0 : index
    %354 = vector.load %arg6[%c1_260, %c1_261, %c3_262, %c0_263] : memref<2x7x24x128xf32, #tpu.memory_space<vmem>>, vector<1x1x16x128xf32>
    %355 = vector.shape_cast %354 : vector<1x1x16x128xf32> to vector<16x128xf32>
    %c71 = arith.constant 71 : index
    %356 = memref.load %arg4[%c71] : memref<98xf32, #tpu.memory_space<smem>>
    %357 = vector.broadcast %356 : f32 to vector<16x128xf32>
    %358 = arith.mulf %355, %357 : vector<16x128xf32>
    %359 = arith.addf %353, %358 : vector<16x128xf32>
    %c0_264 = arith.constant 0 : index
    %c2_265 = arith.constant 2 : index
    %c3_266 = arith.constant 3 : index
    %c0_267 = arith.constant 0 : index
    %360 = vector.load %arg6[%c0_264, %c2_265, %c3_266, %c0_267] : memref<2x7x24x128xf32, #tpu.memory_space<vmem>>, vector<1x1x16x128xf32>
    %361 = vector.shape_cast %360 : vector<1x1x16x128xf32> to vector<16x128xf32>
    %c23 = arith.constant 23 : index
    %362 = memref.load %arg4[%c23] : memref<98xf32, #tpu.memory_space<smem>>
    %363 = vector.broadcast %362 : f32 to vector<16x128xf32>
    %364 = arith.mulf %361, %363 : vector<16x128xf32>
    %365 = arith.addf %359, %364 : vector<16x128xf32>
    %c1_268 = arith.constant 1 : index
    %c2_269 = arith.constant 2 : index
    %c3_270 = arith.constant 3 : index
    %c0_271 = arith.constant 0 : index
    %366 = vector.load %arg6[%c1_268, %c2_269, %c3_270, %c0_271] : memref<2x7x24x128xf32, #tpu.memory_space<vmem>>, vector<1x1x16x128xf32>
    %367 = vector.shape_cast %366 : vector<1x1x16x128xf32> to vector<16x128xf32>
    %c72 = arith.constant 72 : index
    %368 = memref.load %arg4[%c72] : memref<98xf32, #tpu.memory_space<smem>>
    %369 = vector.broadcast %368 : f32 to vector<16x128xf32>
    %370 = arith.mulf %367, %369 : vector<16x128xf32>
    %371 = arith.addf %365, %370 : vector<16x128xf32>
    %c0_272 = arith.constant 0 : index
    %c3_273 = arith.constant 3 : index
    %c3_274 = arith.constant 3 : index
    %c0_275 = arith.constant 0 : index
    %372 = vector.load %arg6[%c0_272, %c3_273, %c3_274, %c0_275] : memref<2x7x24x128xf32, #tpu.memory_space<vmem>>, vector<1x1x16x128xf32>
    %373 = vector.shape_cast %372 : vector<1x1x16x128xf32> to vector<16x128xf32>
    %c24 = arith.constant 24 : index
    %374 = memref.load %arg4[%c24] : memref<98xf32, #tpu.memory_space<smem>>
    %375 = vector.broadcast %374 : f32 to vector<16x128xf32>
    %376 = arith.mulf %373, %375 : vector<16x128xf32>
    %377 = arith.addf %371, %376 : vector<16x128xf32>
    %c1_276 = arith.constant 1 : index
    %c3_277 = arith.constant 3 : index
    %c3_278 = arith.constant 3 : index
    %c0_279 = arith.constant 0 : index
    %378 = vector.load %arg6[%c1_276, %c3_277, %c3_278, %c0_279] : memref<2x7x24x128xf32, #tpu.memory_space<vmem>>, vector<1x1x16x128xf32>
    %379 = vector.shape_cast %378 : vector<1x1x16x128xf32> to vector<16x128xf32>
    %c73 = arith.constant 73 : index
    %380 = memref.load %arg4[%c73] : memref<98xf32, #tpu.memory_space<smem>>
    %381 = vector.broadcast %380 : f32 to vector<16x128xf32>
    %382 = arith.mulf %379, %381 : vector<16x128xf32>
    %383 = arith.addf %377, %382 : vector<16x128xf32>
    %c0_280 = arith.constant 0 : index
    %c4_281 = arith.constant 4 : index
    %c3_282 = arith.constant 3 : index
    %c0_283 = arith.constant 0 : index
    %384 = vector.load %arg6[%c0_280, %c4_281, %c3_282, %c0_283] : memref<2x7x24x128xf32, #tpu.memory_space<vmem>>, vector<1x1x16x128xf32>
    %385 = vector.shape_cast %384 : vector<1x1x16x128xf32> to vector<16x128xf32>
    %c25 = arith.constant 25 : index
    %386 = memref.load %arg4[%c25] : memref<98xf32, #tpu.memory_space<smem>>
    %387 = vector.broadcast %386 : f32 to vector<16x128xf32>
    %388 = arith.mulf %385, %387 : vector<16x128xf32>
    %389 = arith.addf %383, %388 : vector<16x128xf32>
    %c1_284 = arith.constant 1 : index
    %c4_285 = arith.constant 4 : index
    %c3_286 = arith.constant 3 : index
    %c0_287 = arith.constant 0 : index
    %390 = vector.load %arg6[%c1_284, %c4_285, %c3_286, %c0_287] : memref<2x7x24x128xf32, #tpu.memory_space<vmem>>, vector<1x1x16x128xf32>
    %391 = vector.shape_cast %390 : vector<1x1x16x128xf32> to vector<16x128xf32>
    %c74 = arith.constant 74 : index
    %392 = memref.load %arg4[%c74] : memref<98xf32, #tpu.memory_space<smem>>
    %393 = vector.broadcast %392 : f32 to vector<16x128xf32>
    %394 = arith.mulf %391, %393 : vector<16x128xf32>
    %395 = arith.addf %389, %394 : vector<16x128xf32>
    %c0_288 = arith.constant 0 : index
    %c5_289 = arith.constant 5 : index
    %c3_290 = arith.constant 3 : index
    %c0_291 = arith.constant 0 : index
    %396 = vector.load %arg6[%c0_288, %c5_289, %c3_290, %c0_291] : memref<2x7x24x128xf32, #tpu.memory_space<vmem>>, vector<1x1x16x128xf32>
    %397 = vector.shape_cast %396 : vector<1x1x16x128xf32> to vector<16x128xf32>
    %c26 = arith.constant 26 : index
    %398 = memref.load %arg4[%c26] : memref<98xf32, #tpu.memory_space<smem>>
    %399 = vector.broadcast %398 : f32 to vector<16x128xf32>
    %400 = arith.mulf %397, %399 : vector<16x128xf32>
    %401 = arith.addf %395, %400 : vector<16x128xf32>
    %c1_292 = arith.constant 1 : index
    %c5_293 = arith.constant 5 : index
    %c3_294 = arith.constant 3 : index
    %c0_295 = arith.constant 0 : index
    %402 = vector.load %arg6[%c1_292, %c5_293, %c3_294, %c0_295] : memref<2x7x24x128xf32, #tpu.memory_space<vmem>>, vector<1x1x16x128xf32>
    %403 = vector.shape_cast %402 : vector<1x1x16x128xf32> to vector<16x128xf32>
    %c75 = arith.constant 75 : index
    %404 = memref.load %arg4[%c75] : memref<98xf32, #tpu.memory_space<smem>>
    %405 = vector.broadcast %404 : f32 to vector<16x128xf32>
    %406 = arith.mulf %403, %405 : vector<16x128xf32>
    %407 = arith.addf %401, %406 : vector<16x128xf32>
    %c0_296 = arith.constant 0 : index
    %c6_297 = arith.constant 6 : index
    %c3_298 = arith.constant 3 : index
    %c0_299 = arith.constant 0 : index
    %408 = vector.load %arg6[%c0_296, %c6_297, %c3_298, %c0_299] : memref<2x7x24x128xf32, #tpu.memory_space<vmem>>, vector<1x1x16x128xf32>
    %409 = vector.shape_cast %408 : vector<1x1x16x128xf32> to vector<16x128xf32>
    %c27 = arith.constant 27 : index
    %410 = memref.load %arg4[%c27] : memref<98xf32, #tpu.memory_space<smem>>
    %411 = vector.broadcast %410 : f32 to vector<16x128xf32>
    %412 = arith.mulf %409, %411 : vector<16x128xf32>
    %413 = arith.addf %407, %412 : vector<16x128xf32>
    %c1_300 = arith.constant 1 : index
    %c6_301 = arith.constant 6 : index
    %c3_302 = arith.constant 3 : index
    %c0_303 = arith.constant 0 : index
    %414 = vector.load %arg6[%c1_300, %c6_301, %c3_302, %c0_303] : memref<2x7x24x128xf32, #tpu.memory_space<vmem>>, vector<1x1x16x128xf32>
    %415 = vector.shape_cast %414 : vector<1x1x16x128xf32> to vector<16x128xf32>
    %c76 = arith.constant 76 : index
    %416 = memref.load %arg4[%c76] : memref<98xf32, #tpu.memory_space<smem>>
    %417 = vector.broadcast %416 : f32 to vector<16x128xf32>
    %418 = arith.mulf %415, %417 : vector<16x128xf32>
    %419 = arith.addf %413, %418 : vector<16x128xf32>
    %c0_304 = arith.constant 0 : index
    %c0_305 = arith.constant 0 : index
    %c4_306 = arith.constant 4 : index
    %c0_307 = arith.constant 0 : index
    %420 = vector.load %arg6[%c0_304, %c0_305, %c4_306, %c0_307] : memref<2x7x24x128xf32, #tpu.memory_space<vmem>>, vector<1x1x16x128xf32>
    %421 = vector.shape_cast %420 : vector<1x1x16x128xf32> to vector<16x128xf32>
    %c28 = arith.constant 28 : index
    %422 = memref.load %arg4[%c28] : memref<98xf32, #tpu.memory_space<smem>>
    %423 = vector.broadcast %422 : f32 to vector<16x128xf32>
    %424 = arith.mulf %421, %423 : vector<16x128xf32>
    %425 = arith.addf %419, %424 : vector<16x128xf32>
    %c1_308 = arith.constant 1 : index
    %c0_309 = arith.constant 0 : index
    %c4_310 = arith.constant 4 : index
    %c0_311 = arith.constant 0 : index
    %426 = vector.load %arg6[%c1_308, %c0_309, %c4_310, %c0_311] : memref<2x7x24x128xf32, #tpu.memory_space<vmem>>, vector<1x1x16x128xf32>
    %427 = vector.shape_cast %426 : vector<1x1x16x128xf32> to vector<16x128xf32>
    %c77 = arith.constant 77 : index
    %428 = memref.load %arg4[%c77] : memref<98xf32, #tpu.memory_space<smem>>
    %429 = vector.broadcast %428 : f32 to vector<16x128xf32>
    %430 = arith.mulf %427, %429 : vector<16x128xf32>
    %431 = arith.addf %425, %430 : vector<16x128xf32>
    %c0_312 = arith.constant 0 : index
    %c1_313 = arith.constant 1 : index
    %c4_314 = arith.constant 4 : index
    %c0_315 = arith.constant 0 : index
    %432 = vector.load %arg6[%c0_312, %c1_313, %c4_314, %c0_315] : memref<2x7x24x128xf32, #tpu.memory_space<vmem>>, vector<1x1x16x128xf32>
    %433 = vector.shape_cast %432 : vector<1x1x16x128xf32> to vector<16x128xf32>
    %c29 = arith.constant 29 : index
    %434 = memref.load %arg4[%c29] : memref<98xf32, #tpu.memory_space<smem>>
    %435 = vector.broadcast %434 : f32 to vector<16x128xf32>
    %436 = arith.mulf %433, %435 : vector<16x128xf32>
    %437 = arith.addf %431, %436 : vector<16x128xf32>
    %c1_316 = arith.constant 1 : index
    %c1_317 = arith.constant 1 : index
    %c4_318 = arith.constant 4 : index
    %c0_319 = arith.constant 0 : index
    %438 = vector.load %arg6[%c1_316, %c1_317, %c4_318, %c0_319] : memref<2x7x24x128xf32, #tpu.memory_space<vmem>>, vector<1x1x16x128xf32>
    %439 = vector.shape_cast %438 : vector<1x1x16x128xf32> to vector<16x128xf32>
    %c78 = arith.constant 78 : index
    %440 = memref.load %arg4[%c78] : memref<98xf32, #tpu.memory_space<smem>>
    %441 = vector.broadcast %440 : f32 to vector<16x128xf32>
    %442 = arith.mulf %439, %441 : vector<16x128xf32>
    %443 = arith.addf %437, %442 : vector<16x128xf32>
    %c0_320 = arith.constant 0 : index
    %c2_321 = arith.constant 2 : index
    %c4_322 = arith.constant 4 : index
    %c0_323 = arith.constant 0 : index
    %444 = vector.load %arg6[%c0_320, %c2_321, %c4_322, %c0_323] : memref<2x7x24x128xf32, #tpu.memory_space<vmem>>, vector<1x1x16x128xf32>
    %445 = vector.shape_cast %444 : vector<1x1x16x128xf32> to vector<16x128xf32>
    %c30 = arith.constant 30 : index
    %446 = memref.load %arg4[%c30] : memref<98xf32, #tpu.memory_space<smem>>
    %447 = vector.broadcast %446 : f32 to vector<16x128xf32>
    %448 = arith.mulf %445, %447 : vector<16x128xf32>
    %449 = arith.addf %443, %448 : vector<16x128xf32>
    %c1_324 = arith.constant 1 : index
    %c2_325 = arith.constant 2 : index
    %c4_326 = arith.constant 4 : index
    %c0_327 = arith.constant 0 : index
    %450 = vector.load %arg6[%c1_324, %c2_325, %c4_326, %c0_327] : memref<2x7x24x128xf32, #tpu.memory_space<vmem>>, vector<1x1x16x128xf32>
    %451 = vector.shape_cast %450 : vector<1x1x16x128xf32> to vector<16x128xf32>
    %c79 = arith.constant 79 : index
    %452 = memref.load %arg4[%c79] : memref<98xf32, #tpu.memory_space<smem>>
    %453 = vector.broadcast %452 : f32 to vector<16x128xf32>
    %454 = arith.mulf %451, %453 : vector<16x128xf32>
    %455 = arith.addf %449, %454 : vector<16x128xf32>
    %c0_328 = arith.constant 0 : index
    %c3_329 = arith.constant 3 : index
    %c4_330 = arith.constant 4 : index
    %c0_331 = arith.constant 0 : index
    %456 = vector.load %arg6[%c0_328, %c3_329, %c4_330, %c0_331] : memref<2x7x24x128xf32, #tpu.memory_space<vmem>>, vector<1x1x16x128xf32>
    %457 = vector.shape_cast %456 : vector<1x1x16x128xf32> to vector<16x128xf32>
    %c31 = arith.constant 31 : index
    %458 = memref.load %arg4[%c31] : memref<98xf32, #tpu.memory_space<smem>>
    %459 = vector.broadcast %458 : f32 to vector<16x128xf32>
    %460 = arith.mulf %457, %459 : vector<16x128xf32>
    %461 = arith.addf %455, %460 : vector<16x128xf32>
    %c1_332 = arith.constant 1 : index
    %c3_333 = arith.constant 3 : index
    %c4_334 = arith.constant 4 : index
    %c0_335 = arith.constant 0 : index
    %462 = vector.load %arg6[%c1_332, %c3_333, %c4_334, %c0_335] : memref<2x7x24x128xf32, #tpu.memory_space<vmem>>, vector<1x1x16x128xf32>
    %463 = vector.shape_cast %462 : vector<1x1x16x128xf32> to vector<16x128xf32>
    %c80 = arith.constant 80 : index
    %464 = memref.load %arg4[%c80] : memref<98xf32, #tpu.memory_space<smem>>
    %465 = vector.broadcast %464 : f32 to vector<16x128xf32>
    %466 = arith.mulf %463, %465 : vector<16x128xf32>
    %467 = arith.addf %461, %466 : vector<16x128xf32>
    %c0_336 = arith.constant 0 : index
    %c4_337 = arith.constant 4 : index
    %c4_338 = arith.constant 4 : index
    %c0_339 = arith.constant 0 : index
    %468 = vector.load %arg6[%c0_336, %c4_337, %c4_338, %c0_339] : memref<2x7x24x128xf32, #tpu.memory_space<vmem>>, vector<1x1x16x128xf32>
    %469 = vector.shape_cast %468 : vector<1x1x16x128xf32> to vector<16x128xf32>
    %c32 = arith.constant 32 : index
    %470 = memref.load %arg4[%c32] : memref<98xf32, #tpu.memory_space<smem>>
    %471 = vector.broadcast %470 : f32 to vector<16x128xf32>
    %472 = arith.mulf %469, %471 : vector<16x128xf32>
    %473 = arith.addf %467, %472 : vector<16x128xf32>
    %c1_340 = arith.constant 1 : index
    %c4_341 = arith.constant 4 : index
    %c4_342 = arith.constant 4 : index
    %c0_343 = arith.constant 0 : index
    %474 = vector.load %arg6[%c1_340, %c4_341, %c4_342, %c0_343] : memref<2x7x24x128xf32, #tpu.memory_space<vmem>>, vector<1x1x16x128xf32>
    %475 = vector.shape_cast %474 : vector<1x1x16x128xf32> to vector<16x128xf32>
    %c81 = arith.constant 81 : index
    %476 = memref.load %arg4[%c81] : memref<98xf32, #tpu.memory_space<smem>>
    %477 = vector.broadcast %476 : f32 to vector<16x128xf32>
    %478 = arith.mulf %475, %477 : vector<16x128xf32>
    %479 = arith.addf %473, %478 : vector<16x128xf32>
    %c0_344 = arith.constant 0 : index
    %c5_345 = arith.constant 5 : index
    %c4_346 = arith.constant 4 : index
    %c0_347 = arith.constant 0 : index
    %480 = vector.load %arg6[%c0_344, %c5_345, %c4_346, %c0_347] : memref<2x7x24x128xf32, #tpu.memory_space<vmem>>, vector<1x1x16x128xf32>
    %481 = vector.shape_cast %480 : vector<1x1x16x128xf32> to vector<16x128xf32>
    %c33 = arith.constant 33 : index
    %482 = memref.load %arg4[%c33] : memref<98xf32, #tpu.memory_space<smem>>
    %483 = vector.broadcast %482 : f32 to vector<16x128xf32>
    %484 = arith.mulf %481, %483 : vector<16x128xf32>
    %485 = arith.addf %479, %484 : vector<16x128xf32>
    %c1_348 = arith.constant 1 : index
    %c5_349 = arith.constant 5 : index
    %c4_350 = arith.constant 4 : index
    %c0_351 = arith.constant 0 : index
    %486 = vector.load %arg6[%c1_348, %c5_349, %c4_350, %c0_351] : memref<2x7x24x128xf32, #tpu.memory_space<vmem>>, vector<1x1x16x128xf32>
    %487 = vector.shape_cast %486 : vector<1x1x16x128xf32> to vector<16x128xf32>
    %c82 = arith.constant 82 : index
    %488 = memref.load %arg4[%c82] : memref<98xf32, #tpu.memory_space<smem>>
    %489 = vector.broadcast %488 : f32 to vector<16x128xf32>
    %490 = arith.mulf %487, %489 : vector<16x128xf32>
    %491 = arith.addf %485, %490 : vector<16x128xf32>
    %c0_352 = arith.constant 0 : index
    %c6_353 = arith.constant 6 : index
    %c4_354 = arith.constant 4 : index
    %c0_355 = arith.constant 0 : index
    %492 = vector.load %arg6[%c0_352, %c6_353, %c4_354, %c0_355] : memref<2x7x24x128xf32, #tpu.memory_space<vmem>>, vector<1x1x16x128xf32>
    %493 = vector.shape_cast %492 : vector<1x1x16x128xf32> to vector<16x128xf32>
    %c34 = arith.constant 34 : index
    %494 = memref.load %arg4[%c34] : memref<98xf32, #tpu.memory_space<smem>>
    %495 = vector.broadcast %494 : f32 to vector<16x128xf32>
    %496 = arith.mulf %493, %495 : vector<16x128xf32>
    %497 = arith.addf %491, %496 : vector<16x128xf32>
    %c1_356 = arith.constant 1 : index
    %c6_357 = arith.constant 6 : index
    %c4_358 = arith.constant 4 : index
    %c0_359 = arith.constant 0 : index
    %498 = vector.load %arg6[%c1_356, %c6_357, %c4_358, %c0_359] : memref<2x7x24x128xf32, #tpu.memory_space<vmem>>, vector<1x1x16x128xf32>
    %499 = vector.shape_cast %498 : vector<1x1x16x128xf32> to vector<16x128xf32>
    %c83 = arith.constant 83 : index
    %500 = memref.load %arg4[%c83] : memref<98xf32, #tpu.memory_space<smem>>
    %501 = vector.broadcast %500 : f32 to vector<16x128xf32>
    %502 = arith.mulf %499, %501 : vector<16x128xf32>
    %503 = arith.addf %497, %502 : vector<16x128xf32>
    %c0_360 = arith.constant 0 : index
    %c0_361 = arith.constant 0 : index
    %c5_362 = arith.constant 5 : index
    %c0_363 = arith.constant 0 : index
    %504 = vector.load %arg6[%c0_360, %c0_361, %c5_362, %c0_363] : memref<2x7x24x128xf32, #tpu.memory_space<vmem>>, vector<1x1x16x128xf32>
    %505 = vector.shape_cast %504 : vector<1x1x16x128xf32> to vector<16x128xf32>
    %c35 = arith.constant 35 : index
    %506 = memref.load %arg4[%c35] : memref<98xf32, #tpu.memory_space<smem>>
    %507 = vector.broadcast %506 : f32 to vector<16x128xf32>
    %508 = arith.mulf %505, %507 : vector<16x128xf32>
    %509 = arith.addf %503, %508 : vector<16x128xf32>
    %c1_364 = arith.constant 1 : index
    %c0_365 = arith.constant 0 : index
    %c5_366 = arith.constant 5 : index
    %c0_367 = arith.constant 0 : index
    %510 = vector.load %arg6[%c1_364, %c0_365, %c5_366, %c0_367] : memref<2x7x24x128xf32, #tpu.memory_space<vmem>>, vector<1x1x16x128xf32>
    %511 = vector.shape_cast %510 : vector<1x1x16x128xf32> to vector<16x128xf32>
    %c84 = arith.constant 84 : index
    %512 = memref.load %arg4[%c84] : memref<98xf32, #tpu.memory_space<smem>>
    %513 = vector.broadcast %512 : f32 to vector<16x128xf32>
    %514 = arith.mulf %511, %513 : vector<16x128xf32>
    %515 = arith.addf %509, %514 : vector<16x128xf32>
    %c0_368 = arith.constant 0 : index
    %c1_369 = arith.constant 1 : index
    %c5_370 = arith.constant 5 : index
    %c0_371 = arith.constant 0 : index
    %516 = vector.load %arg6[%c0_368, %c1_369, %c5_370, %c0_371] : memref<2x7x24x128xf32, #tpu.memory_space<vmem>>, vector<1x1x16x128xf32>
    %517 = vector.shape_cast %516 : vector<1x1x16x128xf32> to vector<16x128xf32>
    %c36 = arith.constant 36 : index
    %518 = memref.load %arg4[%c36] : memref<98xf32, #tpu.memory_space<smem>>
    %519 = vector.broadcast %518 : f32 to vector<16x128xf32>
    %520 = arith.mulf %517, %519 : vector<16x128xf32>
    %521 = arith.addf %515, %520 : vector<16x128xf32>
    %c1_372 = arith.constant 1 : index
    %c1_373 = arith.constant 1 : index
    %c5_374 = arith.constant 5 : index
    %c0_375 = arith.constant 0 : index
    %522 = vector.load %arg6[%c1_372, %c1_373, %c5_374, %c0_375] : memref<2x7x24x128xf32, #tpu.memory_space<vmem>>, vector<1x1x16x128xf32>
    %523 = vector.shape_cast %522 : vector<1x1x16x128xf32> to vector<16x128xf32>
    %c85 = arith.constant 85 : index
    %524 = memref.load %arg4[%c85] : memref<98xf32, #tpu.memory_space<smem>>
    %525 = vector.broadcast %524 : f32 to vector<16x128xf32>
    %526 = arith.mulf %523, %525 : vector<16x128xf32>
    %527 = arith.addf %521, %526 : vector<16x128xf32>
    %c0_376 = arith.constant 0 : index
    %c2_377 = arith.constant 2 : index
    %c5_378 = arith.constant 5 : index
    %c0_379 = arith.constant 0 : index
    %528 = vector.load %arg6[%c0_376, %c2_377, %c5_378, %c0_379] : memref<2x7x24x128xf32, #tpu.memory_space<vmem>>, vector<1x1x16x128xf32>
    %529 = vector.shape_cast %528 : vector<1x1x16x128xf32> to vector<16x128xf32>
    %c37 = arith.constant 37 : index
    %530 = memref.load %arg4[%c37] : memref<98xf32, #tpu.memory_space<smem>>
    %531 = vector.broadcast %530 : f32 to vector<16x128xf32>
    %532 = arith.mulf %529, %531 : vector<16x128xf32>
    %533 = arith.addf %527, %532 : vector<16x128xf32>
    %c1_380 = arith.constant 1 : index
    %c2_381 = arith.constant 2 : index
    %c5_382 = arith.constant 5 : index
    %c0_383 = arith.constant 0 : index
    %534 = vector.load %arg6[%c1_380, %c2_381, %c5_382, %c0_383] : memref<2x7x24x128xf32, #tpu.memory_space<vmem>>, vector<1x1x16x128xf32>
    %535 = vector.shape_cast %534 : vector<1x1x16x128xf32> to vector<16x128xf32>
    %c86 = arith.constant 86 : index
    %536 = memref.load %arg4[%c86] : memref<98xf32, #tpu.memory_space<smem>>
    %537 = vector.broadcast %536 : f32 to vector<16x128xf32>
    %538 = arith.mulf %535, %537 : vector<16x128xf32>
    %539 = arith.addf %533, %538 : vector<16x128xf32>
    %c0_384 = arith.constant 0 : index
    %c3_385 = arith.constant 3 : index
    %c5_386 = arith.constant 5 : index
    %c0_387 = arith.constant 0 : index
    %540 = vector.load %arg6[%c0_384, %c3_385, %c5_386, %c0_387] : memref<2x7x24x128xf32, #tpu.memory_space<vmem>>, vector<1x1x16x128xf32>
    %541 = vector.shape_cast %540 : vector<1x1x16x128xf32> to vector<16x128xf32>
    %c38 = arith.constant 38 : index
    %542 = memref.load %arg4[%c38] : memref<98xf32, #tpu.memory_space<smem>>
    %543 = vector.broadcast %542 : f32 to vector<16x128xf32>
    %544 = arith.mulf %541, %543 : vector<16x128xf32>
    %545 = arith.addf %539, %544 : vector<16x128xf32>
    %c1_388 = arith.constant 1 : index
    %c3_389 = arith.constant 3 : index
    %c5_390 = arith.constant 5 : index
    %c0_391 = arith.constant 0 : index
    %546 = vector.load %arg6[%c1_388, %c3_389, %c5_390, %c0_391] : memref<2x7x24x128xf32, #tpu.memory_space<vmem>>, vector<1x1x16x128xf32>
    %547 = vector.shape_cast %546 : vector<1x1x16x128xf32> to vector<16x128xf32>
    %c87 = arith.constant 87 : index
    %548 = memref.load %arg4[%c87] : memref<98xf32, #tpu.memory_space<smem>>
    %549 = vector.broadcast %548 : f32 to vector<16x128xf32>
    %550 = arith.mulf %547, %549 : vector<16x128xf32>
    %551 = arith.addf %545, %550 : vector<16x128xf32>
    %c0_392 = arith.constant 0 : index
    %c4_393 = arith.constant 4 : index
    %c5_394 = arith.constant 5 : index
    %c0_395 = arith.constant 0 : index
    %552 = vector.load %arg6[%c0_392, %c4_393, %c5_394, %c0_395] : memref<2x7x24x128xf32, #tpu.memory_space<vmem>>, vector<1x1x16x128xf32>
    %553 = vector.shape_cast %552 : vector<1x1x16x128xf32> to vector<16x128xf32>
    %c39 = arith.constant 39 : index
    %554 = memref.load %arg4[%c39] : memref<98xf32, #tpu.memory_space<smem>>
    %555 = vector.broadcast %554 : f32 to vector<16x128xf32>
    %556 = arith.mulf %553, %555 : vector<16x128xf32>
    %557 = arith.addf %551, %556 : vector<16x128xf32>
    %c1_396 = arith.constant 1 : index
    %c4_397 = arith.constant 4 : index
    %c5_398 = arith.constant 5 : index
    %c0_399 = arith.constant 0 : index
    %558 = vector.load %arg6[%c1_396, %c4_397, %c5_398, %c0_399] : memref<2x7x24x128xf32, #tpu.memory_space<vmem>>, vector<1x1x16x128xf32>
    %559 = vector.shape_cast %558 : vector<1x1x16x128xf32> to vector<16x128xf32>
    %c88 = arith.constant 88 : index
    %560 = memref.load %arg4[%c88] : memref<98xf32, #tpu.memory_space<smem>>
    %561 = vector.broadcast %560 : f32 to vector<16x128xf32>
    %562 = arith.mulf %559, %561 : vector<16x128xf32>
    %563 = arith.addf %557, %562 : vector<16x128xf32>
    %c0_400 = arith.constant 0 : index
    %c5_401 = arith.constant 5 : index
    %c5_402 = arith.constant 5 : index
    %c0_403 = arith.constant 0 : index
    %564 = vector.load %arg6[%c0_400, %c5_401, %c5_402, %c0_403] : memref<2x7x24x128xf32, #tpu.memory_space<vmem>>, vector<1x1x16x128xf32>
    %565 = vector.shape_cast %564 : vector<1x1x16x128xf32> to vector<16x128xf32>
    %c40 = arith.constant 40 : index
    %566 = memref.load %arg4[%c40] : memref<98xf32, #tpu.memory_space<smem>>
    %567 = vector.broadcast %566 : f32 to vector<16x128xf32>
    %568 = arith.mulf %565, %567 : vector<16x128xf32>
    %569 = arith.addf %563, %568 : vector<16x128xf32>
    %c1_404 = arith.constant 1 : index
    %c5_405 = arith.constant 5 : index
    %c5_406 = arith.constant 5 : index
    %c0_407 = arith.constant 0 : index
    %570 = vector.load %arg6[%c1_404, %c5_405, %c5_406, %c0_407] : memref<2x7x24x128xf32, #tpu.memory_space<vmem>>, vector<1x1x16x128xf32>
    %571 = vector.shape_cast %570 : vector<1x1x16x128xf32> to vector<16x128xf32>
    %c89 = arith.constant 89 : index
    %572 = memref.load %arg4[%c89] : memref<98xf32, #tpu.memory_space<smem>>
    %573 = vector.broadcast %572 : f32 to vector<16x128xf32>
    %574 = arith.mulf %571, %573 : vector<16x128xf32>
    %575 = arith.addf %569, %574 : vector<16x128xf32>
    %c0_408 = arith.constant 0 : index
    %c6_409 = arith.constant 6 : index
    %c5_410 = arith.constant 5 : index
    %c0_411 = arith.constant 0 : index
    %576 = vector.load %arg6[%c0_408, %c6_409, %c5_410, %c0_411] : memref<2x7x24x128xf32, #tpu.memory_space<vmem>>, vector<1x1x16x128xf32>
    %577 = vector.shape_cast %576 : vector<1x1x16x128xf32> to vector<16x128xf32>
    %c41 = arith.constant 41 : index
    %578 = memref.load %arg4[%c41] : memref<98xf32, #tpu.memory_space<smem>>
    %579 = vector.broadcast %578 : f32 to vector<16x128xf32>
    %580 = arith.mulf %577, %579 : vector<16x128xf32>
    %581 = arith.addf %575, %580 : vector<16x128xf32>
    %c1_412 = arith.constant 1 : index
    %c6_413 = arith.constant 6 : index
    %c5_414 = arith.constant 5 : index
    %c0_415 = arith.constant 0 : index
    %582 = vector.load %arg6[%c1_412, %c6_413, %c5_414, %c0_415] : memref<2x7x24x128xf32, #tpu.memory_space<vmem>>, vector<1x1x16x128xf32>
    %583 = vector.shape_cast %582 : vector<1x1x16x128xf32> to vector<16x128xf32>
    %c90 = arith.constant 90 : index
    %584 = memref.load %arg4[%c90] : memref<98xf32, #tpu.memory_space<smem>>
    %585 = vector.broadcast %584 : f32 to vector<16x128xf32>
    %586 = arith.mulf %583, %585 : vector<16x128xf32>
    %587 = arith.addf %581, %586 : vector<16x128xf32>
    %c0_416 = arith.constant 0 : index
    %c0_417 = arith.constant 0 : index
    %c6_418 = arith.constant 6 : index
    %c0_419 = arith.constant 0 : index
    %588 = vector.load %arg6[%c0_416, %c0_417, %c6_418, %c0_419] : memref<2x7x24x128xf32, #tpu.memory_space<vmem>>, vector<1x1x16x128xf32>
    %589 = vector.shape_cast %588 : vector<1x1x16x128xf32> to vector<16x128xf32>
    %c42 = arith.constant 42 : index
    %590 = memref.load %arg4[%c42] : memref<98xf32, #tpu.memory_space<smem>>
    %591 = vector.broadcast %590 : f32 to vector<16x128xf32>
    %592 = arith.mulf %589, %591 : vector<16x128xf32>
    %593 = arith.addf %587, %592 : vector<16x128xf32>
    %c1_420 = arith.constant 1 : index
    %c0_421 = arith.constant 0 : index
    %c6_422 = arith.constant 6 : index
    %c0_423 = arith.constant 0 : index
    %594 = vector.load %arg6[%c1_420, %c0_421, %c6_422, %c0_423] : memref<2x7x24x128xf32, #tpu.memory_space<vmem>>, vector<1x1x16x128xf32>
    %595 = vector.shape_cast %594 : vector<1x1x16x128xf32> to vector<16x128xf32>
    %c91 = arith.constant 91 : index
    %596 = memref.load %arg4[%c91] : memref<98xf32, #tpu.memory_space<smem>>
    %597 = vector.broadcast %596 : f32 to vector<16x128xf32>
    %598 = arith.mulf %595, %597 : vector<16x128xf32>
    %599 = arith.addf %593, %598 : vector<16x128xf32>
    %c0_424 = arith.constant 0 : index
    %c1_425 = arith.constant 1 : index
    %c6_426 = arith.constant 6 : index
    %c0_427 = arith.constant 0 : index
    %600 = vector.load %arg6[%c0_424, %c1_425, %c6_426, %c0_427] : memref<2x7x24x128xf32, #tpu.memory_space<vmem>>, vector<1x1x16x128xf32>
    %601 = vector.shape_cast %600 : vector<1x1x16x128xf32> to vector<16x128xf32>
    %c43 = arith.constant 43 : index
    %602 = memref.load %arg4[%c43] : memref<98xf32, #tpu.memory_space<smem>>
    %603 = vector.broadcast %602 : f32 to vector<16x128xf32>
    %604 = arith.mulf %601, %603 : vector<16x128xf32>
    %605 = arith.addf %599, %604 : vector<16x128xf32>
    %c1_428 = arith.constant 1 : index
    %c1_429 = arith.constant 1 : index
    %c6_430 = arith.constant 6 : index
    %c0_431 = arith.constant 0 : index
    %606 = vector.load %arg6[%c1_428, %c1_429, %c6_430, %c0_431] : memref<2x7x24x128xf32, #tpu.memory_space<vmem>>, vector<1x1x16x128xf32>
    %607 = vector.shape_cast %606 : vector<1x1x16x128xf32> to vector<16x128xf32>
    %c92 = arith.constant 92 : index
    %608 = memref.load %arg4[%c92] : memref<98xf32, #tpu.memory_space<smem>>
    %609 = vector.broadcast %608 : f32 to vector<16x128xf32>
    %610 = arith.mulf %607, %609 : vector<16x128xf32>
    %611 = arith.addf %605, %610 : vector<16x128xf32>
    %c0_432 = arith.constant 0 : index
    %c2_433 = arith.constant 2 : index
    %c6_434 = arith.constant 6 : index
    %c0_435 = arith.constant 0 : index
    %612 = vector.load %arg6[%c0_432, %c2_433, %c6_434, %c0_435] : memref<2x7x24x128xf32, #tpu.memory_space<vmem>>, vector<1x1x16x128xf32>
    %613 = vector.shape_cast %612 : vector<1x1x16x128xf32> to vector<16x128xf32>
    %c44 = arith.constant 44 : index
    %614 = memref.load %arg4[%c44] : memref<98xf32, #tpu.memory_space<smem>>
    %615 = vector.broadcast %614 : f32 to vector<16x128xf32>
    %616 = arith.mulf %613, %615 : vector<16x128xf32>
    %617 = arith.addf %611, %616 : vector<16x128xf32>
    %c1_436 = arith.constant 1 : index
    %c2_437 = arith.constant 2 : index
    %c6_438 = arith.constant 6 : index
    %c0_439 = arith.constant 0 : index
    %618 = vector.load %arg6[%c1_436, %c2_437, %c6_438, %c0_439] : memref<2x7x24x128xf32, #tpu.memory_space<vmem>>, vector<1x1x16x128xf32>
    %619 = vector.shape_cast %618 : vector<1x1x16x128xf32> to vector<16x128xf32>
    %c93 = arith.constant 93 : index
    %620 = memref.load %arg4[%c93] : memref<98xf32, #tpu.memory_space<smem>>
    %621 = vector.broadcast %620 : f32 to vector<16x128xf32>
    %622 = arith.mulf %619, %621 : vector<16x128xf32>
    %623 = arith.addf %617, %622 : vector<16x128xf32>
    %c0_440 = arith.constant 0 : index
    %c3_441 = arith.constant 3 : index
    %c6_442 = arith.constant 6 : index
    %c0_443 = arith.constant 0 : index
    %624 = vector.load %arg6[%c0_440, %c3_441, %c6_442, %c0_443] : memref<2x7x24x128xf32, #tpu.memory_space<vmem>>, vector<1x1x16x128xf32>
    %625 = vector.shape_cast %624 : vector<1x1x16x128xf32> to vector<16x128xf32>
    %c45 = arith.constant 45 : index
    %626 = memref.load %arg4[%c45] : memref<98xf32, #tpu.memory_space<smem>>
    %627 = vector.broadcast %626 : f32 to vector<16x128xf32>
    %628 = arith.mulf %625, %627 : vector<16x128xf32>
    %629 = arith.addf %623, %628 : vector<16x128xf32>
    %c1_444 = arith.constant 1 : index
    %c3_445 = arith.constant 3 : index
    %c6_446 = arith.constant 6 : index
    %c0_447 = arith.constant 0 : index
    %630 = vector.load %arg6[%c1_444, %c3_445, %c6_446, %c0_447] : memref<2x7x24x128xf32, #tpu.memory_space<vmem>>, vector<1x1x16x128xf32>
    %631 = vector.shape_cast %630 : vector<1x1x16x128xf32> to vector<16x128xf32>
    %c94 = arith.constant 94 : index
    %632 = memref.load %arg4[%c94] : memref<98xf32, #tpu.memory_space<smem>>
    %633 = vector.broadcast %632 : f32 to vector<16x128xf32>
    %634 = arith.mulf %631, %633 : vector<16x128xf32>
    %635 = arith.addf %629, %634 : vector<16x128xf32>
    %c0_448 = arith.constant 0 : index
    %c4_449 = arith.constant 4 : index
    %c6_450 = arith.constant 6 : index
    %c0_451 = arith.constant 0 : index
    %636 = vector.load %arg6[%c0_448, %c4_449, %c6_450, %c0_451] : memref<2x7x24x128xf32, #tpu.memory_space<vmem>>, vector<1x1x16x128xf32>
    %637 = vector.shape_cast %636 : vector<1x1x16x128xf32> to vector<16x128xf32>
    %c46 = arith.constant 46 : index
    %638 = memref.load %arg4[%c46] : memref<98xf32, #tpu.memory_space<smem>>
    %639 = vector.broadcast %638 : f32 to vector<16x128xf32>
    %640 = arith.mulf %637, %639 : vector<16x128xf32>
    %641 = arith.addf %635, %640 : vector<16x128xf32>
    %c1_452 = arith.constant 1 : index
    %c4_453 = arith.constant 4 : index
    %c6_454 = arith.constant 6 : index
    %c0_455 = arith.constant 0 : index
    %642 = vector.load %arg6[%c1_452, %c4_453, %c6_454, %c0_455] : memref<2x7x24x128xf32, #tpu.memory_space<vmem>>, vector<1x1x16x128xf32>
    %643 = vector.shape_cast %642 : vector<1x1x16x128xf32> to vector<16x128xf32>
    %c95 = arith.constant 95 : index
    %644 = memref.load %arg4[%c95] : memref<98xf32, #tpu.memory_space<smem>>
    %645 = vector.broadcast %644 : f32 to vector<16x128xf32>
    %646 = arith.mulf %643, %645 : vector<16x128xf32>
    %647 = arith.addf %641, %646 : vector<16x128xf32>
    %c0_456 = arith.constant 0 : index
    %c5_457 = arith.constant 5 : index
    %c6_458 = arith.constant 6 : index
    %c0_459 = arith.constant 0 : index
    %648 = vector.load %arg6[%c0_456, %c5_457, %c6_458, %c0_459] : memref<2x7x24x128xf32, #tpu.memory_space<vmem>>, vector<1x1x16x128xf32>
    %649 = vector.shape_cast %648 : vector<1x1x16x128xf32> to vector<16x128xf32>
    %c47 = arith.constant 47 : index
    %650 = memref.load %arg4[%c47] : memref<98xf32, #tpu.memory_space<smem>>
    %651 = vector.broadcast %650 : f32 to vector<16x128xf32>
    %652 = arith.mulf %649, %651 : vector<16x128xf32>
    %653 = arith.addf %647, %652 : vector<16x128xf32>
    %c1_460 = arith.constant 1 : index
    %c5_461 = arith.constant 5 : index
    %c6_462 = arith.constant 6 : index
    %c0_463 = arith.constant 0 : index
    %654 = vector.load %arg6[%c1_460, %c5_461, %c6_462, %c0_463] : memref<2x7x24x128xf32, #tpu.memory_space<vmem>>, vector<1x1x16x128xf32>
    %655 = vector.shape_cast %654 : vector<1x1x16x128xf32> to vector<16x128xf32>
    %c96 = arith.constant 96 : index
    %656 = memref.load %arg4[%c96] : memref<98xf32, #tpu.memory_space<smem>>
    %657 = vector.broadcast %656 : f32 to vector<16x128xf32>
    %658 = arith.mulf %655, %657 : vector<16x128xf32>
    %659 = arith.addf %653, %658 : vector<16x128xf32>
    %c0_464 = arith.constant 0 : index
    %c6_465 = arith.constant 6 : index
    %c6_466 = arith.constant 6 : index
    %c0_467 = arith.constant 0 : index
    %660 = vector.load %arg6[%c0_464, %c6_465, %c6_466, %c0_467] : memref<2x7x24x128xf32, #tpu.memory_space<vmem>>, vector<1x1x16x128xf32>
    %661 = vector.shape_cast %660 : vector<1x1x16x128xf32> to vector<16x128xf32>
    %c48 = arith.constant 48 : index
    %662 = memref.load %arg4[%c48] : memref<98xf32, #tpu.memory_space<smem>>
    %663 = vector.broadcast %662 : f32 to vector<16x128xf32>
    %664 = arith.mulf %661, %663 : vector<16x128xf32>
    %665 = arith.addf %659, %664 : vector<16x128xf32>
    %c1_468 = arith.constant 1 : index
    %c6_469 = arith.constant 6 : index
    %c6_470 = arith.constant 6 : index
    %c0_471 = arith.constant 0 : index
    %666 = vector.load %arg6[%c1_468, %c6_469, %c6_470, %c0_471] : memref<2x7x24x128xf32, #tpu.memory_space<vmem>>, vector<1x1x16x128xf32>
    %667 = vector.shape_cast %666 : vector<1x1x16x128xf32> to vector<16x128xf32>
    %c97 = arith.constant 97 : index
    %668 = memref.load %arg4[%c97] : memref<98xf32, #tpu.memory_space<smem>>
    %669 = vector.broadcast %668 : f32 to vector<16x128xf32>
    %670 = arith.mulf %667, %669 : vector<16x128xf32>
    %671 = arith.addf %665, %670 : vector<16x128xf32>
    %672 = vector.extract_strided_slice %671 {offsets = [0, 0], sizes = [16, 16], strides = [1, 1]} : vector<16x128xf32> to vector<16x16xf32>
    %673 = arith.negf %672 : vector<16x16xf32>
    %674 = math.exp %673 : vector<16x16xf32>
    %cst_472 = arith.constant 1.000000e+00 : f32
    %675 = vector.broadcast %cst_472 : f32 to vector<16x16xf32>
    %676 = arith.addf %675, %674 : vector<16x16xf32>
    %677 = arith.divf %675, %676 : vector<16x16xf32>
    %678 = arith.mulf %1, %1 : vector<16x16x32xf32>
    %679 = vector.broadcast %24 : vector<1x1x32xf32> to vector<16x16x32xf32>
    %680 = arith.mulf %678, %679 : vector<16x16x32xf32>
    %681 = vector.shape_cast %677 : vector<16x16xf32> to vector<16x16x1xf32>
    %682 = vector.broadcast %681 : vector<16x16x1xf32> to vector<16x16x32xf32>
    %683 = arith.mulf %680, %682 : vector<16x16x32xf32>
    %c0_473 = arith.constant 0 : index
    %c0_474 = arith.constant 0 : index
    %c0_475 = arith.constant 0 : index
    %c0_476 = arith.constant 0 : index
    %684 = vector.load %arg5[%c0_473, %c0_474, %c0_475, %c0_476] : memref<1x16x16x32xf32, #tpu.memory_space<vmem>>, vector<1x16x16x32xf32>
    %685 = vector.shape_cast %684 : vector<1x16x16x32xf32> to vector<16x16x32xf32>
    %686 = vector.shape_cast %683 : vector<16x16x32xf32> to vector<1x16x16x32xf32>
    tpu.vector_store %arg5[%c0_473, %c0_474, %c0_475, %c0_476], %686 {strides = array<i32>} : memref<1x16x16x32xf32, #tpu.memory_space<vmem>>, vector<1x16x16x32xf32>,
    return
  }
  func.func @transform_0(%arg0: i32) -> (i32, i32, i32, i32) {
    %c0_i32 = arith.constant 0 : i32
    %c0_i32_0 = arith.constant 0 : i32
    %c0_i32_1 = arith.constant 0 : i32
    %c0_i32_2 = arith.constant 0 : i32
    return %arg0, %c0_i32, %c0_i32_0, %c0_i32_1 : i32, i32, i32, i32
  }
  func.func @transform_1(%arg0: i32) -> (i32, i32) {
    %c0_i32 = arith.constant 0 : i32
    %c0_i32_0 = arith.constant 0 : i32
    %c0_i32_1 = arith.constant 0 : i32
    return %c0_i32, %c0_i32_0 : i32, i32
  }
  func.func @transform_2(%arg0: i32) -> (i32, i32) {
    %c0_i32 = arith.constant 0 : i32
    %c0_i32_0 = arith.constant 0 : i32
    %c0_i32_1 = arith.constant 0 : i32
    return %c0_i32, %c0_i32_0 : i32, i32
  }
  func.func @transform_3(%arg0: i32) -> i32 {
    %c0_i32 = arith.constant 0 : i32
    %c0_i32_0 = arith.constant 0 : i32
    return %c0_i32 : i32
  }
  func.func @transform_4(%arg0: i32) -> (i32, i32, i32, i32) {
    %c0_i32 = arith.constant 0 : i32
    %c0_i32_0 = arith.constant 0 : i32
    %c0_i32_1 = arith.constant 0 : i32
    %c0_i32_2 = arith.constant 0 : i32
    return %arg0, %c0_i32, %c0_i32_0, %c0_i32_1 : i32, i32, i32, i32
  }
}

</mosaic_0001>

<bundles_post_ra>
// kernel: cbam_nchw.1
= control target key start
LH: loop header
LB: loop body
LE: loop exit
PB: predicated region body
PF: predicated region fallthrough
CT: control target
= control target key end

     0   :  { %s8009_s0 = inlined_call_operand.hbm [shape: f32[2,16,16,32], index: 0, kind: input, shape index: {}]   ;;  %s8010_s1 = inlined_call_operand.vmem [shape: f32[32,4], index: 1, kind: input, shape index: {}]   ;;  %s8011_s2 = inlined_call_operand.vmem [shape: f32[4,32], index: 2, kind: input, shape index: {}]   ;;  %s8012_s3 = inlined_call_operand.vmem [shape: f32[98], index: 3, kind: input, shape index: {}]   ;;  %s8013_s4 = inlined_call_operand.hbm [shape: f32[2,16,16,32], index: 4, kind: output, shape index: {}]  }
   0x1   :  { %8105 = sst [smem:[#allocation93_spill]] %s8009_s0 }
   0x2   :  { %8106 = sst [smem:[#allocation94_spill]] %s8010_s1 }
   0x3   :  { %8107 = sst [smem:[#allocation95_spill]] %s8011_s2 }
   0x4   :  { %8108 = sst [smem:[#allocation96_spill]] %s8012_s3 }
   0x5   :  { %8109 = sst [smem:[#allocation97_spill]] %s8013_s4 }
   0x6   :  { %9 = vsyncpa [#allocation4], 0 }
   0x7   :  { %11 = vsyncpa [#allocation4 + $0x1], 0 }
   0x8   :  { %12 = vsyncpa [#allocation6], 0 }
   0x9   :  { %13 = vsyncpa [#allocation5], 0 }
   0xa   :  { %15 = vsyncpa [#allocation5 + $0x1], 0  ;;  %s4867_s15 = smov 0   ;;  %s4869_s16 = smov 0  }
   0xb   :  { %s4871_s17 = smov 0   ;;  %s4873_s18 = smov 0  }
   0xc LB: > { %8110 = sst [smem:[#allocation12_spill]] %s4819_s15  ;;  %s4888_s19 = sadd.s32 4294967295, %s4831_s18   ;;  %s4831_s18 = sphi %s4873_s18, %s8408_s18   ;;  %s4827_s17 = sphi %s4871_s17, %s8411_s17   ;;  %s4823_s16 = sphi %s4869_s16, %s8410_s16   ;;  %s4819_s15 = sphi %s4867_s15, %s8409_s15  }
   0xd   : > { %8111 = sst [smem:[#allocation13_spill]] %s4823_s16  ;;  %s4469_s20 = sadd.s32 4294967294, %s4831_s18  }
   0xe   : > { %8112 = sst [smem:[#allocation14_spill]] %s4827_s17  ;;  %s4892_s21 = sadd.s32 1, %s4831_s18  }
   0xf   : > { %8113 = sst [smem:[#allocation15_spill]] %s4831_s18  ;;  %s28_s22 = sadd.s32 1, %s4827_s17 }
  0x10   : > { %8114 = sst [smem:[#allocation16_spill]] %s4888_s19  ;;  %s25_s23 = ssub.s32 %s4831_s18, %s4892_s21 }
  0x11   : > { %8115 = sst [smem:[#allocation17_spill]] %s4892_s21  ;;  %p35_p0 = scmp.ne.s32.totalorder %s4827_s17, %s4823_s16 }
  0x12   : > { %p26_p1 = scmp.eq.s32.totalorder %s25_s23, 0  ;;  %p36_p2 = scmp.eq.s32.totalorder %s4831_s18, 0 }
  0x13   : > { %p41_p3 = scmp.ne.s32.totalorder %s4823_s16, %s4819_s15  ;;  %p8015_p4 = scmp.eq.s32.totalorder %s4888_s19, 0 }
  0x14   : > { %s4904_s24 = scalar_select %p26_p1, %s4827_s17, %s28_s22  }
  0x15   : > { %p4906_p5 = por %p36_p2, %p35_p0  ;;  %p4912_p6 = por %p8015_p4, %p41_p3 }
  0x16   : > { %8116 = sst [smem:[#allocation18_spill]] %s4904_s24  ;;  %p128_p7 = scmp.eq.s32.totalorder %s4888_s19, 1 }
  0x17   : > { %s8118_s26 = scalar_select %p4912_p6, 1, 0 }
  0x18   : > { %p134_p8 = scmp.eq.s32.totalorder %s4469_s20, 1  ;;  %p4470_p9 = scmp.ge.s32.totalorder %s4831_s18, 1 }
  0x19   : > { %p141_p10 = scmp.lt.s32.totalorder %s4831_s18, 3  ;;  %p4919_p11 = por %p128_p7, %p35_p0 }
  0x1a   : > { %p4923_p12 = por %p134_p8, %p41_p3  ;;  %s8124_s3 = sld [smem:[#allocation96_spill]] }
  0x1b   : > { %s8119_s27 = scalar_select %p4919_p11, 1, 0 }
  0x1c   : > { %s8121_s28 = scalar_select %p4923_p12, 1, 0 }
  0x1d   : > { %8120 = sst [smem:[#allocation19_spill]] %s8119_s27  ;;  %p4927_p13 = pnand %p4470_p9, %p141_p10 }
  0x1e   : > { %8122 = sst [smem:[#allocation20_spill]] %s8121_s28  ;;  %p4634_p2 = scmp.lt.s32.totalorder %s4831_s18, 2 }
  0x1f   : > { %s8123_s29 = scalar_select %p4927_p13, 1, 0 }
  0x20   : > { %s160_s6 = sshll.u32 %s8124_s3, 4  ;;  %p4621_p1 = pneg %p4927_p13  ;;  %s161_s6 = int_to_ptr.vmem [resolvable:$true] %s160_s6 }
  0x21   : > { %s171_s8 = sand.u32 1, %s4827_s17   ;;  %p4947_p3 = pnand %p4634_p2, %p4906_p5 }
  0x22   : > { %p4940_p7 = pnand %p4621_p1, %p8015_p4  ;;  %s4473_s10 = sshll.u32 %s171_s8, 8 }
  0x23   : > { %s4720_s11 = scalar_lea.vmem %s161_s6, 16  ;;  %p4728_p12 = scmp.lt.s32.totalorder %s161_s6, %s161_s6 }
  0x24   : > { %p4721_p8 = scmp.ne.s32.totalorder %s161_s6, %s4720_s11  ;;  %p4722_p9 = pneg %p4940_p7 }
  0x25   : > { %p4729_p11 = scmp.lt.s32.totalorder %s4720_s11, %s4720_s11 }
  0x26   : > { %p4723_p10 = pnand %p4722_p9, %p4721_p8 }
  0x27   : > { %p4730_p1 = por %p4729_p11, %p4728_p12 }
  0x28   : > { %p4724_p0 = pneg %p4723_p10 }
  0x2a   : > { %p4731_p4 = pnand %p4730_p1, %p4724_p0 }
  0x2c   : > { %4734 = shalt.err (!%p4731_p4)
}
  0x2d   : > { %s4833_s12 = smov [#allocation7]   ;;  %s4588_s13 = sshll.u32 %s4831_s18, 12 }
  0x2e   : > { %4624 = dma.vmem_to_smem (!%p4940_p7), %s161_s6, 16, %s4833_s12, [#allocation6]  }
  0x2f   : > { %s175_s14 = scalar_lea.vmem [#allocation3], %s4473_s10  ;;  %s8127_s0 = sld [smem:[#allocation93_spill]] }
  0x30   : > { %s182_s20 = sshll.u32 %s175_s14, 4  ;;  %s4963_s30 = scalar_lea.sflag [#allocation4], %s171_s8  ;;  %s4961_s20 = int_to_ptr.vmem [resolvable:$true] %s182_s20 }
  0x31   : > { %p4737_p5 = pneg %p4947_p3 }
  0x35   : > { %s4959_s25 = scalar_lea.hbm %s8127_s0, %s4588_s13  ;;  %s4740_s10 = scalar_lea.hbm %s8127_s0, 8192 }
  0x36   : > { %s4735_s5 = scalar_lea.hbm %s4959_s25, 4096  ;;  %p4741_p0 = scmp.lt.s32.totalorder %s4959_s25, %s8127_s0 }
  0x37   : > { %p4736_p4 = scmp.ne.s32.totalorder %s4959_s25, %s4735_s5  ;;  %p4742_p2 = scmp.lt.s32.totalorder %s4740_s10, %s4735_s5 }
  0x39   : > { %p4738_p11 = pnand %p4737_p5, %p4736_p4  ;;  %p4743_p7 = por %p4742_p2, %p4741_p0 }
  0x3b   : > { %p4739_p12 = pneg %p4738_p11 }
  0x3d   : > { %p4744_p8 = pnand %p4743_p7, %p4739_p12 }
  0x3f   : > { %4747 = shalt.err (!%p4744_p8)
}
  0x40   : > { %s4748_s8 = scalar_lea.vmem %s4961_s20, 4096  ;;  %s4834_s13 = smov [#allocation3]  }
  0x41   : > { %p4749_p9 = scmp.ne.s32.totalorder %s4961_s20, %s4748_s8  ;;  %s4753_s14 = sshll.u32 %s4834_s13, 4  ;;  %s4754_s14 = int_to_ptr.vmem [resolvable:$false] %s4753_s14 }
  0x42   : > { %s4755_s22 = scalar_lea.vmem %s4754_s14, 8192  ;;  %p4756_p4 = scmp.lt.s32.totalorder %s4961_s20, %s4754_s14 }
  0x43   : > { %p4751_p10 = pnand %p4749_p9, %p4737_p5  ;;  %p4757_p11 = scmp.lt.s32.totalorder %s4755_s22, %s4748_s8 }
  0x45   : > { %p4752_p1 = pneg %p4751_p10  ;;  %p4758_p6 = por %p4757_p11, %p4756_p4 }
  0x47   : > { %p4759_p13 = pnand %p4758_p6, %p4752_p1 }
  0x49   : > { %4762 = shalt.err (!%p4759_p13)
}
  0x4a   : > { %s4835_s23 = smov 128   ;;  %s4836_s5 = smov 8  }
  0x4b   : > { %4628 = dma.hbm_to_vmem [thread:$0]  (!%p4947_p3), %s4959_s25, 4096, %s4961_s20, %s4963_s30, %s4835_s23, %s4835_s23, %s4836_s5  }
  0x4c   : > { %p8128_p5 = scmp.ne.s32.totalorder %s8123_s29, 0 }
  0x4e   : > { %194 = sbr.rel (%p8128_p5) target bundleno = 1404 (0x57c), region = 36 }
  0x53   : > { %s4987_s6 = sand.u32 1, %s4823_s16   ;;  %p8131_p6 = scmp.ne.s32.totalorder %s8118_s26, 0 }
  0x54   : > { %8129 = sst [smem:[#allocation21_spill]] %s4987_s6  ;;  %s8051_s7 = sshll.u32 %s4987_s6, 8 }
  0x55   : > { %s197_s10 = scalar_lea.sflag [#allocation4], %s4987_s6  ;;  %s4993_s11 = scalar_lea.vmem [#allocation3], %s8051_s7 }
  0x56   : > { %8130 = sst [smem:[#allocation22_spill]] %s4993_s11 }
  0x57   : > { %4806 = dma.done.wait (%p8131_p6), %s197_s10, 4096  }
  0x58   : > { %4808 = vsyncadd (%p8131_p6), %s197_s10, 4294963200  ;;  %p8132_p13 = scmp.eq.s32.totalorder %s4888_s19, 0 }
  0x5a   : > { %4810 = dma.done.wait (%p8132_p13), [#allocation6], 16   ;;  %p8133_p3 = pmov %p8132_p13 }
  0x5c   : > { %4812 = vsyncadd (%p8133_p3), [#allocation6], 4294967280 }
  0x5d   : > { %209 = sfence }
  0x5e   : > { %s8134_s1 = sld [smem:[#allocation94_spill]]  ;;  %vm8041_vm0 = vcmask 261120   ;;  %v4837_v1 = vmov 0.0   ;;  %vm4838_vm1 = vmmov 0   ;;  %v5054_v3 = vld [vmem:[%s4993_s11] sm:$0xff]  ;;  %v5057_v4 = vld [vmem:[%s4993_s11 + $0x8] sm:$0xff] }
  0x5f   : > { %4597 = vmatprep.subr.mxu0 %v4837_v1  ;;  %835 = vst [vmem:[#allocation2] sm:$0xff] %v4837_v1  ;;  %836 = vst [vmem:[#allocation2 + $0x8] sm:$0xff] %v4837_v1  ;;  %4605 = vmatprep.mubr.msk.f32.mxu0 %vm4838_vm1, %v4837_v1  ;;  %v5060_v5 = vld [vmem:[%s4993_s11 + $0x10] sm:$0xff]  ;;  %v5063_v6 = vld [vmem:[%s4993_s11 + $0x18] sm:$0xff]  ;;  %v263_v7 = vsel %vm8041_vm0, %v5054_v3, 0.0  ;;  %v264_v8 = vsel %vm8041_vm0, %v5057_v4, 0.0 }
  0x60   : > { %837 = vst [vmem:[#allocation2 + $0x10] sm:$0xff] %v4837_v1  ;;  %838 = vst [vmem:[#allocation2 + $0x18] sm:$0xff] %v4837_v1  ;;  %4608 = vmatprep.subr.mxu1 %v4837_v1  ;;  %v5075_v10 = vld [vmem:[%s4993_s11 + $0x20] sm:$0xff]  ;;  %v265_v11 = vadd.f32 %v264_v8, %v263_v7  ;;  %v266_v12 = vsel %vm8041_vm0, %v5060_v5, 0.0  ;;  %4610 = vmatprep.mubr.msk.f32.mxu1 %vm4838_vm1, %v4837_v1  ;;  %v268_v13 = vsel %vm8041_vm0, %v5063_v6, 0.0  ;;  %v5087_v15 = vld [vmem:[%s4993_s11 + $0x28] sm:$0xff] }
  0x61   : > { %839 = vst [vmem:[#allocation2 + $0x20] sm:$0xff] %v4837_v1  ;;  %840 = vst [vmem:[#allocation2 + $0x28] sm:$0xff] %v4837_v1  ;;  %v270_v17 = vsel %vm8041_vm0, %v5075_v10, 0.0  ;;  %v5093_v18 = vld [vmem:[%s4993_s11 + $0x30] sm:$0xff]  ;;  %v272_v20 = vsel %vm8041_vm0, %v5087_v15, 0.0  ;;  %v5098_v21 = vld [vmem:[%s4993_s11 + $0x38] sm:$0xff] }
  0x62   : > { %841 = vst [vmem:[#allocation2 + $0x30] sm:$0xff] %v4837_v1  ;;  %842 = vst [vmem:[#allocation2 + $0x38] sm:$0xff] %v4837_v1  ;;  %v267_v16 = vadd.f32 %v266_v12, %v265_v11  ;;  %v5101_v23 = vld [vmem:[%s4993_s11 + $0x40] sm:$0xff]  ;;  %v274_v24 = vsel %vm8041_vm0, %v5093_v18, 0.0  ;;  %v276_v26 = vsel %vm8041_vm0, %v5098_v21, 0.0  ;;  %v5108_v27 = vld [vmem:[%s4993_s11 + $0x48] sm:$0xff] }
  0x63   : > { %843 = vst [vmem:[#allocation2 + $0x40] sm:$0xff] %v4837_v1  ;;  %844 = vst [vmem:[#allocation2 + $0x48] sm:$0xff] %v4837_v1  ;;  %v278_v29 = vsel %vm8041_vm0, %v5101_v23, 0.0  ;;  %v334_v30 = vsel %vm8041_vm0, %v5054_v3, -inf  ;;  %v5115_v31 = vld [vmem:[%s4993_s11 + $0x50] sm:$0xff]  ;;  %v335_v32 = vsel %vm8041_vm0, %v5057_v4, -inf }
  0x64   : > { %v410_v0 = vld [vmem:[%s8134_s1 + $0x18] sm:$0xff]  ;;  %845 = vst [vmem:[#allocation2 + $0x50] sm:$0xff] %v4837_v1  ;;  %846 = vst [vmem:[#allocation2 + $0x58] sm:$0xff] %v4837_v1  ;;  %v409_v2 = vld [vmem:[%s8134_s1 + $0x10] sm:$0xff]  ;;  %v269_v19 = vadd.f32 %v268_v13, %v267_v16  ;;  %v336_v33 = vsel %vm8041_vm0, %v5060_v5, -inf  ;;  %v337_v34 = vsel %vm8041_vm0, %v5063_v6, -inf }
  0x65   : > { %847 = vst [vmem:[#allocation2 + $0x60] sm:$0xff] %v4837_v1  ;;  %848 = vst [vmem:[#allocation2 + $0x68] sm:$0xff] %v4837_v1  ;;  %4598 = vmatpush3.msra.mxu0 %v410_v0  ;;  %v408_v9 = vld [vmem:[%s8134_s1 + $0x8] sm:$0xff]  ;;  %v407_v14 = vld [vmem:[%s8134_s1] sm:$0xff]  ;;  %v338_v35 = vsel %vm8041_vm0, %v5075_v10, -inf  ;;  %v340_v37 = vsel %vm8041_vm0, %v5087_v15, -inf }
  0x66   : > { %849 = vst [vmem:[#allocation2 + $0x70] sm:$0xff] %v4837_v1  ;;  %850 = vst [vmem:[#allocation2 + $0x78] sm:$0xff] %v4837_v1  ;;  %4599 = vmatprep.subr.mxu0 %v4837_v1  ;;  %v271_v22 = vadd.f32 %v270_v17, %v269_v19  ;;  %v342_v38 = vsel %vm8041_vm0, %v5093_v18, -inf  ;;  %v344_v39 = vsel %vm8041_vm0, %v5098_v21, -inf  ;;  %v280_v40 = vsel %vm8041_vm0, %v5108_v27, 0.0  ;;  %v5134_v41 = vld [vmem:[%s4993_s11 + $0x58] sm:$0xff] }
  0x67   : > { %851 = vst [vmem:[#allocation2 + $0x80] sm:$0xff] %v4837_v1  ;;  %852 = vst [vmem:[#allocation2 + $0x88] sm:$0xff] %v4837_v1  ;;  %4600 = vmatpush3.msra.mxu0 %v409_v2  ;;  %v282_v43 = vsel %vm8041_vm0, %v5115_v31, 0.0  ;;  %v339_v44 = vmax.f32 %v334_v30, %v338_v35  ;;  %v5139_v45 = vld [vmem:[%s4993_s11 + $0x60] sm:$0xff]  ;;  %v341_v46 = vmax.f32 %v335_v32, %v340_v37  ;;  %v346_v49 = vsel %vm8041_vm0, %v5101_v23, -inf  ;;  %v5152_v55 = vld [vmem:[%s4993_s11 + $0x68] sm:$0xff] }
  0x68   : > { %853 = vst [vmem:[#allocation2 + $0x90] sm:$0xff] %v4837_v1  ;;  %854 = vst [vmem:[#allocation2 + $0x98] sm:$0xff] %v4837_v1  ;;  %4601 = vmatprep.subr.mxu0 %v4837_v1  ;;  %v273_v25 = vadd.f32 %v272_v20, %v271_v22  ;;  %v343_v47 = vmax.f32 %v336_v33, %v342_v38  ;;  %v345_v48 = vmax.f32 %v337_v34, %v344_v39  ;;  %v5157_v58 = vld [vmem:[%s4993_s11 + $0x70] sm:$0xff]  ;;  %v5160_v63 = vld [vmem:[%s4993_s11 + $0x78] sm:$0xff]  ;;  %vm403_vm2 = vcmask 1040384   ;;  %s8135_s2 = sld [smem:[#allocation95_spill]] }
  0x69   : > { %855 = vst [vmem:[#allocation2 + $0xa0] sm:$0xff] %v4837_v1  ;;  %856 = vst [vmem:[#allocation2 + $0xa8] sm:$0xff] %v4837_v1  ;;  %4602 = vmatpush3.msra.mxu0 %v408_v9  ;;  %v348_v51 = vsel %vm8041_vm0, %v5108_v27, -inf  ;;  %v350_v52 = vsel %vm8041_vm0, %v5115_v31, -inf  ;;  %v352_v53 = vsel %vm8041_vm0, %v5134_v41, -inf  ;;  %v284_v54 = vsel %vm8041_vm0, %v5134_v41, 0.0 }
  0x6a   : > { %857 = vst [vmem:[#allocation2 + $0xb0] sm:$0xff] %v4837_v1  ;;  %858 = vst [vmem:[#allocation2 + $0xb8] sm:$0xff] %v4837_v1  ;;  %4603 = vmatprep.subr.mxu0 %v4837_v1  ;;  %v275_v28 = vadd.f32 %v274_v24, %v273_v25  ;;  %v286_v57 = vsel %vm8041_vm0, %v5139_v45, 0.0  ;;  %v347_v59 = vmax.f32 %v339_v44, %v346_v49  ;;  %v356_v2 = vsel %vm8041_vm0, %v5152_v55, -inf  ;;  %v5173_v11 = vld [vmem:[%s4993_s11 + $0x80] sm:$0xff]  ;;  %v5181_v16 = vld [vmem:[%s4993_s11 + $0x90] sm:$0xff] }
  0x6b   : > { %859 = vst [vmem:[#allocation2 + $0xc0] sm:$0xff] %v4837_v1  ;;  %860 = vst [vmem:[#allocation2 + $0xc8] sm:$0xff] %v4837_v1  ;;  %4604 = vmatpush3.msra.mxu0 %v407_v14  ;;  %v349_v60 = vmax.f32 %v341_v46, %v348_v51  ;;  %v351_v61 = vmax.f32 %v343_v47, %v350_v52  ;;  %v353_v62 = vmax.f32 %v345_v48, %v352_v53  ;;  %v5178_v14 = vld [vmem:[%s4993_s11 + $0x88] sm:$0xff]  ;;  %v5186_v24 = vld [vmem:[%s4993_s11 + $0x98] sm:$0xff]  ;;  %vm405_vm3 = vcmask 1041408   ;;  %s6882_s22 = sld [smem:[#allocation7]] }
  0x6c   : > { %861 = vst [vmem:[#allocation2 + $0xd0] sm:$0xff] %v4837_v1  ;;  %862 = vst [vmem:[#allocation2 + $0xd8] sm:$0xff] %v4837_v1  ;;  %v277_v36 = vadd.f32 %v276_v26, %v275_v28  ;;  %v358_v7 = vsel %vm8041_vm0, %v5157_v58, -inf  ;;  %v288_v8 = vsel %vm8041_vm0, %v5152_v55, 0.0  ;;  %v360_v9 = vsel %vm8041_vm0, %v5160_v63, -inf  ;;  %v5197_v34 = vld [vmem:[%s4993_s11 + $0xa0] sm:$0xff] }
  0x6d   : > { %863 = vst [vmem:[#allocation2 + $0xe0] sm:$0xff] %v4837_v1  ;;  %864 = vst [vmem:[#allocation2 + $0xe8] sm:$0xff] %v4837_v1  ;;  %v290_v13 = vsel %vm8041_vm0, %v5157_v58, 0.0  ;;  %v357_v19 = vmax.f32 %v349_v60, %v356_v2  ;;  %v359_v20 = vmax.f32 %v351_v61, %v358_v7  ;;  %v362_v22 = vsel %vm8041_vm0, %v5173_v11, -inf  ;;  %v5200_v35 = vld [vmem:[%s4993_s11 + $0xa8] sm:$0xff]  ;;  %v5221_v51 = vld [vmem:[%s4993_s11 + $0xc0] sm:$0xff] }
  0x6e   : > { %865 = vst [vmem:[#allocation2 + $0xf0] sm:$0xff] %v4837_v1  ;;  %866 = vst [vmem:[#allocation2 + $0xf8] sm:$0xff] %v4837_v1  ;;  %v279_v42 = vadd.f32 %v278_v29, %v277_v36  ;;  %v361_v26 = vmax.f32 %v353_v62, %v360_v9  ;;  %v364_v28 = vsel %vm8041_vm0, %v5178_v14, -inf  ;;  %v366_v29 = vsel %vm8041_vm0, %v5181_v16, -inf  ;;  %v5224_v53 = vld [vmem:[%s4993_s11 + $0xc8] sm:$0xff]  ;;  %v5231_v60 = vld [vmem:[%s4993_s11 + $0xd0] sm:$0xff] }
  0x6f   : > { %867 = vst [vmem:[#allocation2 + $0x100] sm:$0xff] %v4837_v1  ;;  %868 = vst [vmem:[#allocation2 + $0x108] sm:$0xff] %v4837_v1  ;;  %v292_v30 = vsel %vm8041_vm0, %v5160_v63, 0.0  ;;  %v368_v32 = vsel %vm8041_vm0, %v5186_v24, -inf  ;;  %v294_v36 = vsel %vm8041_vm0, %v5173_v11, 0.0  ;;  %v365_v38 = vmax.f32 %v357_v19, %v364_v28  ;;  %v5234_v61 = vld [vmem:[%s4993_s11 + $0xd8] sm:$0xff] }
  0x70   : > { %869 = vst [vmem:[#allocation2 + $0x110] sm:$0xff] %v4837_v1  ;;  %870 = vst [vmem:[#allocation2 + $0x118] sm:$0xff] %v4837_v1  ;;  %v281_v50 = vadd.f32 %v280_v40, %v279_v42  ;;  %v367_v39 = vmax.f32 %v359_v20, %v366_v29  ;;  %v5205_v40 = vld [vmem:[%s4993_s11 + $0xb0] sm:$0xff]  ;;  %v5208_v42 = vld [vmem:[%s4993_s11 + $0xb8] sm:$0xff]  ;;  %v369_v44 = vmax.f32 %v361_v26, %v368_v32  ;;  %v370_v46 = vsel %vm8041_vm0, %v5197_v34, -inf  ;;  %s6888_s23 = sld [smem:[#allocation7 + $0x31]] }
  0x71   : > { %871 = vst [vmem:[#allocation2 + $0x120] sm:$0xff] %v4837_v1  ;;  %872 = vst [vmem:[#allocation2 + $0x128] sm:$0xff] %v4837_v1  ;;  %v372_v47 = vsel %vm8041_vm0, %v5200_v35, -inf  ;;  %v296_v48 = vsel %vm8041_vm0, %v5178_v14, 0.0  ;;  %v374_v49 = vsel %vm8041_vm0, %v5205_v40, -inf  ;;  %v380_v2 = vsel %vm8041_vm0, %v5224_v53, -inf }
  0x72   : > { %873 = vst [vmem:[#allocation2 + $0x130] sm:$0xff] %v4837_v1  ;;  %874 = vst [vmem:[#allocation2 + $0x138] sm:$0xff] %v4837_v1  ;;  %v283_v56 = vadd.f32 %v282_v43, %v281_v50  ;;  %v376_v50 = vsel %vm8041_vm0, %v5208_v42, -inf  ;;  %v300_v7 = vsel %vm8041_vm0, %v5186_v24, 0.0  ;;  %v384_v9 = vsel %vm8041_vm0, %v5234_v61, -inf  ;;  %v5251_v19 = vld [vmem:[%s4993_s11 + $0xe0] sm:$0xff] }
  0x73   : > { %875 = vst [vmem:[#allocation2 + $0x140] sm:$0xff] %v4837_v1  ;;  %876 = vst [vmem:[#allocation2 + $0x148] sm:$0xff] %v4837_v1  ;;  %v354_v1 = vsel %vm8041_vm0, %v5139_v45, -inf  ;;  %v302_v20 = vsel %vm8041_vm0, %v5197_v34, 0.0  ;;  %v5256_v26 = vld [vmem:[%s4993_s11 + $0xe8] sm:$0xff]  ;;  %v386_v32 = vsel %vm8041_vm0, %v5251_v19, -inf }
  0x74   : > { %v285_v0 = vadd.f32 %v284_v54, %v283_v56  ;;  %v355_v17 = vmax.f32 %v347_v59, %v354_v1  ;;  %v298_v54 = vsel %vm8041_vm0, %v5181_v16, 0.0  ;;  %v378_v59 = vsel %vm8041_vm0, %v5221_v51, -inf  ;;  %s6895_s5 = sld [smem:[#allocation7 + $0x1]] }
  0x75   : > { %v377_v1 = vmax.f32 %v369_v44, %v376_v50  ;;  %v308_v50 = vsel %vm8041_vm0, %v5208_v42, 0.0  ;;  %vm490_vm4 = vcmask 1043456   ;;  %vm486_vm5 = vcmask 31744   ;;  %s6908_s10 = sld [smem:[#allocation7 + $0x32]] }
  0x76   : > { %v287_v12 = vadd.f32 %v286_v57, %v285_v0  ;;  %v363_v37 = vmax.f32 %v355_v17, %v362_v22  ;;  %v373_v57 = vmax.f32 %v365_v38, %v372_v47  ;;  %v375_v0 = vmax.f32 %v367_v39, %v374_v49  ;;  %s6913_s29 = sld [smem:[#allocation7 + $0x2]] }
  0x77   : > { %vm921_vm6 = vcmask 154712   ;;  %vm1094_vm7 = vcmask 146512   ;;  %vm8050_vm8 = vcmask 138312   ;;  %vm8049_vm9 = vcmask 130112   ;;  %s6928_s9 = sld [smem:[#allocation7 + $0x3]] }
  0x78   : > { %v289_v25 = vadd.f32 %v288_v8, %v287_v12  ;;  %v371_v56 = vmax.f32 %v363_v37, %v370_v46  ;;  %v382_v8 = vsel %vm8041_vm0, %v5231_v60, -inf  ;;  %v5245_v12 = vld [vmem:[%s4993_s11 + $0xf0] sm:$0xff]  ;;  %vm1594_vm10 = vcmask 121912   ;;  %s6936_s26 = sld [smem:[#allocation7 + $0x33]] }
  0x79   : > { %v383_v29 = vmax.f32 %v375_v0, %v382_v8  ;;  %v390_v37 = vsel %vm8041_vm0, %v5245_v12, -inf  ;;  %v316_v8 = vsel %vm8041_vm0, %v5234_v61, 0.0  ;;  %vm1764_vm11 = vcmask 113712   ;;  %s6975_s20 = sld [smem:[#allocation7 + $0x34]] }
  0x7a   : > { %v291_v33 = vadd.f32 %v290_v13, %v289_v25  ;;  %v5248_v13 = vld [vmem:[%s4993_s11 + $0xf8] sm:$0xff]  ;;  %v379_v22 = vmax.f32 %v371_v56, %v378_v59  ;;  %v381_v25 = vmax.f32 %v373_v57, %v380_v2  ;;  %vm1934_vm12 = vcmask 105512   ;;  %s7004_s25 = sld [smem:[#allocation7 + $0x4]] }
  0x7b   : > { %v392_v38 = vsel %vm8041_vm0, %v5248_v13, -inf  ;;  %vm1058_vm13 = vcmask 1041409   ;;  %vm8044_vm14 = vcmask 1042434   ;;  %vm8043_vm15 = vcmask 1043459   ;;  %s7016_s30 = sld [smem:[#allocation7 + $0x35]] }
  0x7c   : > { %v293_v43 = vadd.f32 %v292_v30, %v291_v33  ;;  %v385_v30 = vmax.f32 %v377_v1, %v384_v9  ;;  %v304_v33 = vsel %vm8041_vm0, %v5200_v35, 0.0  ;;  %v387_v44 = vmax.f32 %v379_v22, %v386_v32  ;;  %s7030_s12 = sld [smem:[#allocation7 + $0x5]] }
  0x7d   : > { %v314_v1 = vsel %vm8041_vm0, %v5231_v60, 0.0  ;;  %vm8042_vm1 = vcmask 1044484   ;;  %s7040_s8 = sld [smem:[#allocation7 + $0x36]] }
  0x7e   : > { %v295_v52 = vadd.f32 %v294_v36, %v293_v43  ;;  %v388_v36 = vsel %vm8041_vm0, %v5256_v26, -inf  ;;  %v306_v43 = vsel %vm8041_vm0, %v5205_v40, 0.0  ;;  %v393_v49 = vmax.f32 %v385_v30, %v392_v38  ;;  %s7046_s13 = sld [smem:[#allocation7 + $0x6]] }
  0x7f   : > { %v389_v47 = vmax.f32 %v381_v25, %v388_v36  ;;  %v320_v25 = vsel %vm8041_vm0, %v5256_v26, 0.0  ;;  %s7051_s14 = sld [smem:[#allocation7 + $0x37]] }
  0x80   : > { %v297_v62 = vadd.f32 %v296_v48, %v295_v52  ;;  %v391_v48 = vmax.f32 %v383_v29, %v390_v37  ;;  %v322_v29 = vsel %vm8041_vm0, %v5245_v12, 0.0  ;;  %s7057_s7 = sld [smem:[#allocation7 + $0x7]] }
  0x81   : > { %v394_v57 = vmax.f32 %v387_v44, %v389_v47  ;;  %s7062_s0 = sld [smem:[#allocation7 + $0x38]] }
  0x82   : > { %v299_v17 = vadd.f32 %v298_v54, %v297_v62  ;;  %v310_v54 = vsel %vm8041_vm0, %v5221_v51, 0.0  ;;  %v395_v59 = vmax.f32 %v391_v48, %v393_v49  ;;  %v312_v62 = vsel %vm8041_vm0, %v5224_v53, 0.0  ;;  %s7067_s1 = sld [smem:[#allocation7 + $0x8]] }
  0x83   : > { %s7077_s3 = sld [smem:[#allocation7 + $0x9]] }
  0x84   : > { %v301_v28 = vadd.f32 %v300_v7, %v299_v17  ;;  %v396_v7 = vmax.f32 %v394_v57, %v395_v59  ;;  %v318_v17 = vsel %vm8041_vm0, %v5251_v19, 0.0  ;;  %v485_v59 = vld [vmem:[%s8135_s2] sm:$0xf]  ;;  %s7072_s2 = sld [smem:[#allocation7 + $0x39]] }
  0x85   : > { %4609 = vmatpush3.msk.msra.mxu1 %vm490_vm4, %v485_v59  ;;  %vm1070_vm4 = vcmask 1047559   ;;  %s7082_s24 = sld [smem:[#allocation7 + $0x3a]] }
  0x86   : > { %v303_v39 = vadd.f32 %v302_v20, %v301_v28  ;;  %v397_v22 = vrot.slane %v396_v7, 4  ;;  %s7084_s17 = sld [smem:[#allocation7 + $0xc]] }
  0x87   : > { %s7089_s16 = sld [smem:[#allocation7 + $0xa]] }
  0x88   : > { %v305_v46 = vadd.f32 %v304_v33, %v303_v39  ;;  %v398_v32 = vmax.f32 %v396_v7, %v397_v22  ;;  %v324_v33 = vsel %vm8041_vm0, %v5248_v13, 0.0  ;;  %s7094_s21 = sld [smem:[#allocation7 + $0x3b]] }
  0x89   : > { %s7096_s18 = sld [smem:[#allocation7 + $0x3d]] }
  0x8a   : > { %v307_v52 = vadd.f32 %v306_v43, %v305_v46  ;;  %v399_v38 = vrot.slane %v398_v32, 2  ;;  %s7101_s28 = sld [smem:[#allocation7 + $0xb]] }
  0x8b   : > { %s7105_s15 = sld [smem:[#allocation7 + $0x3c]] }
  0x8c   : > { %v309_v56 = vadd.f32 %v308_v50, %v307_v52  ;;  %v400_v44 = vmax.f32 %v398_v32, %v399_v38  ;;  %8281 = sst [smem:[#allocation76_spill]] %s7084_s17 }
  0x8d   : > { %s7139_s4 = sld [smem:[#allocation7 + $0xd]] }
  0x8e   : > { %v311_v0 = vadd.f32 %v310_v54, %v309_v56  ;;  %v401_v48 = vrot.slane %v400_v44, 1  ;;  %s7151_s27 = sld [smem:[#allocation7 + $0x3e]] }
  0x8f   : > { %s7159_s19 = sld [smem:[#allocation7 + $0x3f]] }
  0x90   : > { %v313_v2 = vadd.f32 %v312_v62, %v311_v0  ;;  %v402_v52 = vmax.f32 %v400_v44, %v401_v48  ;;  %8282 = sst [smem:[#allocation77_spill]] %s7101_s28 }
  0x91   : > { %8283 = sst [smem:[#allocation78_spill]] %s7105_s15 }
  0x92   : > { %v315_v9 = vadd.f32 %v314_v1, %v313_v2  ;;  %s7169_s6 = sld [smem:[#allocation7 + $0xe]] }
  0x93   : > { %8284 = sst [smem:[#allocation79_spill]] %s7139_s4 }
  0x94   : > { %v317_v20 = vadd.f32 %v316_v8, %v315_v9  ;;  %8286 = sst [smem:[#allocation80_spill]] %s7151_s27 }
  0x95   : > { %8287 = sst [smem:[#allocation81_spill]] %s7159_s19 }
  0x96   : > { %v319_v28 = vadd.f32 %v318_v17, %v317_v20  ;;  %s7177_s11 = sld [smem:[#allocation7 + $0x40]] }
  0x98   : > { %v321_v30 = vadd.f32 %v320_v25, %v319_v28  ;;  %v574_v25 = vlaneseq }
  0x9a   : > { %v323_v36 = vadd.f32 %v322_v29, %v321_v30  ;;  %v5293_v28 = vshrl.u32 %v574_v25, 7 }
  0x9c   : > { %v325_v37 = vadd.f32 %v324_v33, %v323_v36  ;;  %8136 = vst [vmem:[#allocation23_spill] sm:$0xff] %v5293_v28  ;;  %v5296_v29 = vsub.s32 0, %v5293_v28  ;;  %8288 = sst [smem:[#allocation82_spill]] %s7177_s11 }
  0x9e   : > { %v326_v39 = vrot.slane %v325_v37, 4  ;;  %8137 = vst [vmem:[#allocation24_spill] sm:$0xff] %v5296_v29 }
  0xa0   : > { %v327_v43 = vadd.f32 %v326_v39, %v325_v37 }
  0xa2   : > { %v328_v46 = vrot.slane %v327_v43, 2 }
  0xa4   : > { %v329_v47 = vadd.f32 %v328_v46, %v327_v43 }
  0xa6   : > { %v330_v49 = vrot.slane %v329_v47, 1 }
  0xa8   : > { %v331_v50 = vadd.f32 %v330_v49, %v329_v47 }
  0xaa   : > { %v333_v54 = vmul.f32 0.00390625, %v331_v50 }
  0xac   : > { %v404_v56 = vsel %vm403_vm2, %v333_v54, %v402_v52  ;;  %vm1066_vm2 = vcmask 1045509  }
  0xad   : > { %v406_v57 = vsel %vm405_vm3, %v404_v56, 0.0  ;;  %vm1068_vm3 = vcmask 1046534  }
  0xae   : > { %4606 = vmatmul.mubr.msk.f32.vlgmr.msra.gmra.mxu0 %vm8041_vm0, %v406_v57 }
 0x16e   : > { %v480_v62 = vpop.f32.mrf.mxu0 }
 0x16f   : > { %v484_v0 = vmax.f32 %v480_v62, 0.0 }
 0x170   : > { %v4607_v1 = vpop.f32.mrf.mxu0 }
 0x171   : > { %4611 = vmatmul.mubr.msk.f32.vlgmr.msra.gmra.mxu1 %vm486_vm5, %v484_v0  ;;  %vm2088_vm5 = vcmask 105475  }
 0x231   : > { %v560_v2 = vpop.f32.mrf.mxu1 }
 0x232   : > { %v565_v7 = vrot.slane %v560_v2, 1 }
 0x233   : > { %v4612_v8 = vpop.f32.mrf.mxu1 }
 0x234   : > { %v567_v9 = vadd.f32 %v565_v7, %v560_v2 }
 0x236   : > { %v4483_v17 = vmul.f32 -1.442695, %v567_v9 }
 0x238   : > { %4676 = vpow2.f32 %v4483_v17 }
 0x245   : > { %v4677_v20 = vpop.eup %4676 }
 0x246   : > { %v571_v22 = vadd.f32 1.0, %v4677_v20 }
 0x248   : > { %4678 = vrcp.f32 %v571_v22 }
 0x255   : > { %v4679_v30 = vpop.eup %4678 }
 0x256   : > { %v5299_v32 = vrot.slane %v4679_v30, %v5296_v29 }
 0x258   : > { %8138 = vst [vmem:[#allocation25_spill] sm:$0xff] %v5299_v32  ;;  %v580_v33 = vmul.f32 %v5299_v32, %v5060_v5  ;;  %v578_v36 = vmul.f32 %v5299_v32, %v5054_v3  ;;  %v581_v39 = vmul.f32 %v5299_v32, %v5063_v6  ;;  %v579_v43 = vmul.f32 %v5299_v32, %v5057_v4 }
 0x259   : > { %v595_v5 = vmul.f32 %v5299_v32, %v5178_v14  ;;  %v594_v3 = vmul.f32 %v5299_v32, %v5173_v11  ;;  %v597_v4 = vmul.f32 %v5299_v32, %v5186_v24  ;;  %v596_v48 = vmul.f32 %v5299_v32, %v5181_v16 }
 0x25a   : > { %v616_v37 = vsel %vm8041_vm0, %v580_v33, 0.0  ;;  %v610_v38 = vsel %vm8041_vm0, %v578_v36, 0.0  ;;  %v619_v44 = vsel %vm8041_vm0, %v581_v39, 0.0  ;;  %v613_v46 = vsel %vm8041_vm0, %v579_v43, 0.0 }
 0x25b   : > { %617 = vadd.xlane.f32.xlu1 %v616_v37  ;;  %611 = vadd.xlane.f32.xlu0 %v610_v38  ;;  %v661_v47 = vsel %vm8041_vm0, %v595_v5, 0.0  ;;  %v658_v6 = vsel %vm8041_vm0, %v594_v3, 0.0  ;;  %v667_v49 = vsel %vm8041_vm0, %v597_v4, 0.0  ;;  %v664_v14 = vsel %vm8041_vm0, %v596_v48, 0.0 }
 0x25c   : > { %v583_v11 = vmul.f32 %v5299_v32, %v5087_v15  ;;  %v582_v50 = vmul.f32 %v5299_v32, %v5075_v10  ;;  %v599_v16 = vmul.f32 %v5299_v32, %v5200_v35  ;;  %v598_v54 = vmul.f32 %v5299_v32, %v5197_v34 }
 0x25d   : > { %v585_v10 = vmul.f32 %v5299_v32, %v5098_v21  ;;  %v584_v57 = vmul.f32 %v5299_v32, %v5093_v18  ;;  %v601_v34 = vmul.f32 %v5299_v32, %v5208_v42  ;;  %v600_v62 = vmul.f32 %v5299_v32, %v5205_v40 }
 0x25e   : > { %v625_v52 = vsel %vm8041_vm0, %v583_v11, 0.0  ;;  %v622_v24 = vsel %vm8041_vm0, %v582_v50, 0.0  ;;  %v673_v56 = vsel %vm8041_vm0, %v599_v16, 0.0  ;;  %v670_v15 = vsel %vm8041_vm0, %v598_v54, 0.0 }
 0x25f   : > { %620 = vadd.xlane.f32.xlu1 %v619_v44  ;;  %614 = vadd.xlane.f32.xlu0 %v613_v46  ;;  %v631_v59 = vsel %vm8041_vm0, %v585_v10, 0.0  ;;  %v628_v35 = vsel %vm8041_vm0, %v584_v57, 0.0  ;;  %v679_v0 = vsel %vm8041_vm0, %v601_v34, 0.0  ;;  %v676_v21 = vsel %vm8041_vm0, %v600_v62, 0.0 }
 0x260   : > { %v742_v18 = vsel %vm8041_vm0, %v579_v43, -inf  ;;  %v739_v1 = vsel %vm8041_vm0, %v578_v36, -inf  ;;  %v748_v2 = vsel %vm8041_vm0, %v581_v39, -inf  ;;  %v745_v42 = vsel %vm8041_vm0, %v580_v33, -inf }
 0x261   : > { %v790_v40 = vsel %vm8041_vm0, %v595_v5, -inf  ;;  %v787_v7 = vsel %vm8041_vm0, %v594_v3, -inf  ;;  %v796_v8 = vsel %vm8041_vm0, %v597_v4, -inf  ;;  %v793_v9 = vsel %vm8041_vm0, %v596_v48, -inf }
 0x262   : > { %v587_v17 = vmul.f32 %v5299_v32, %v5108_v27  ;;  %v586_v20 = vmul.f32 %v5299_v32, %v5101_v23  ;;  %v603_v33 = vmul.f32 %v5299_v32, %v5224_v53  ;;  %v602_v36 = vmul.f32 %v5299_v32, %v5221_v51 }
 0x263   : > { %662 = vadd.xlane.f32.xlu1 %v661_v47  ;;  %659 = vadd.xlane.f32.xlu0 %v658_v6  ;;  %v754_v23 = vsel %vm8041_vm0, %v583_v11, -inf  ;;  %v751_v38 = vsel %vm8041_vm0, %v582_v50, -inf  ;;  %v802_v39 = vsel %vm8041_vm0, %v599_v16, -inf  ;;  %v799_v53 = vsel %vm8041_vm0, %v598_v54, -inf }
 0x264   : > { %v637_v22 = vsel %vm8041_vm0, %v587_v17, 0.0  ;;  %v634_v30 = vsel %vm8041_vm0, %v586_v20, 0.0  ;;  %v685_v37 = vsel %vm8041_vm0, %v603_v33, 0.0  ;;  %v682_v27 = vsel %vm8041_vm0, %v602_v36, 0.0 }
 0x265   : > { %v589_v51 = vmul.f32 %v5299_v32, %v5134_v41  ;;  %v588_v43 = vmul.f32 %v5299_v32, %v5115_v31  ;;  %v605_v5 = vmul.f32 %v5299_v32, %v5234_v61  ;;  %v604_v3 = vmul.f32 %v5299_v32, %v5231_v60 }
 0x266   : > { %v760_v31 = vsel %vm8041_vm0, %v585_v10, -inf  ;;  %v757_v6 = vsel %vm8041_vm0, %v584_v57, -inf  ;;  %v808_v4 = vsel %vm8041_vm0, %v601_v34, -inf  ;;  %v805_v61 = vsel %vm8041_vm0, %v600_v62, -inf }
 0x267   : > { %668 = vadd.xlane.f32.xlu1 %v667_v49  ;;  %665 = vadd.xlane.f32.xlu0 %v664_v14  ;;  %v643_v44 = vsel %vm8041_vm0, %v589_v51, 0.0  ;;  %v640_v46 = vsel %vm8041_vm0, %v588_v43, 0.0  ;;  %v691_v47 = vsel %vm8041_vm0, %v605_v5, 0.0  ;;  %v688_v41 = vsel %vm8041_vm0, %v604_v3, 0.0 }
 0x268   : > { %v591_v60 = vmul.f32 %v5299_v32, %v5152_v55  ;;  %v590_v48 = vmul.f32 %v5299_v32, %v5139_v45  ;;  %v607_v11 = vmul.f32 %v5299_v32, %v5256_v26  ;;  %v606_v50 = vmul.f32 %v5299_v32, %v5251_v19 }
 0x269   : > { %v766_v45 = vsel %vm8041_vm0, %v587_v17, -inf  ;;  %v814_v16 = vsel %vm8041_vm0, %v603_v33, -inf  ;;  %v811_v26 = vsel %vm8041_vm0, %v602_v36, -inf  ;;  %v593_v19 = vmul.f32 %v5299_v32, %v5160_v63 }
 0x26a   : > { %v649_v49 = vsel %vm8041_vm0, %v591_v60, 0.0  ;;  %v646_v14 = vsel %vm8041_vm0, %v590_v48, 0.0  ;;  %v694_v55 = vsel %vm8041_vm0, %v606_v50, 0.0  ;;  %v592_v54 = vmul.f32 %v5299_v32, %v5157_v58 }
 0x26b   : > { %626 = vadd.xlane.f32.xlu1 %v625_v52  ;;  %623 = vadd.xlane.f32.xlu0 %v622_v24  ;;  %v697_v52 = vsel %vm8041_vm0, %v607_v11, 0.0  ;;  %v763_v24 = vsel %vm8041_vm0, %v586_v20, -inf  ;;  %v609_v10 = vmul.f32 %v5299_v32, %v5248_v13  ;;  %v608_v57 = vmul.f32 %v5299_v32, %v5245_v12 }
 0x26c   : > { %v772_v58 = vsel %vm8041_vm0, %v589_v51, -inf  ;;  %v820_v34 = vsel %vm8041_vm0, %v605_v5, -inf  ;;  %v817_v13 = vsel %vm8041_vm0, %v604_v3, -inf  ;;  %v778_v12 = vsel %vm8041_vm0, %v591_v60, -inf }
 0x26d   : > { %v700_v63 = vsel %vm8041_vm0, %v608_v57, 0.0  ;;  %v775_v62 = vsel %vm8041_vm0, %v590_v48, -inf }
 0x26f   : > { %674 = vadd.xlane.f32.xlu1 %v673_v56  ;;  %671 = vadd.xlane.f32.xlu0 %v670_v15  ;;  %v655_v56 = vsel %vm8041_vm0, %v593_v19, 0.0  ;;  %v652_v15 = vsel %vm8041_vm0, %v592_v54, 0.0 }
 0x273   : > { %632 = vadd.xlane.f32.xlu1 %v631_v59  ;;  %629 = vadd.xlane.f32.xlu0 %v628_v35  ;;  %v703_v59 = vsel %vm8041_vm0, %v609_v10, 0.0  ;;  %v769_v35 = vsel %vm8041_vm0, %v588_v43, -inf }
 0x277   : > { %680 = vadd.xlane.f32.xlu1 %v679_v0  ;;  %677 = vadd.xlane.f32.xlu0 %v676_v21  ;;  %v826_v0 = vsel %vm8041_vm0, %v607_v11, -inf  ;;  %v823_v21 = vsel %vm8041_vm0, %v606_v50, -inf }
 0x27b   : > { %743 = vmax.xlane.f32.xlu1 %v742_v18  ;;  %740 = vmax.xlane.f32.xlu0 %v739_v1  ;;  %v784_v18 = vsel %vm8041_vm0, %v593_v19, -inf  ;;  %v781_v1 = vsel %vm8041_vm0, %v592_v54, -inf }
 0x27f   : > { %749 = vmax.xlane.f32.xlu1 %v748_v2  ;;  %746 = vmax.xlane.f32.xlu0 %v745_v42  ;;  %v832_v2 = vsel %vm8041_vm0, %v609_v10, -inf  ;;  %v829_v42 = vsel %vm8041_vm0, %v608_v57, -inf  ;;  %vm8045_vm0 = vcmask 146448  }
 0x283   : > { %791 = vmax.xlane.f32.xlu1 %v790_v40  ;;  %788 = vmax.xlane.f32.xlu0 %v787_v7  ;;  %v910_v40 = vand.u32 127, %v574_v25 }
 0x285   : > { %v911_v7 = vadd.s32 4294967293, %v910_v40  ;;  %v1584_v17 = vadd.s32 1, %v910_v40  ;;  %v1754_v20 = vadd.s32 2, %v910_v40  ;;  %v1089_v33 = vadd.s32 4294967286, %v910_v40 }
 0x287   : > { %797 = vmax.xlane.f32.xlu1 %v796_v8  ;;  %794 = vmax.xlane.f32.xlu0 %v793_v9  ;;  %v1084_v8 = vadd.s32 4294967294, %v910_v40  ;;  %v1251_v9 = vadd.s32 4294967295, %v910_v40  ;;  %v5431_v36 = vsub.s32 %v911_v7, %v5293_v28  ;;  %v5446_v51 = vsub.s32 %v1754_v20, %v5293_v28 }
 0x289   : > { %v5440_v25 = vsub.s32 %v1251_v9, %v5293_v28 }
 0x28b   : > { %638 = vadd.xlane.f32.xlu1 %v637_v22  ;;  %635 = vadd.xlane.f32.xlu0 %v634_v30  ;;  %v1924_v22 = vadd.s32 3, %v910_v40  ;;  %v916_v30 = vadd.s32 4294967285, %v910_v40 }
 0x28d   : > { %v5449_v43 = vsub.s32 %v1924_v22, %v5293_v28 }
 0x28f   : > { %686 = vadd.xlane.f32.xlu1 %v685_v37  ;;  %683 = vadd.xlane.f32.xlu0 %v682_v27  ;;  %v5434_v37 = vsub.s32 %v1084_v8, %v5293_v28  ;;  %v5437_v27 = vsub.s32 %v910_v40, %v5293_v28 }
 0x293   : > { %755 = vmax.xlane.f32.xlu1 %v754_v23  ;;  %752 = vmax.xlane.f32.xlu0 %v751_v38  ;;  %v1256_v23 = vadd.s32 4294967287, %v910_v40  ;;  %v5443_v38 = vsub.s32 %v1584_v17, %v5293_v28 }
 0x297   : > { %803 = vmax.xlane.f32.xlu1 %v802_v39  ;;  %800 = vmax.xlane.f32.xlu0 %v799_v53  ;;  %v1422_v39 = vadd.s32 4294967288, %v910_v40  ;;  %v1589_v53 = vadd.s32 4294967289, %v910_v40 }
 0x299   : > { %v5466_v60 = vsub.s32 %v1589_v53, %v5293_v28 }
 0x29b   : > { %644 = vadd.xlane.f32.xlu1 %v643_v44  ;;  %641 = vadd.xlane.f32.xlu0 %v640_v46  ;;  %v1759_v44 = vadd.s32 4294967290, %v910_v40  ;;  %v1929_v46 = vadd.s32 4294967291, %v910_v40 }
 0x29d   : > { %v5469_v48 = vsub.s32 %v1759_v44, %v5293_v28 }
 0x29f   : > { %692 = vadd.xlane.f32.xlu1 %v691_v47  ;;  %689 = vadd.xlane.f32.xlu0 %v688_v41  ;;  %v5452_v47 = vsub.s32 %v916_v30, %v5293_v28  ;;  %v5455_v41 = vsub.s32 %v1089_v33, %v5293_v28 }
 0x2a3   : > { %761 = vmax.xlane.f32.xlu1 %v760_v31  ;;  %758 = vmax.xlane.f32.xlu0 %v757_v6 }
 0x2a7   : > { %809 = vmax.xlane.f32.xlu1 %v808_v4  ;;  %806 = vmax.xlane.f32.xlu0 %v805_v61  ;;  %v5460_v4 = vsub.s32 %v1256_v23, %v5293_v28  ;;  %v5463_v61 = vsub.s32 %v1422_v39, %v5293_v28 }
 0x2ab   : > { %650 = vadd.xlane.f32.xlu1 %v649_v49  ;;  %647 = vadd.xlane.f32.xlu0 %v646_v14  ;;  %v5472_v49 = vsub.s32 %v1929_v46, %v5293_v28 }
 0x2af   : > { %698 = vadd.xlane.f32.xlu1 %v697_v52  ;;  %695 = vadd.xlane.f32.xlu0 %v694_v55 }
 0x2b3   : > { %767 = vmax.xlane.f32.xlu1 %v766_v45  ;;  %764 = vmax.xlane.f32.xlu0 %v763_v24 }
 0x2b7   : > { %815 = vmax.xlane.f32.xlu1 %v814_v16  ;;  %812 = vmax.xlane.f32.xlu0 %v811_v26 }
 0x2bb   : > { %656 = vadd.xlane.f32.xlu1 %v655_v56  ;;  %653 = vadd.xlane.f32.xlu0 %v652_v15 }
 0x2bf   : > { %704 = vadd.xlane.f32.xlu1 %v703_v59  ;;  %701 = vadd.xlane.f32.xlu0 %v700_v63 }
 0x2c3   : > { %773 = vmax.xlane.f32.xlu1 %v772_v58  ;;  %770 = vmax.xlane.f32.xlu0 %v769_v35 }
 0x2c7   : > { %821 = vmax.xlane.f32.xlu1 %v820_v34  ;;  %818 = vmax.xlane.f32.xlu0 %v817_v13 }
 0x2cb   : > { %779 = vmax.xlane.f32.xlu1 %v778_v12  ;;  %776 = vmax.xlane.f32.xlu0 %v775_v62 }
 0x2cf   : > { %827 = vmax.xlane.f32.xlu1 %v826_v0  ;;  %824 = vmax.xlane.f32.xlu0 %v823_v21 }
 0x2d3   : > { %785 = vmax.xlane.f32.xlu1 %v784_v18  ;;  %782 = vmax.xlane.f32.xlu0 %v781_v1 }
 0x2d7   : > { %833 = vmax.xlane.f32.xlu1 %v832_v2  ;;  %830 = vmax.xlane.f32.xlu0 %v829_v42 }
 0x2e4   : > { %v618_v5 = vpop.xlane.xlu1 %617  ;;  %v612_v3 = vpop.xlane.xlu0 %611 }
 0x2e5   : > { %v709_v31 = vmul.f32 0.03125, %v618_v5  ;;  %v5457_v6 = vmul.f32 0.03125, %v612_v3 }
 0x2e7   : > { %v926_v14 = vrot.slane %v709_v31, %v5431_v36  ;;  %v1099_v11 = vrot.slane %v709_v31, %v5434_v37  ;;  %v1266_v50 = vrot.slane %v709_v31, %v5440_v25  ;;  %v1432_v52 = vrot.slane %v709_v31, %v5437_v27 }
 0x2e8   : > { %v621_v55 = vpop.xlane.xlu1 %620  ;;  %v615_v45 = vpop.xlane.xlu0 %614  ;;  %v1599_v24 = vrot.slane %v709_v31, %v5443_v38  ;;  %v1769_v16 = vrot.slane %v709_v31, %v5446_v51  ;;  %v1939_v26 = vrot.slane %v709_v31, %v5449_v43  ;;  %v915_v19 = vrot.slane %v5457_v6, %v5431_v36 }
 0x2e9   : > { %v1088_v54 = vrot.slane %v5457_v6, %v5434_v37  ;;  %v1255_v56 = vrot.slane %v5457_v6, %v5440_v25  ;;  %v710_v15 = vmul.f32 0.03125, %v621_v55  ;;  %v708_v10 = vmul.f32 0.03125, %v615_v45 }
 0x2ea   : > { %v1421_v57 = vrot.slane %v5457_v6, %v5437_v27  ;;  %v1588_v59 = vrot.slane %v5457_v6, %v5443_v38  ;;  %v1758_v63 = vrot.slane %v5457_v6, %v5446_v51  ;;  %v1928_v58 = vrot.slane %v5457_v6, %v5449_v43 }
 0x2eb   : > { %v930_v35 = vrot.slane %v710_v15, %v5452_v47  ;;  %v1103_v34 = vrot.slane %v710_v15, %v5455_v41  ;;  %v1270_v13 = vrot.slane %v710_v15, %v5460_v4  ;;  %v1436_v12 = vrot.slane %v710_v15, %v5463_v61 }
 0x2ec   : > { %v1603_v62 = vrot.slane %v710_v15, %v5466_v60  ;;  %v1773_v0 = vrot.slane %v710_v15, %v5469_v48  ;;  %v1943_v21 = vrot.slane %v710_v15, %v5472_v49  ;;  %v920_v18 = vrot.slane %v708_v10, %v5452_v47  ;;  %v663_v7 = vpop.xlane.xlu1 %662  ;;  %v660_v22 = vpop.xlane.xlu0 %659 }
 0x2ed   : > { %v931_v1 = vsel %vm921_vm6, %v930_v35, %v926_v14  ;;  %v1104_v2 = vsel %vm1094_vm7, %v1103_v34, %v1099_v11  ;;  %v1271_v42 = vsel %vm8050_vm8, %v1270_v13, %v1266_v50  ;;  %v1437_v40 = vsel %vm8049_vm9, %v1436_v12, %v1432_v52 }
 0x2ee   : > { %v1604_v8 = vsel %vm1594_vm10, %v1603_v62, %v1599_v24  ;;  %v1774_v9 = vsel %vm1764_vm11, %v1773_v0, %v1769_v16  ;;  %v1944_v17 = vsel %vm1934_vm12, %v1943_v21, %v1939_v26  ;;  %v922_v20 = vsel %vm921_vm6, %v920_v18, %v915_v19 }
 0x2ef   : > { %v5512_v30 = vsel %vm1058_vm13, %v931_v1, %v922_v20  ;;  %v1093_v33 = vrot.slane %v708_v10, %v5455_v41  ;;  %v1260_v23 = vrot.slane %v708_v10, %v5460_v4  ;;  %v1426_v39 = vrot.slane %v708_v10, %v5463_v61 }
 0x2f0   : > { %v1593_v53 = vrot.slane %v708_v10, %v5466_v60  ;;  %v1763_v44 = vrot.slane %v708_v10, %v5469_v48  ;;  %v1933_v46 = vrot.slane %v708_v10, %v5472_v49  ;;  %v724_v5 = vmul.f32 0.03125, %v663_v7  ;;  %v669_v10 = vpop.xlane.xlu1 %668  ;;  %v666_v1 = vpop.xlane.xlu0 %665 }
 0x2f1   : > { %v1095_v3 = vsel %vm1094_vm7, %v1093_v33, %v1088_v54  ;;  %v1262_v31 = vsel %vm8050_vm8, %v1260_v23, %v1255_v56  ;;  %v1428_v6 = vsel %vm8049_vm9, %v1426_v39, %v1421_v57  ;;  %v723_v14 = vmul.f32 0.03125, %v660_v22 }
 0x2f2   : > { %v5524_v11 = vsel %vm1058_vm13, %v1104_v2, %v1095_v3  ;;  %v5527_v50 = vsel %vm1058_vm13, %v1271_v42, %v1262_v31  ;;  %v5530_v52 = vsel %vm1058_vm13, %v1437_v40, %v1428_v6  ;;  %v1595_v55 = vsel %vm1594_vm10, %v1593_v53, %v1588_v59 }
 0x2f3   : > { %v5534_v45 = vsel %vm8044_vm14, %v1604_v8, %v1595_v55  ;;  %v1765_v24 = vsel %vm1764_vm11, %v1763_v44, %v1758_v63  ;;  %v1935_v16 = vsel %vm1934_vm12, %v1933_v46, %v1928_v58  ;;  %v993_v26 = vrot.slane %v724_v5, %v5452_v47 }
 0x2f4   : > { %v5540_v19 = vsel %vm8043_vm15, %v1774_v9, %v1765_v24  ;;  %v5543_v54 = vsel %vm8042_vm1, %v1944_v17, %v1935_v16  ;;  %v1166_v56 = vrot.slane %v724_v5, %v5455_v41  ;;  %v1333_v15 = vrot.slane %v724_v5, %v5460_v4  ;;  %v5575_v53 = vpop.xlane.xlu1 %626  ;;  %v5584_v55 = vpop.xlane.xlu0 %623 }
 0x2f5   : > { %v1499_v57 = vrot.slane %v724_v5, %v5463_v61  ;;  %v1666_v59 = vrot.slane %v724_v5, %v5466_v60  ;;  %v1836_v63 = vrot.slane %v724_v5, %v5469_v48  ;;  %v2006_v58 = vrot.slane %v724_v5, %v5472_v49 }
 0x2f6   : > { %v989_v35 = vrot.slane %v723_v14, %v5431_v36  ;;  %v1162_v34 = vrot.slane %v723_v14, %v5434_v37  ;;  %v1329_v13 = vrot.slane %v723_v14, %v5440_v25  ;;  %v1495_v12 = vrot.slane %v723_v14, %v5437_v27 }
 0x2f7   : > { %v1662_v62 = vrot.slane %v723_v14, %v5443_v38  ;;  %v1832_v0 = vrot.slane %v723_v14, %v5446_v51  ;;  %v2002_v21 = vrot.slane %v723_v14, %v5449_v43  ;;  %v726_v18 = vmul.f32 0.03125, %v669_v10 }
 0x2f8   : > { %v994_v2 = vsel %vm921_vm6, %v993_v26, %v989_v35  ;;  %v1167_v42 = vsel %vm1094_vm7, %v1166_v56, %v1162_v34  ;;  %v1334_v40 = vsel %vm8050_vm8, %v1333_v15, %v1329_v13  ;;  %v1500_v7 = vsel %vm8049_vm9, %v1499_v57, %v1495_v12 }
 0x2f9   : > { %v5563_v8 = vsel %vm1594_vm10, %v1666_v59, %v1662_v62  ;;  %v5566_v9 = vsel %vm1764_vm11, %v1836_v63, %v1832_v0  ;;  %v5569_v17 = vsel %vm1934_vm12, %v2006_v58, %v2002_v21  ;;  %v1002_v20 = vrot.slane %v726_v18, %v5452_v47  ;;  %v675_v62 = vpop.xlane.xlu1 %674  ;;  %v672_v0 = vpop.xlane.xlu0 %671 }
 0x2fa   : > { %8139 = vst [vmem:[#allocation26_spill] sm:$0xff] %v5563_v8  ;;  %8140 = vst [vmem:[#allocation27_spill] sm:$0xff] %v5566_v9  ;;  %v1175_v22 = vrot.slane %v726_v18, %v5455_v41  ;;  %v1342_v33 = vrot.slane %v726_v18, %v5460_v4  ;;  %v1508_v23 = vrot.slane %v726_v18, %v5463_v61  ;;  %v725_v39 = vmul.f32 0.03125, %v666_v1 }
 0x2fb   : > { %8141 = vst [vmem:[#allocation28_spill] sm:$0xff] %v5569_v17  ;;  %v1675_v44 = vrot.slane %v726_v18, %v5466_v60  ;;  %v1845_v46 = vrot.slane %v726_v18, %v5469_v48  ;;  %v2015_v5 = vrot.slane %v726_v18, %v5472_v49  ;;  %v728_v21 = vmul.f32 0.03125, %v675_v62 }
 0x2fc   : > { %v998_v3 = vrot.slane %v725_v39, %v5431_v36  ;;  %v1171_v31 = vrot.slane %v725_v39, %v5434_v37  ;;  %v1338_v6 = vrot.slane %v725_v39, %v5440_v25  ;;  %v1504_v14 = vrot.slane %v725_v39, %v5437_v27 }
 0x2fd   : > { %v1671_v24 = vrot.slane %v725_v39, %v5443_v38  ;;  %v1841_v16 = vrot.slane %v725_v39, %v5446_v51  ;;  %v2011_v26 = vrot.slane %v725_v39, %v5449_v43  ;;  %v727_v18 = vmul.f32 0.03125, %v672_v0  ;;  %v5606_v1 = vpop.xlane.xlu1 %632 }
 0x2fe   : > { %v1003_v56 = vsel %vm921_vm6, %v1002_v20, %v998_v3  ;;  %v1176_v15 = vsel %vm1094_vm7, %v1175_v22, %v1171_v31  ;;  %v1343_v10 = vsel %vm8050_vm8, %v1342_v33, %v1338_v6  ;;  %v1509_v57 = vsel %vm8049_vm9, %v1508_v23, %v1504_v14 }
 0x2ff   : > { %v1072_v59 = vsel %vm1058_vm13, %v1003_v56, %v994_v2  ;;  %v1238_v63 = vsel %vm1058_vm13, %v1176_v15, %v1167_v42  ;;  %v1405_v58 = vsel %vm1058_vm13, %v1343_v10, %v1334_v40  ;;  %v1571_v35 = vsel %vm1058_vm13, %v1509_v57, %v1500_v7 }
 0x300   : > { %v5598_v34 = vsel %vm1594_vm10, %v1675_v44, %v1671_v24  ;;  %v5601_v13 = vsel %vm1764_vm11, %v1845_v46, %v1841_v16  ;;  %v5604_v12 = vsel %vm1934_vm12, %v2015_v5, %v2011_v26  ;;  %v1011_v2 = vrot.slane %v728_v21, %v5452_v47  ;;  %v5625_v16 = vpop.xlane.xlu0 %629 }
 0x301   : > { %8142 = vst [vmem:[#allocation29_spill] sm:$0xff] %v5598_v34  ;;  %8143 = vst [vmem:[#allocation30_spill] sm:$0xff] %v5601_v13  ;;  %v1184_v42 = vrot.slane %v728_v21, %v5455_v41  ;;  %v1351_v40 = vrot.slane %v728_v21, %v5460_v4  ;;  %v1517_v7 = vrot.slane %v728_v21, %v5463_v61  ;;  %v681_v57 = vpop.xlane.xlu1 %680 }
 0x302   : > { %8144 = vst [vmem:[#allocation31_spill] sm:$0xff] %v5604_v12  ;;  %v1684_v20 = vrot.slane %v728_v21, %v5466_v60  ;;  %v1854_v22 = vrot.slane %v728_v21, %v5469_v48  ;;  %v2024_v33 = vrot.slane %v728_v21, %v5472_v49  ;;  %v1007_v23 = vrot.slane %v727_v18, %v5431_v36 }
 0x303   : > { %v1180_v39 = vrot.slane %v727_v18, %v5434_v37  ;;  %v1347_v44 = vrot.slane %v727_v18, %v5440_v25  ;;  %v1513_v46 = vrot.slane %v727_v18, %v5437_v27  ;;  %v1680_v5 = vrot.slane %v727_v18, %v5443_v38 }
 0x304   : > { %v1850_v3 = vrot.slane %v727_v18, %v5446_v51  ;;  %v2020_v31 = vrot.slane %v727_v18, %v5449_v43  ;;  %v1012_v6 = vsel %vm921_vm6, %v1011_v2, %v1007_v23  ;;  %v678_v2 = vpop.xlane.xlu0 %677 }
 0x305   : > { %v1185_v14 = vsel %vm1094_vm7, %v1184_v42, %v1180_v39  ;;  %v1352_v24 = vsel %vm8050_vm8, %v1351_v40, %v1347_v44  ;;  %v1073_v26 = vsel %vm8044_vm14, %v1012_v6, %v1072_v59  ;;  %v1518_v10 = vsel %vm8049_vm9, %v1517_v7, %v1513_v46  ;;  %v5641_v42 = vpop.xlane.xlu1 %743 }
 0x306   : > { %v1239_v56 = vsel %vm8044_vm14, %v1185_v14, %v1238_v63  ;;  %v1406_v15 = vsel %vm8044_vm14, %v1352_v24, %v1405_v58  ;;  %v1572_v62 = vsel %vm8044_vm14, %v1518_v10, %v1571_v35  ;;  %v5633_v0 = vsel %vm1594_vm10, %v1684_v20, %v1680_v5  ;;  %8148 = vst [vmem:[#allocation35_spill] sm:$0xff] %v5641_v42 }
 0x307   : > { %8145 = vst [vmem:[#allocation32_spill] sm:$0xff] %v5633_v0  ;;  %v5636_v21 = vsel %vm1764_vm11, %v1854_v22, %v1850_v3  ;;  %v5639_v18 = vsel %vm1934_vm12, %v2024_v33, %v2020_v31  ;;  %v730_v59 = vmul.f32 0.03125, %v681_v57  ;;  %v729_v63 = vmul.f32 0.03125, %v678_v2 }
 0x308   : > { %8146 = vst [vmem:[#allocation33_spill] sm:$0xff] %v5636_v21  ;;  %8147 = vst [vmem:[#allocation34_spill] sm:$0xff] %v5639_v18  ;;  %v2133_v58 = vrot.slane %v5641_v42, %v5452_v47  ;;  %v2296_v35 = vrot.slane %v5641_v42, %v5455_v41  ;;  %v2459_v22 = vrot.slane %v5641_v42, %v5460_v4  ;;  %v5660_v6 = vpop.xlane.xlu0 %740 }
 0x309   : > { %v1020_v40 = vrot.slane %v730_v59, %v5452_v47  ;;  %v1193_v7 = vrot.slane %v730_v59, %v5455_v41  ;;  %v1360_v20 = vrot.slane %v730_v59, %v5460_v4  ;;  %v1526_v33 = vrot.slane %v730_v59, %v5463_v61  ;;  %8149 = vst [vmem:[#allocation36_spill] sm:$0xff] %v5660_v6  ;;  %v5671_v29 = vpop.xlane.xlu1 %749 }
 0x30a   : > { %v1693_v23 = vrot.slane %v730_v59, %v5466_v60  ;;  %v1863_v39 = vrot.slane %v730_v59, %v5469_v48  ;;  %v2033_v44 = vrot.slane %v730_v59, %v5472_v49  ;;  %v1016_v46 = vrot.slane %v729_v63, %v5431_v36  ;;  %8150 = vst [vmem:[#allocation37_spill] sm:$0xff] %v5671_v29 }
 0x30b   : > { %v1189_v5 = vrot.slane %v729_v63, %v5434_v37  ;;  %v1356_v3 = vrot.slane %v729_v63, %v5440_v25  ;;  %v1522_v31 = vrot.slane %v729_v63, %v5437_v27  ;;  %v1689_v14 = vrot.slane %v729_v63, %v5443_v38 }
 0x30c   : > { %v1859_v24 = vrot.slane %v729_v63, %v5446_v51  ;;  %v2029_v10 = vrot.slane %v729_v63, %v5449_v43  ;;  %v2622_v57 = vrot.slane %v5641_v42, %v5463_v61  ;;  %v1021_v2 = vsel %vm921_vm6, %v1020_v40, %v1016_v46 }
 0x30d   : > { %v1194_v59 = vsel %vm1094_vm7, %v1193_v7, %v1189_v5  ;;  %v1361_v32 = vsel %vm8050_vm8, %v1360_v20, %v1356_v3  ;;  %v1527_v28 = vsel %vm8049_vm9, %v1526_v33, %v1522_v31  ;;  %v5674_v18 = vsel %vm8043_vm15, %v1021_v2, %v1073_v26 }
 0x30e   : > { %v5677_v21 = vsel %vm8043_vm15, %v1194_v59, %v1239_v56  ;;  %v5680_v63 = vsel %vm8043_vm15, %v1361_v32, %v1406_v15  ;;  %v5683_v12 = vsel %vm8043_vm15, %v1527_v28, %v1572_v62  ;;  %v5686_v40 = vsel %vm1594_vm10, %v1693_v23, %v1689_v14 }
 0x30f   : > { %8151 = vst [vmem:[#allocation38_spill] sm:$0xff] %v5686_v40  ;;  %v5689_v7 = vsel %vm1764_vm11, %v1863_v39, %v1859_v24  ;;  %v5692_v20 = vsel %vm1934_vm12, %v2033_v44, %v2029_v10  ;;  %v2785_v26 = vrot.slane %v5641_v42, %v5466_v60  ;;  %v2949_v56 = vrot.slane %v5641_v42, %v5469_v48  ;;  %v5710_v39 = vpop.xlane.xlu0 %746  ;;  %v792_v10 = vpop.xlane.xlu1 %791 }
 0x310   : > { %8152 = vst [vmem:[#allocation39_spill] sm:$0xff] %v5689_v7  ;;  %8153 = vst [vmem:[#allocation40_spill] sm:$0xff] %v5692_v20  ;;  %v2129_v32 = vrot.slane %v5660_v6, %v5431_v36  ;;  %v2292_v28 = vrot.slane %v5660_v6, %v5434_v37  ;;  %v2455_v15 = vrot.slane %v5660_v6, %v5440_v25 }
 0x311   : > { %v2618_v62 = vrot.slane %v5660_v6, %v5437_v27  ;;  %v2781_v33 = vrot.slane %v5660_v6, %v5443_v38  ;;  %v2945_v23 = vrot.slane %v5660_v6, %v5446_v51  ;;  %8154 = vst [vmem:[#allocation41_spill] sm:$0xff] %v5710_v39  ;;  %v2142_v5 = vrot.slane %v5671_v29, %v5452_v47 }
 0x312   : > { %v2134_v44 = vsel %vm921_vm6, %v2133_v58, %v2129_v32  ;;  %v2297_v46 = vsel %vm1094_vm7, %v2296_v35, %v2292_v28  ;;  %v2460_v3 = vsel %vm8050_vm8, %v2459_v22, %v2455_v15  ;;  %v2305_v2 = vrot.slane %v5671_v29, %v5455_v41 }
 0x313   : > { %v2623_v31 = vsel %vm8049_vm9, %v2622_v57, %v2618_v62  ;;  %v2786_v14 = vsel %vm1594_vm10, %v2785_v26, %v2781_v33  ;;  %v2950_v24 = vsel %vm1764_vm11, %v2949_v56, %v2945_v23  ;;  %v2468_v58 = vrot.slane %v5671_v29, %v5460_v4  ;;  %v789_v33 = vpop.xlane.xlu0 %788  ;;  %v798_v17 = vpop.xlane.xlu1 %797 }
 0x314   : > { %v2631_v35 = vrot.slane %v5671_v29, %v5463_v61  ;;  %v2794_v59 = vrot.slane %v5671_v29, %v5466_v60  ;;  %v2958_v22 = vrot.slane %v5671_v29, %v5469_v48  ;;  %v2138_v57 = vrot.slane %v5710_v39, %v5431_v36 }
 0x315   : > { %v2301_v26 = vrot.slane %v5710_v39, %v5434_v37  ;;  %v2464_v56 = vrot.slane %v5710_v39, %v5440_v25  ;;  %v2627_v32 = vrot.slane %v5710_v39, %v5437_v27  ;;  %v2790_v28 = vrot.slane %v5710_v39, %v5443_v38 }
 0x316   : > { %v2143_v15 = vsel %vm921_vm6, %v2142_v5, %v2138_v57  ;;  %v2954_v62 = vrot.slane %v5710_v39, %v5446_v51 }
 0x317   : > { %v5744_v23 = vsel %vm1058_vm13, %v2143_v15, %v2134_v44  ;;  %v2306_v20 = vsel %vm1094_vm7, %v2305_v2, %v2301_v26  ;;  %v2469_v7 = vsel %vm8050_vm8, %v2468_v58, %v2464_v56  ;;  %v2632_v40 = vsel %vm8049_vm9, %v2631_v35, %v2627_v32  ;;  %v795_v56 = vpop.xlane.xlu0 %794  ;;  %v5788_v9 = vpop.xlane.xlu1 %638 }
 0x318   : > { %v5750_v13 = vsel %vm1058_vm13, %v2306_v20, %v2297_v46  ;;  %v5753_v0 = vsel %vm1058_vm13, %v2469_v7, %v2460_v3  ;;  %v5756_v5 = vsel %vm1058_vm13, %v2632_v40, %v2623_v31  ;;  %v2795_v57 = vsel %vm1594_vm10, %v2794_v59, %v2790_v28  ;;  %8157 = vst [vmem:[#allocation44_spill] sm:$0xff] %v5788_v9 }
 0x319   : > { %v5760_v44 = vsel %vm8044_vm14, %v2795_v57, %v2786_v14  ;;  %v2959_v2 = vsel %vm1764_vm11, %v2958_v22, %v2954_v62  ;;  %v2205_v58 = vrot.slane %v792_v10, %v5452_v47  ;;  %v2368_v20 = vrot.slane %v792_v10, %v5455_v41 }
 0x31a   : > { %v5765_v35 = vsel %vm8043_vm15, %v2959_v2, %v2950_v24  ;;  %v2531_v7 = vrot.slane %v792_v10, %v5460_v4  ;;  %v2694_v40 = vrot.slane %v792_v10, %v5463_v61  ;;  %v2857_v46 = vrot.slane %v792_v10, %v5466_v60 }
 0x31b   : > { %8155 = vst [vmem:[#allocation42_spill] sm:$0xff] %v5765_v35  ;;  %v3021_v3 = vrot.slane %v792_v10, %v5469_v48  ;;  %v3185_v31 = vrot.slane %v792_v10, %v5472_v49  ;;  %v2201_v14 = vrot.slane %v789_v33, %v5431_v36  ;;  %v2364_v59 = vrot.slane %v789_v33, %v5434_v37  ;;  %v687_v6 = vpop.xlane.xlu1 %686 }
 0x31c   : > { %v2527_v22 = vrot.slane %v789_v33, %v5440_v25  ;;  %v2690_v24 = vrot.slane %v789_v33, %v5437_v27  ;;  %v2853_v26 = vrot.slane %v789_v33, %v5443_v38  ;;  %v3017_v28 = vrot.slane %v789_v33, %v5446_v51 }
 0x31d   : > { %v2206_v32 = vsel %vm921_vm6, %v2205_v58, %v2201_v14  ;;  %v3181_v15 = vrot.slane %v789_v33, %v5449_v43  ;;  %v2214_v62 = vrot.slane %v798_v17, %v5452_v47  ;;  %v2369_v10 = vsel %vm1094_vm7, %v2368_v20, %v2364_v59 }
 0x31e   : > { %v2532_v57 = vsel %vm8050_vm8, %v2531_v7, %v2527_v22  ;;  %v2695_v2 = vsel %vm8049_vm9, %v2694_v40, %v2690_v24  ;;  %v5786_v35 = vsel %vm1594_vm10, %v2857_v46, %v2853_v26  ;;  %v5791_v34 = vsel %vm1764_vm11, %v3021_v3, %v3017_v28 }
 0x31f   : > { %8156 = vst [vmem:[#allocation43_spill] sm:$0xff] %v5786_v35  ;;  %8158 = vst [vmem:[#allocation45_spill] sm:$0xff] %v5791_v34  ;;  %v5794_v58 = vsel %vm1934_vm12, %v3185_v31, %v3181_v15  ;;  %v2377_v33 = vrot.slane %v798_v17, %v5455_v41  ;;  %v2540_v14 = vrot.slane %v798_v17, %v5460_v4  ;;  %v5809_v15 = vpop.xlane.xlu0 %635 }
 0x320   : > { %8159 = vst [vmem:[#allocation46_spill] sm:$0xff] %v5794_v58  ;;  %v2703_v20 = vrot.slane %v798_v17, %v5463_v61  ;;  %v2866_v7 = vrot.slane %v798_v17, %v5466_v60  ;;  %v3030_v40 = vrot.slane %v798_v17, %v5469_v48  ;;  %v3194_v46 = vrot.slane %v798_v17, %v5472_v49 }
 0x321   : > { %v2210_v59 = vrot.slane %v795_v56, %v5431_v36  ;;  %v2373_v3 = vrot.slane %v795_v56, %v5434_v37  ;;  %v2536_v22 = vrot.slane %v795_v56, %v5440_v25  ;;  %v2699_v31 = vrot.slane %v795_v56, %v5437_v27  ;;  %8160 = vst [vmem:[#allocation47_spill] sm:$0xff] %v5809_v15 }
 0x322   : > { %v2862_v24 = vrot.slane %v795_v56, %v5443_v38  ;;  %v3026_v26 = vrot.slane %v795_v56, %v5446_v51  ;;  %v3190_v28 = vrot.slane %v795_v56, %v5449_v43 }
 0x323   : > { %v2215_v58 = vsel %vm921_vm6, %v2214_v62, %v2210_v59  ;;  %v2378_v17 = vsel %vm1094_vm7, %v2377_v33, %v2373_v3  ;;  %v2541_v34 = vsel %vm8050_vm8, %v2540_v14, %v2536_v22  ;;  %v2704_v35 = vsel %vm8049_vm9, %v2703_v20, %v2699_v31 }
 0x324   : > { %v5816_v8 = vsel %vm1058_vm13, %v2215_v58, %v2206_v32  ;;  %v5819_v39 = vsel %vm1058_vm13, %v2378_v17, %v2369_v10  ;;  %v5822_v29 = vsel %vm1058_vm13, %v2541_v34, %v2532_v57  ;;  %v5825_v56 = vsel %vm1058_vm13, %v2704_v35, %v2695_v2  ;;  %v684_v32 = vpop.xlane.xlu0 %683  ;;  %v5836_v10 = vpop.xlane.xlu1 %755 }
 0x325   : > { %v5828_v62 = vsel %vm1594_vm10, %v2866_v7, %v2862_v24  ;;  %v5831_v33 = vsel %vm1764_vm11, %v3030_v40, %v3026_v26  ;;  %v5834_v14 = vsel %vm1934_vm12, %v3194_v46, %v3190_v28  ;;  %v732_v58 = vmul.f32 0.03125, %v687_v6  ;;  %8164 = vst [vmem:[#allocation51_spill] sm:$0xff] %v5836_v10 }
 0x326   : > { %8161 = vst [vmem:[#allocation48_spill] sm:$0xff] %v5828_v62  ;;  %8162 = vst [vmem:[#allocation49_spill] sm:$0xff] %v5831_v33  ;;  %v731_v20 = vmul.f32 0.03125, %v684_v32  ;;  %v5839_v34 = vmul.f32 0.03125, %v5575_v53  ;;  %v2151_v57 = vrot.slane %v5836_v10, %v5452_v47  ;;  %v2314_v6 = vrot.slane %v5836_v10, %v5455_v41 }
 0x327   : > { %8163 = vst [vmem:[#allocation50_spill] sm:$0xff] %v5834_v14  ;;  %v1029_v35 = vrot.slane %v732_v58, %v5452_v47  ;;  %v1202_v2 = vrot.slane %v732_v58, %v5455_v41  ;;  %v1369_v7 = vrot.slane %v732_v58, %v5460_v4  ;;  %v1535_v40 = vrot.slane %v732_v58, %v5463_v61 }
 0x328   : > { %v1702_v46 = vrot.slane %v732_v58, %v5466_v60  ;;  %v1872_v59 = vrot.slane %v732_v58, %v5469_v48  ;;  %v2042_v53 = vrot.slane %v732_v58, %v5472_v49  ;;  %v1025_v3 = vrot.slane %v731_v20, %v5431_v36  ;;  %v5862_v58 = vpop.xlane.xlu0 %752 }
 0x329   : > { %v1198_v22 = vrot.slane %v731_v20, %v5434_v37  ;;  %v1365_v31 = vrot.slane %v731_v20, %v5440_v25  ;;  %v1531_v24 = vrot.slane %v731_v20, %v5437_v27  ;;  %v1698_v26 = vrot.slane %v731_v20, %v5443_v38  ;;  %8165 = vst [vmem:[#allocation52_spill] sm:$0xff] %v5862_v58 }
 0x32a   : > { %v1030_v28 = vsel %vm921_vm6, %v1029_v35, %v1025_v3  ;;  %v1868_v17 = vrot.slane %v731_v20, %v5446_v51  ;;  %v2038_v32 = vrot.slane %v731_v20, %v5449_v43  ;;  %v2477_v14 = vrot.slane %v5836_v10, %v5460_v4 }
 0x32b   : > { %v5866_v33 = vsel %vm8042_vm1, %v1030_v28, %v5674_v18  ;;  %v1203_v62 = vsel %vm1094_vm7, %v1202_v2, %v1198_v22  ;;  %v1370_v42 = vsel %vm8050_vm8, %v1369_v7, %v1365_v31  ;;  %v1536_v15 = vsel %vm8049_vm9, %v1535_v40, %v1531_v24 }
 0x32c   : > { %v5873_v35 = vsel %vm8042_vm1, %v1203_v62, %v5677_v21  ;;  %v5877_v20 = vsel %vm8042_vm1, %v1370_v42, %v5680_v63  ;;  %v5881_v3 = vsel %vm8042_vm1, %v1536_v15, %v5683_v12  ;;  %v5884_v18 = vsel %vm1594_vm10, %v1702_v46, %v1698_v26  ;;  %v804_v63 = vpop.xlane.xlu1 %803  ;;  %v801_v26 = vpop.xlane.xlu0 %800 }
 0x32d   : > { %8166 = vst [vmem:[#allocation53_spill] sm:$0xff] %v5884_v18  ;;  %v5887_v2 = vmul.f32 0.03125, %v5584_v55  ;;  %v5890_v7 = vsel %vm1764_vm11, %v1872_v59, %v1868_v17  ;;  %v5893_v21 = vsel %vm1934_vm12, %v2042_v53, %v2038_v32  ;;  %v2640_v42 = vrot.slane %v5836_v10, %v5463_v61 }
 0x32e   : > { %8167 = vst [vmem:[#allocation54_spill] sm:$0xff] %v5890_v7  ;;  %8168 = vst [vmem:[#allocation55_spill] sm:$0xff] %v5893_v21  ;;  %v2803_v12 = vrot.slane %v5836_v10, %v5466_v60  ;;  %v2147_v15 = vrot.slane %v5862_v58, %v5431_v36  ;;  %v2310_v55 = vrot.slane %v5862_v58, %v5434_v37 }
 0x32f   : > { %v2473_v62 = vrot.slane %v5862_v58, %v5440_v25  ;;  %v939_v40 = vrot.slane %v5839_v34, %v5452_v47  ;;  %v2636_v46 = vrot.slane %v5862_v58, %v5437_v27  ;;  %v2799_v59 = vrot.slane %v5862_v58, %v5443_v38 }
 0x330   : > { %v1112_v53 = vrot.slane %v5839_v34, %v5455_v41  ;;  %v2152_v22 = vsel %vm921_vm6, %v2151_v57, %v2147_v15  ;;  %v2315_v31 = vsel %vm1094_vm7, %v2314_v6, %v2310_v55  ;;  %v1279_v57 = vrot.slane %v5839_v34, %v5460_v4  ;;  %v5946_v55 = vpop.xlane.xlu1 %644  ;;  %v5960_v7 = vpop.xlane.xlu0 %641 }
 0x331   : > { %v2478_v24 = vsel %vm8050_vm8, %v2477_v14, %v2473_v62  ;;  %v5918_v28 = vsel %vm8044_vm14, %v2152_v22, %v5744_v23  ;;  %v5922_v17 = vsel %vm8044_vm14, %v2315_v31, %v5750_v13  ;;  %v2641_v21 = vsel %vm8049_vm9, %v2640_v42, %v2636_v46  ;;  %8170 = vst [vmem:[#allocation57_spill] sm:$0xff] %v5946_v55 }
 0x332   : > { %v5926_v32 = vsel %vm8044_vm14, %v2478_v24, %v5753_v0  ;;  %v935_v14 = vrot.slane %v5887_v2, %v5431_v36  ;;  %v5935_v23 = vsel %vm8044_vm14, %v2641_v21, %v5756_v5  ;;  %v2804_v6 = vsel %vm1594_vm10, %v2803_v12, %v2799_v59  ;;  %8171 = vst [vmem:[#allocation58_spill] sm:$0xff] %v5960_v7 }
 0x333   : > { %v1108_v13 = vrot.slane %v5887_v2, %v5434_v37  ;;  %v5942_v0 = vsel %vm8043_vm15, %v2804_v6, %v5760_v44  ;;  %v2223_v42 = vrot.slane %v804_v63, %v5452_v47  ;;  %v2386_v15 = vrot.slane %v804_v63, %v5455_v41 }
 0x334   : > { %8169 = vst [vmem:[#allocation56_spill] sm:$0xff] %v5942_v0  ;;  %v2549_v62 = vrot.slane %v804_v63, %v5460_v4  ;;  %v2712_v5 = vrot.slane %v804_v63, %v5463_v61  ;;  %v2875_v21 = vrot.slane %v804_v63, %v5466_v60  ;;  %v3039_v12 = vrot.slane %v804_v63, %v5469_v48 }
 0x335   : > { %v3203_v46 = vrot.slane %v804_v63, %v5472_v49  ;;  %v2219_v59 = vrot.slane %v801_v26, %v5431_v36  ;;  %v2382_v44 = vrot.slane %v801_v26, %v5434_v37  ;;  %v2545_v22 = vrot.slane %v801_v26, %v5440_v25 }
 0x336   : > { %v2708_v31 = vrot.slane %v801_v26, %v5437_v27  ;;  %v2871_v24 = vrot.slane %v801_v26, %v5443_v38  ;;  %v3035_v6 = vrot.slane %v801_v26, %v5446_v51  ;;  %v3199_v0 = vrot.slane %v801_v26, %v5449_v43 }
 0x337   : > { %v1275_v18 = vrot.slane %v5887_v2, %v5440_v25  ;;  %v2224_v63 = vsel %vm921_vm6, %v2223_v42, %v2219_v59  ;;  %v2387_v55 = vsel %vm1094_vm7, %v2386_v15, %v2382_v44  ;;  %v2550_v58 = vsel %vm8050_vm8, %v2549_v62, %v2545_v22 }
 0x338   : > { %v5969_v10 = vsel %vm8044_vm14, %v2224_v63, %v5816_v8  ;;  %v5973_v9 = vsel %vm8044_vm14, %v2387_v55, %v5819_v39  ;;  %v5977_v26 = vsel %vm8044_vm14, %v2550_v58, %v5822_v29  ;;  %v2713_v7 = vsel %vm8049_vm9, %v2712_v5, %v2708_v31  ;;  %v693_v39 = vpop.xlane.xlu1 %692  ;;  %v690_v5 = vpop.xlane.xlu0 %689 }
 0x339   : > { %v5982_v42 = vsel %vm8044_vm14, %v2713_v7, %v5825_v56  ;;  %v5985_v15 = vsel %vm1594_vm10, %v2875_v21, %v2871_v24  ;;  %v5988_v8 = vsel %vm1764_vm11, %v3039_v12, %v3035_v6  ;;  %v5991_v62 = vsel %vm1934_vm12, %v3203_v46, %v3199_v0 }
 0x33a   : > { %8172 = vst [vmem:[#allocation59_spill] sm:$0xff] %v5985_v15  ;;  %8173 = vst [vmem:[#allocation60_spill] sm:$0xff] %v5988_v8  ;;  %v1445_v29 = vrot.slane %v5839_v34, %v5463_v61  ;;  %v1441_v58 = vrot.slane %v5887_v2, %v5437_v27  ;;  %v1612_v56 = vrot.slane %v5839_v34, %v5466_v60  ;;  %v734_v59 = vmul.f32 0.03125, %v693_v39 }
 0x33b   : > { %8174 = vst [vmem:[#allocation61_spill] sm:$0xff] %v5991_v62  ;;  %v1782_v7 = vrot.slane %v5839_v34, %v5469_v48  ;;  %v1608_v55 = vrot.slane %v5887_v2, %v5443_v38  ;;  %v1778_v0 = vrot.slane %v5887_v2, %v5446_v51  ;;  %v940_v21 = vsel %vm921_vm6, %v939_v40, %v935_v14 }
 0x33c   : > { %v1113_v12 = vsel %vm1094_vm7, %v1112_v53, %v1108_v13  ;;  %v1280_v46 = vsel %vm8050_vm8, %v1279_v57, %v1275_v18  ;;  %v1446_v44 = vsel %vm8049_vm9, %v1445_v29, %v1441_v58  ;;  %v1952_v22 = vrot.slane %v5839_v34, %v5472_v49  ;;  %v6014_v6 = vpop.xlane.xlu1 %761  ;;  %v6066_v8 = vpop.xlane.xlu0 %758 }
 0x33d   : > { %v6012_v31 = vmul.f32 0.03125, %v5606_v1  ;;  %v733_v24 = vmul.f32 0.03125, %v690_v5  ;;  %v6018_v40 = vsel %vm8044_vm14, %v940_v21, %v5512_v30  ;;  %v6022_v18 = vsel %vm8044_vm14, %v1113_v12, %v5524_v11 }
 0x33e   : > { %v6026_v53 = vsel %vm8044_vm14, %v1280_v46, %v5527_v50  ;;  %v1948_v34 = vrot.slane %v5887_v2, %v5449_v43  ;;  %v6032_v1 = vsel %vm8044_vm14, %v1446_v44, %v5530_v52  ;;  %v6035_v57 = vsel %vm1594_vm10, %v1612_v56, %v1608_v55 }
 0x33f   : > { %v6038_v30 = vsel %vm1764_vm11, %v1782_v7, %v1778_v0  ;;  %v1038_v11 = vrot.slane %v734_v59, %v5452_v47  ;;  %v1211_v14 = vrot.slane %v734_v59, %v5455_v41  ;;  %v1378_v50 = vrot.slane %v734_v59, %v5460_v4 }
 0x340   : > { %v1544_v13 = vrot.slane %v734_v59, %v5463_v61  ;;  %v2160_v2 = vrot.slane %v6014_v6, %v5452_v47  ;;  %v1711_v52 = vrot.slane %v734_v59, %v5466_v60  ;;  %v1881_v63 = vrot.slane %v734_v59, %v5469_v48 }
 0x341   : > { %v2051_v39 = vrot.slane %v734_v59, %v5472_v49  ;;  %v1034_v29 = vrot.slane %v733_v24, %v5431_v36  ;;  %v1207_v58 = vrot.slane %v733_v24, %v5434_v37  ;;  %v1374_v56 = vrot.slane %v733_v24, %v5440_v25 }
 0x342   : > { %v1540_v7 = vrot.slane %v733_v24, %v5437_v27  ;;  %v1707_v55 = vrot.slane %v733_v24, %v5443_v38  ;;  %v1877_v5 = vrot.slane %v733_v24, %v5446_v51  ;;  %v2047_v21 = vrot.slane %v733_v24, %v5449_v43 }
 0x343   : > { %v1039_v0 = vsel %vm921_vm6, %v1038_v11, %v1034_v29  ;;  %v2323_v12 = vrot.slane %v6014_v6, %v5455_v41  ;;  %v1212_v59 = vsel %vm1094_vm7, %v1211_v14, %v1207_v58  ;;  %v1379_v44 = vsel %vm8050_vm8, %v1378_v50, %v1374_v56 }
 0x344   : > { %v6061_v46 = vsel %vm1066_vm2, %v1039_v0, %v5866_v33  ;;  %v1545_v62 = vsel %vm8049_vm9, %v1544_v13, %v1540_v7  ;;  %v6070_v11 = vsel %vm1066_vm2, %v1212_v59, %v5873_v35  ;;  %v6074_v24 = vsel %vm1066_vm2, %v1379_v44, %v5877_v20 }
 0x345   : > { %8175 = vst [vmem:[#allocation62_spill] sm:$0xff] %v6061_v46  ;;  %8176 = vst [vmem:[#allocation63_spill] sm:$0xff] %v6070_v11  ;;  %v6078_v33 = vsel %vm1066_vm2, %v1545_v62, %v5881_v3  ;;  %v6081_v14 = vsel %vm1594_vm10, %v1711_v52, %v1707_v55  ;;  %v6084_v50 = vsel %vm1764_vm11, %v1881_v63, %v1877_v5  ;;  %v6095_v3 = vmul.f32 0.03125, %v5625_v16  ;;  %v810_v55 = vpop.xlane.xlu1 %809 }
 0x346   : > { %8177 = vst [vmem:[#allocation64_spill] sm:$0xff] %v6074_v24  ;;  %8178 = vst [vmem:[#allocation65_spill] sm:$0xff] %v6078_v33  ;;  %v6087_v13 = vsel %vm1934_vm12, %v2051_v39, %v2047_v21  ;;  %v2486_v35 = vrot.slane %v6014_v6, %v5460_v4  ;;  %v2649_v20 = vrot.slane %v6014_v6, %v5463_v61 }
 0x347   : > { %8179 = vst [vmem:[#allocation66_spill] sm:$0xff] %v6081_v14  ;;  %8180 = vst [vmem:[#allocation67_spill] sm:$0xff] %v6084_v50  ;;  %v1953_v29 = vsel %vm1934_vm12, %v1952_v22, %v1948_v34  ;;  %v2156_v62 = vrot.slane %v6066_v8, %v5431_v36  ;;  %v2319_v52 = vrot.slane %v6066_v8, %v5434_v37 }
 0x348   : > { %8181 = vst [vmem:[#allocation68_spill] sm:$0xff] %v6087_v13  ;;  %v948_v63 = vrot.slane %v6012_v31, %v5452_v47  ;;  %v1121_v39 = vrot.slane %v6012_v31, %v5455_v41  ;;  %v2482_v58 = vrot.slane %v6066_v8, %v5440_v25  ;;  %v2645_v22 = vrot.slane %v6066_v8, %v5437_v27 }
 0x349   : > { %v1288_v16 = vrot.slane %v6012_v31, %v5460_v4  ;;  %v1454_v34 = vrot.slane %v6012_v31, %v5463_v61  ;;  %v2161_v56 = vsel %vm921_vm6, %v2160_v2, %v2156_v62  ;;  %v2324_v7 = vsel %vm1094_vm7, %v2323_v12, %v2319_v52 }
 0x34a   : > { %v6117_v0 = vsel %vm8043_vm15, %v2161_v56, %v5918_v28  ;;  %v6121_v5 = vsel %vm8043_vm15, %v2324_v7, %v5922_v17  ;;  %v2487_v21 = vsel %vm8050_vm8, %v2486_v35, %v2482_v58  ;;  %v2650_v59 = vsel %vm8049_vm9, %v2649_v20, %v2645_v22  ;;  %v807_v17 = vpop.xlane.xlu0 %806 }
 0x34b   : > { %8182 = vst [vmem:[#allocation69_spill] sm:$0xff] %v6117_v0  ;;  %8183 = vst [vmem:[#allocation70_spill] sm:$0xff] %v6121_v5  ;;  %v1621_v44 = vrot.slane %v6012_v31, %v5466_v60  ;;  %v944_v2 = vrot.slane %v6095_v3, %v5431_v36  ;;  %v6131_v12 = vsel %vm8043_vm15, %v2487_v21, %v5926_v32 }
 0x34c   : > { %8184 = vst [vmem:[#allocation71_spill] sm:$0xff] %v6131_v12  ;;  %v6135_v28 = vsel %vm8043_vm15, %v2650_v59, %v5935_v23  ;;  %v1117_v35 = vrot.slane %v6095_v3, %v5434_v37  ;;  %v1284_v20 = vrot.slane %v6095_v3, %v5440_v25  ;;  %v2232_v62 = vrot.slane %v810_v55, %v5452_v47 }
 0x34d   : > { %8185 = vst [vmem:[#allocation72_spill] sm:$0xff] %v6135_v28  ;;  %v2395_v52 = vrot.slane %v810_v55, %v5455_v41  ;;  %v1450_v58 = vrot.slane %v6095_v3, %v5437_v27  ;;  %v2558_v32 = vrot.slane %v810_v55, %v5460_v4  ;;  %v2721_v22 = vrot.slane %v810_v55, %v5463_v61 }
 0x34e   : > { %v2884_v23 = vrot.slane %v810_v55, %v5466_v60  ;;  %v3048_v56 = vrot.slane %v810_v55, %v5469_v48  ;;  %v3212_v7 = vrot.slane %v810_v55, %v5472_v49  ;;  %v2228_v21 = vrot.slane %v807_v17, %v5431_v36 }
 0x34f   : > { %v2391_v59 = vrot.slane %v807_v17, %v5434_v37  ;;  %v2554_v13 = vrot.slane %v807_v17, %v5440_v25  ;;  %v2717_v15 = vrot.slane %v807_v17, %v5437_v27  ;;  %v2880_v33 = vrot.slane %v807_v17, %v5443_v38 }
 0x350   : > { %v3044_v24 = vrot.slane %v807_v17, %v5446_v51  ;;  %v1617_v11 = vrot.slane %v6095_v3, %v5443_v38  ;;  %v2233_v46 = vsel %vm921_vm6, %v2232_v62, %v2228_v21  ;;  %v3208_v55 = vrot.slane %v807_v17, %v5449_v43 }
 0x351   : > { %v2396_v50 = vsel %vm1094_vm7, %v2395_v52, %v2391_v59  ;;  %v6163_v14 = vsel %vm8043_vm15, %v2233_v46, %v5969_v10  ;;  %v2559_v12 = vsel %vm8050_vm8, %v2558_v32, %v2554_v13  ;;  %v2722_v5 = vsel %vm8049_vm9, %v2721_v22, %v2717_v15  ;;  %v8193_v22 = vld [vmem:[#allocation37_spill] sm:$0xff] }
 0x352   : > { %v6167_v28 = vsel %vm8043_vm15, %v2396_v50, %v5973_v9  ;;  %v6173_v0 = vsel %vm8043_vm15, %v2559_v12, %v5977_v26  ;;  %v6177_v62 = vsel %vm8043_vm15, %v2722_v5, %v5982_v42  ;;  %v6180_v17 = vsel %vm1594_vm10, %v2884_v23, %v2880_v33  ;;  %v6185_v9 = vpop.xlane.xlu1 %650  ;;  %v8189_v50 = vld [vmem:[#allocation44_spill] sm:$0xff]  ;;  %v8194_v23 = vld [vmem:[#allocation41_spill] sm:$0xff] }
 0x353   : > { %8186 = vst [vmem:[#allocation73_spill] sm:$0xff] %v6180_v17  ;;  %v6183_v10 = vsel %vm1764_vm11, %v3048_v56, %v3044_v24  ;;  %v1732_v15 = vsel %vm8043_vm15, %v6035_v57, %v5534_v45  ;;  %v1902_v26 = vsel %vm8042_vm1, %v6038_v30, %v5540_v19  ;;  %v949_v42 = vsel %vm921_vm6, %v948_v63, %v944_v2  ;;  %v8190_v45 = vld [vmem:[#allocation47_spill] sm:$0xff] }
 0x354   : > { %8187 = vst [vmem:[#allocation74_spill] sm:$0xff] %v6183_v10  ;;  %v6195_v46 = vsel %vm1934_vm12, %v3212_v7, %v3208_v55  ;;  %v2072_v24 = vsel %vm1066_vm2, %v1953_v29, %v5543_v54  ;;  %v1791_v33 = vrot.slane %v6012_v31, %v5469_v48  ;;  %v6202_v13 = vmul.f32 0.03125, %v8189_v50  ;;  %v6214_v29 = vpop.xlane.xlu0 %647 }
 0x355   : > { %8188 = vst [vmem:[#allocation75_spill] sm:$0xff] %v6195_v46  ;;  %v6205_v57 = vmul.f32 0.03125, %v8190_v45  ;;  %v1961_v19 = vrot.slane %v6012_v31, %v5472_v49  ;;  %v1122_v30 = vsel %vm1094_vm7, %v1121_v39, %v1117_v35  ;;  %v1787_v63 = vrot.slane %v6095_v3, %v5446_v51  ;;  %v8191_v31 = vld [vmem:[#allocation35_spill] sm:$0xff]  ;;  %v8192_v35 = vld [vmem:[#allocation36_spill] sm:$0xff] }
 0x356   : > { %v1957_v54 = vrot.slane %v6095_v3, %v5449_v43  ;;  %v1063_v5 = vsel %vm8043_vm15, %v949_v42, %v6018_v40  ;;  %v1289_v2 = vsel %vm8050_vm8, %v1288_v16, %v1284_v20  ;;  %v1455_v12 = vsel %vm8049_vm9, %v1454_v34, %v1450_v58 }
 0x357   : > { %v1622_v52 = vsel %vm1594_vm10, %v1621_v44, %v1617_v11  ;;  %v3113_v39 = vrot.slane %v8191_v31, %v5472_v49  ;;  %v3109_v32 = vrot.slane %v8192_v35, %v5449_v43  ;;  %v3122_v3 = vrot.slane %v8193_v22, %v5472_v49  ;;  %v6237_v44 = vpop.xlane.xlu1 %698 }
 0x358   : > { %v3118_v56 = vrot.slane %v8194_v23, %v5449_v43  ;;  %v957_v40 = vrot.slane %v6202_v13, %v5452_v47  ;;  %v1130_v16 = vrot.slane %v6202_v13, %v5455_v41  ;;  %v953_v11 = vrot.slane %v6205_v57, %v5431_v36  ;;  %v6260_v23 = vpop.xlane.xlu0 %695 }
 0x359   : > { %v1126_v34 = vrot.slane %v6205_v57, %v5434_v37  ;;  %v1297_v20 = vrot.slane %v6202_v13, %v5460_v4  ;;  %v1463_v58 = vrot.slane %v6202_v13, %v5463_v61  ;;  %v1293_v7 = vrot.slane %v6205_v57, %v5440_v25 }
 0x35a   : > { %v1459_v21 = vrot.slane %v6205_v57, %v5437_v27  ;;  %v1233_v59 = vsel %vm8043_vm15, %v1122_v30, %v6022_v18  ;;  %v1400_v55 = vsel %vm8043_vm15, %v1289_v2, %v6026_v53  ;;  %v1566_v42 = vsel %vm8043_vm15, %v1455_v12, %v6032_v1  ;;  %v8196_v2 = vld [vmem:[#allocation52_spill] sm:$0xff] }
 0x35b   : > { %v1792_v50 = vsel %vm1764_vm11, %v1791_v33, %v1787_v63  ;;  %v1962_v45 = vsel %vm1934_vm12, %v1961_v19, %v1957_v54  ;;  %v3123_v31 = vsel %vm1934_vm12, %v3122_v3, %v3118_v56  ;;  %v1970_v35 = vrot.slane %v6202_v13, %v5472_v49  ;;  %v8195_v63 = vld [vmem:[#allocation51_spill] sm:$0xff] }
 0x35c   : > { %v1966_v22 = vrot.slane %v6205_v57, %v5449_v43  ;;  %v1733_v18 = vsel %vm8042_vm1, %v1622_v52, %v1732_v15  ;;  %v3114_v53 = vsel %vm1934_vm12, %v3113_v39, %v3109_v32  ;;  %v958_v1 = vsel %vm921_vm6, %v957_v40, %v953_v11  ;;  %v6279_v32 = vpop.xlane.xlu1 %767 }
 0x35d   : > { %v1131_v33 = vsel %vm1094_vm7, %v1130_v16, %v1126_v34  ;;  %v1298_v19 = vsel %vm8050_vm8, %v1297_v20, %v1293_v7  ;;  %v1464_v30 = vsel %vm8049_vm9, %v1463_v58, %v1459_v21  ;;  %v3131_v54 = vrot.slane %v8195_v63, %v5472_v49  ;;  %v6307_v7 = vpop.xlane.xlu0 %764 }
 0x35e   : > { %v3127_v12 = vrot.slane %v8196_v2, %v5449_v43  ;;  %v6273_v3 = vsel %vm1066_vm2, %v1792_v50, %v1902_v26  ;;  %v2073_v15 = vsel %vm1068_vm3, %v1962_v45, %v2072_v24  ;;  %v3250_v52 = vsel %vm8042_vm1, %v3123_v31, %v3114_v53 }
 0x35f   : > { %v1630_v39 = vrot.slane %v6202_v13, %v5466_v60  ;;  %v1800_v56 = vrot.slane %v6202_v13, %v5469_v48  ;;  %v1626_v40 = vrot.slane %v6205_v57, %v5443_v38  ;;  %v1796_v16 = vrot.slane %v6205_v57, %v5446_v51 }
 0x360   : > { %v1971_v26 = vsel %vm1934_vm12, %v1970_v35, %v1966_v22  ;;  %v6289_v24 = vsel %vm8042_vm1, %v958_v1, %v1063_v5  ;;  %v6292_v11 = vsel %vm8042_vm1, %v1131_v33, %v1233_v59  ;;  %v6295_v34 = vsel %vm8042_vm1, %v1298_v19, %v1400_v55  ;;  %v8197_v19 = vld [vmem:[#allocation57_spill] sm:$0xff] }
 0x361   : > { %v6298_v20 = vsel %vm8042_vm1, %v1464_v30, %v1566_v42  ;;  %v3132_v13 = vsel %vm1934_vm12, %v3131_v54, %v3127_v12  ;;  %v3140_v58 = vrot.slane %v6014_v6, %v5472_v49  ;;  %v3136_v57 = vrot.slane %v6066_v8, %v5449_v43 }
 0x362   : > { %v2169_v5 = vrot.slane %v6279_v32, %v5452_v47  ;;  %v2332_v21 = vrot.slane %v6279_v32, %v5455_v41  ;;  %v2495_v59 = vrot.slane %v6279_v32, %v5460_v4  ;;  %v2658_v55 = vrot.slane %v6279_v32, %v5463_v61 }
 0x363   : > { %v2074_v42 = vsel %vm1070_vm4, %v1971_v26, %v2073_v15  ;;  %v1631_v50 = vsel %vm1594_vm10, %v1630_v39, %v1626_v40  ;;  %v6318_v45 = vsel %vm1764_vm11, %v1800_v56, %v1796_v16  ;;  %v3149_v31 = vrot.slane %v6279_v32, %v5472_v49  ;;  %v6342_v16 = vpop.xlane.xlu1 %815  ;;  %v8199_v26 = vld [vmem:[#allocation69_spill] sm:$0xff] }
 0x364   : > { %2089 = vst.msk [vmem:[#allocation2 + $0x90] sm:$0xf8] %vm2088_vm5, %v2074_v42  ;;  %v2165_v35 = vrot.slane %v6307_v7, %v5431_v36  ;;  %v2328_v22 = vrot.slane %v6307_v7, %v5434_v37  ;;  %v2491_v53 = vrot.slane %v6307_v7, %v5440_v25  ;;  %v2654_v1 = vrot.slane %v6307_v7, %v5437_v27 }
 0x365   : > { %v3251_v33 = vsel %vm1066_vm2, %v3132_v13, %v3250_v52  ;;  %v6333_v30 = vmul.f32 0.03125, %v8197_v19  ;;  %v3141_v54 = vsel %vm1934_vm12, %v3140_v58, %v3136_v57  ;;  %v3145_v12 = vrot.slane %v6307_v7, %v5449_v43  ;;  %8198 = vst [vmem:[#allocation44_spill] sm:$0xff] %v6342_v16  ;;  %v8201_v13 = vld [vmem:[#allocation70_spill] sm:$0xff]  ;;  %v8203_v57 = vld [vmem:[#allocation71_spill] sm:$0xff] }
 0x366   : > { %v2170_v15 = vsel %vm921_vm6, %v2169_v5, %v2165_v35  ;;  %v2333_v39 = vsel %vm1094_vm7, %v2332_v21, %v2328_v22  ;;  %v2496_v56 = vsel %vm8050_vm8, %v2495_v59, %v2491_v53  ;;  %v2659_v40 = vsel %vm8049_vm9, %v2658_v55, %v2654_v1  ;;  %v8205_v5 = vld [vmem:[#allocation72_spill] sm:$0xff]  ;;  %v6360_v59 = vpop.xlane.xlu0 %812 }
 0x367   : > { %v6346_v52 = vsel %vm8042_vm1, %v2170_v15, %v8199_v26  ;;  %v6350_v58 = vsel %vm8042_vm1, %v2333_v39, %v8201_v13  ;;  %v6354_v42 = vsel %vm8042_vm1, %v2496_v56, %v8203_v57  ;;  %v6358_v21 = vsel %vm8042_vm1, %v2659_v40, %v8205_v5  ;;  %8207 = vst [vmem:[#allocation41_spill] sm:$0xff] %v6360_v59  ;;  %v8208_v40 = vld [vmem:[#allocation58_spill] sm:$0xff]  ;;  %v657_v5 = vpop.xlane.xlu1 %656 }
 0x368   : > { %8200 = vst [vmem:[#allocation47_spill] sm:$0xff] %v6346_v52  ;;  %8202 = vst [vmem:[#allocation35_spill] sm:$0xff] %v6350_v58  ;;  %v6363_v55 = vsel %vm1066_vm2, %v1631_v50, %v1733_v18  ;;  %v2967_v35 = vrot.slane %v8195_v63, %v5469_v48  ;;  %v3252_v22 = vsel %vm1068_vm3, %v3141_v54, %v3251_v33  ;;  %v717_v26 = vmul.f32 0.03125, %v8208_v40 }
 0x369   : > { %8204 = vst [vmem:[#allocation36_spill] sm:$0xff] %v6354_v42  ;;  %8206 = vst [vmem:[#allocation37_spill] sm:$0xff] %v6358_v21  ;;  %v3150_v53 = vsel %vm1934_vm12, %v3149_v31, %v3145_v12  ;;  %v2241_v19 = vrot.slane %v6342_v16, %v5452_v47  ;;  %v2404_v15 = vrot.slane %v6342_v16, %v5455_v41  ;;  %v6397_v13 = vmul.f32 0.03125, %v6185_v9 }
 0x36a   : > { %v3253_v1 = vsel %vm1070_vm4, %v3150_v53, %v3252_v22  ;;  %v2567_v39 = vrot.slane %v6342_v16, %v5460_v4  ;;  %v2963_v18 = vrot.slane %v8196_v2, %v5446_v51  ;;  %v966_v63 = vrot.slane %v6333_v30, %v5452_v47  ;;  %v654_v10 = vpop.xlane.xlu0 %653 }
 0x36b   : > { %v1139_v50 = vrot.slane %v6333_v30, %v5455_v41  ;;  %3267 = vst.msk [vmem:[#allocation2 + $0x138] sm:$0xf8] %vm2088_vm5, %v3253_v1  ;;  %v2730_v31 = vrot.slane %v6342_v16, %v5463_v61  ;;  %v2237_v33 = vrot.slane %v6360_v59, %v5431_v36  ;;  %v2400_v54 = vrot.slane %v6360_v59, %v5434_v37 }
 0x36c   : > { %v2563_v2 = vrot.slane %v6360_v59, %v5440_v25  ;;  %v2726_v12 = vrot.slane %v6360_v59, %v5437_v27  ;;  %v1306_v56 = vrot.slane %v6333_v30, %v5460_v4  ;;  %v6400_v57 = vmul.f32 0.03125, %v6214_v29 }
 0x36d   : > { %v2242_v22 = vsel %vm921_vm6, %v2241_v19, %v2237_v33  ;;  %v2405_v53 = vsel %vm1094_vm7, %v2404_v15, %v2400_v54  ;;  %v1472_v15 = vrot.slane %v6333_v30, %v5463_v61  ;;  %v962_v33 = vrot.slane %v717_v26, %v5431_v36 }
 0x36e   : > { %v2568_v1 = vsel %vm8050_vm8, %v2567_v39, %v2563_v2  ;;  %v2731_v46 = vsel %vm8049_vm9, %v2730_v31, %v2726_v12  ;;  %v6408_v17 = vsel %vm8042_vm1, %v2242_v22, %v6163_v14  ;;  %v6412_v9 = vsel %vm8042_vm1, %v2405_v53, %v6167_v28 }
 0x36f   : > { %8209 = vst [vmem:[#allocation51_spill] sm:$0xff] %v6408_v17  ;;  %8210 = vst [vmem:[#allocation52_spill] sm:$0xff] %v6412_v9  ;;  %v6416_v29 = vsel %vm8042_vm1, %v2568_v1, %v6173_v0  ;;  %v6420_v19 = vsel %vm8042_vm1, %v2731_v46, %v6177_v62  ;;  %v1639_v39 = vrot.slane %v6333_v30, %v5466_v60  ;;  %v6428_v31 = vmul.f32 0.03125, %v657_v5 }
 0x370   : > { %8211 = vst [vmem:[#allocation57_spill] sm:$0xff] %v6416_v29  ;;  %8212 = vst [vmem:[#allocation69_spill] sm:$0xff] %v6420_v19  ;;  %v1809_v14 = vrot.slane %v6333_v30, %v5469_v48  ;;  %v1979_v28 = vrot.slane %v6333_v30, %v5472_v49  ;;  %v1988_v0 = vrot.slane %v6397_v13, %v5472_v49  ;;  %v6436_v46 = vmul.f32 0.03125, %v654_v10 }
 0x371   : > { %8213 = vst [vmem:[#allocation70_spill] sm:$0xff] %v6428_v31  ;;  %v1984_v62 = vrot.slane %v6400_v57, %v5449_v43  ;;  %v1135_v54 = vrot.slane %v717_v26, %v5434_v37  ;;  %v1302_v2 = vrot.slane %v717_v26, %v5440_v25  ;;  %v1468_v12 = vrot.slane %v717_v26, %v5437_v27 }
 0x372   : > { %8214 = vst [vmem:[#allocation71_spill] sm:$0xff] %v6436_v46  ;;  %v1635_v40 = vrot.slane %v717_v26, %v5443_v38  ;;  %v1975_v30 = vrot.slane %v717_v26, %v5449_v43  ;;  %v1818_v5 = vrot.slane %v6397_v13, %v5469_v48  ;;  %v1814_v22 = vrot.slane %v6400_v57, %v5446_v51 }
 0x373   : > { %v1805_v10 = vrot.slane %v717_v26, %v5446_v51  ;;  %v1657_v53 = vrot.slane %v6428_v31, %v5466_v60  ;;  %v1827_v1 = vrot.slane %v6428_v31, %v5469_v48  ;;  %v1997_v19 = vrot.slane %v6428_v31, %v5472_v49 }
 0x374   : > { %v1989_v29 = vsel %vm1934_vm12, %v1988_v0, %v1984_v62  ;;  %v1653_v9 = vrot.slane %v6436_v46, %v5443_v38  ;;  %v1823_v17 = vrot.slane %v6436_v46, %v5446_v51  ;;  %v1993_v26 = vrot.slane %v6436_v46, %v5449_v43 }
 0x375   : > { %v2968_v21 = vsel %vm1764_vm11, %v2967_v35, %v2963_v18  ;;  %v967_v42 = vsel %vm921_vm6, %v966_v63, %v962_v33  ;;  %v1140_v58 = vsel %vm1094_vm7, %v1139_v50, %v1135_v54  ;;  %v1307_v52 = vsel %vm8050_vm8, %v1306_v56, %v1302_v2  ;;  %v8215_v50 = vld [vmem:[#allocation26_spill] sm:$0xff]  ;;  %v8216_v33 = vld [vmem:[#allocation29_spill] sm:$0xff]  ;;  %v8218_v54 = vld [vmem:[#allocation28_spill] sm:$0xff] }
 0x376   : > { %v1473_v31 = vsel %vm8049_vm9, %v1472_v15, %v1468_v12  ;;  %v1640_v0 = vsel %vm1594_vm10, %v1639_v39, %v1635_v40  ;;  %v1980_v62 = vsel %vm1934_vm12, %v1979_v28, %v1975_v30  ;;  %v1819_v59 = vsel %vm1764_vm11, %v1818_v5, %v1814_v22  ;;  %v8220_v2 = vld [vmem:[#allocation30_spill] sm:$0xff]  ;;  %v8221_v12 = vld [vmem:[#allocation31_spill] sm:$0xff] }
 0x377   : > { %v2075_v16 = vsel %vm1058_vm13, %v1989_v29, %v1980_v62  ;;  %v1658_v46 = vsel %vm1594_vm10, %v1657_v53, %v1653_v9  ;;  %v1828_v35 = vsel %vm1764_vm11, %v1827_v1, %v1823_v17  ;;  %v1998_v18 = vsel %vm1934_vm12, %v1997_v19, %v1993_v26  ;;  %v8217_v9 = vld [vmem:[#allocation27_spill] sm:$0xff]  ;;  %v8222_v5 = vld [vmem:[#allocation38_spill] sm:$0xff]  ;;  %v8225_v62 = vld [vmem:[#allocation53_spill] sm:$0xff] }
 0x378   : > { %v1810_v63 = vsel %vm1764_vm11, %v1809_v14, %v1805_v10  ;;  %v1737_v56 = vsel %vm1058_vm13, %v8215_v50, %v1658_v46  ;;  %v1906_v15 = vsel %vm1058_vm13, %v1828_v35, %v1819_v59  ;;  %v2076_v39 = vsel %vm8044_vm14, %v1998_v18, %v2075_v16  ;;  %v8219_v46 = vld [vmem:[#allocation32_spill] sm:$0xff]  ;;  %v8223_v10 = vld [vmem:[#allocation33_spill] sm:$0xff]  ;;  %v8224_v1 = vld [vmem:[#allocation34_spill] sm:$0xff] }
 0x379   : > { %v2812_v28 = vrot.slane %v6014_v6, %v5466_v60  ;;  %v1738_v29 = vsel %vm8044_vm14, %v8216_v33, %v1737_v56  ;;  %v1907_v17 = vsel %vm8044_vm14, %v8217_v9, %v1906_v15  ;;  %v2077_v19 = vsel %vm8043_vm15, %v8218_v54, %v2076_v39  ;;  %v8226_v18 = vld [vmem:[#allocation39_spill] sm:$0xff]  ;;  %v8227_v56 = vld [vmem:[#allocation40_spill] sm:$0xff]  ;;  %v6513_v39 = vpop.xlane.xlu1 %704  ;;  %v8231_v54 = vld [vmem:[#allocation54_spill] sm:$0xff] }
 0x37a   : > { %v2976_v14 = vrot.slane %v6014_v6, %v5469_v48  ;;  %v1739_v59 = vsel %vm8043_vm15, %v8219_v46, %v1738_v29  ;;  %v1908_v16 = vsel %vm8043_vm15, %v8220_v2, %v1907_v17  ;;  %v2078_v40 = vsel %vm8042_vm1, %v8221_v12, %v2077_v19  ;;  %v8228_v29 = vld [vmem:[#allocation42_spill] sm:$0xff]  ;;  %v6526_v46 = vpop.xlane.xlu0 %701 }
 0x37b   : > { %v2972_v30 = vrot.slane %v6066_v8, %v5446_v51  ;;  %v1740_v22 = vsel %vm8042_vm1, %v8222_v5, %v1739_v59  ;;  %v1909_v53 = vsel %vm8042_vm1, %v8223_v10, %v1908_v16  ;;  %v2079_v6 = vsel %vm1066_vm2, %v8224_v1, %v2078_v40 }
 0x37c   : > { %v2808_v26 = vrot.slane %v6066_v8, %v5443_v38  ;;  %v1741_v35 = vsel %vm1066_vm2, %v8225_v62, %v1740_v22  ;;  %v1910_v50 = vsel %vm1066_vm2, %v8226_v18, %v1909_v53  ;;  %v6511_v15 = vsel %vm1068_vm3, %v8227_v56, %v2079_v6  ;;  %v8229_v8 = vld [vmem:[#allocation66_spill] sm:$0xff] }
 0x37d   : > { %v1904_v33 = vsel %vm1068_vm3, %v6318_v45, %v6273_v3  ;;  %v3087_v9 = vsel %vm8042_vm1, %v2968_v21, %v8228_v29  ;;  %v6522_v17 = vsel %vm1068_vm3, %v8229_v8, %v1741_v35  ;;  %v1911_v19 = vsel %vm1068_vm3, %v8231_v54, %v1910_v50  ;;  %v8232_v45 = vld [vmem:[#allocation67_spill] sm:$0xff]  ;;  %v6576_v40 = vpop.xlane.xlu1 %773 }
 0x37e   : > { %8230 = vst [vmem:[#allocation72_spill] sm:$0xff] %v6522_v17  ;;  %v6530_v59 = vsel %vm1066_vm2, %v967_v42, %v6289_v24  ;;  %v6534_v2 = vsel %vm1066_vm2, %v1140_v58, %v6292_v11  ;;  %v6538_v3 = vsel %vm1066_vm2, %v1307_v52, %v6295_v34  ;;  %v6542_v21 = vsel %vm1070_vm4, %v8232_v45, %v1911_v19  ;;  %v6584_v10 = vpop.xlane.xlu0 %770 }
 0x37f   : > { %8233 = vst [vmem:[#allocation58_spill] sm:$0xff] %v6542_v21  ;;  %v6546_v16 = vsel %vm1066_vm2, %v1473_v31, %v6298_v20  ;;  %v6550_v24 = vsel %vm1068_vm3, %v1640_v0, %v6363_v55  ;;  %v1905_v42 = vsel %vm1070_vm4, %v1810_v63, %v1904_v33  ;;  %v2977_v11 = vsel %vm1764_vm11, %v2976_v14, %v2972_v30 }
 0x380   : > { %v2813_v58 = vsel %vm1594_vm10, %v2812_v28, %v2808_v26  ;;  %v975_v34 = vrot.slane %v6397_v13, %v5452_v47  ;;  %v971_v52 = vrot.slane %v6400_v57, %v5431_v36  ;;  %v6560_v12 = vmul.f32 0.03125, %v6237_v44 }
 0x381   : > { %v1148_v20 = vrot.slane %v6397_v13, %v5455_v41  ;;  %v1315_v55 = vrot.slane %v6397_v13, %v5460_v4  ;;  %v1144_v31 = vrot.slane %v6400_v57, %v5434_v37  ;;  %v1311_v0 = vrot.slane %v6400_v57, %v5440_v25 }
 0x382   : > { %v3088_v63 = vsel %vm1066_vm2, %v2977_v11, %v3087_v9  ;;  %v735_v28 = vmul.f32 0.03125, %v6260_v23  ;;  %v2985_v44 = vrot.slane %v6279_v32, %v5469_v48  ;;  %v2981_v14 = vrot.slane %v6307_v7, %v5446_v51 }
 0x383   : > { %v1481_v30 = vrot.slane %v6397_v13, %v5463_v61  ;;  %v1648_v5 = vrot.slane %v6397_v13, %v5466_v60  ;;  %v2821_v22 = vrot.slane %v6279_v32, %v5466_v60  ;;  %vm1918_vm5 = vcmask 113666  }
 0x384   : > { %v976_v23 = vsel %vm921_vm6, %v975_v34, %v971_v52  ;;  %v1477_v53 = vrot.slane %v6400_v57, %v5437_v27  ;;  %v1644_v1 = vrot.slane %v6400_v57, %v5443_v38  ;;  %v1047_v6 = vrot.slane %v6560_v12, %v5452_v47  ;;  %1919 = vst.msk [vmem:[#allocation2 + $0x79] sm:$0xfc] %vm1918_vm5, %v1905_v42 }
 0x385   : > { %v1149_v13 = vsel %vm1094_vm7, %v1148_v20, %v1144_v31  ;;  %v1316_v32 = vsel %vm8050_vm8, %v1315_v55, %v1311_v0  ;;  %v1220_v26 = vrot.slane %v6560_v12, %v5455_v41  ;;  %v2994_v62 = vrot.slane %v6576_v40, %v5469_v48 }
 0x386   : > { %v1387_v35 = vrot.slane %v6560_v12, %v5460_v4  ;;  %v1043_v57 = vrot.slane %v735_v28, %v5431_v36  ;;  %v2986_v18 = vsel %vm1764_vm11, %v2985_v44, %v2981_v14  ;;  %v2990_v50 = vrot.slane %v6584_v10, %v5446_v51  ;;  %v6627_v44 = vpop.xlane.xlu1 %821 }
 0x387   : > { %v1553_v56 = vrot.slane %v6560_v12, %v5463_v61  ;;  %v1216_v33 = vrot.slane %v735_v28, %v5434_v37  ;;  %v1383_v29 = vrot.slane %v735_v28, %v5440_v25  ;;  %v1549_v9 = vrot.slane %v735_v28, %v5437_v27 }
 0x388   : > { %v1482_v8 = vsel %vm8049_vm9, %v1481_v30, %v1477_v53  ;;  %v1649_v54 = vsel %vm1594_vm10, %v1648_v5, %v1644_v1  ;;  %v1720_v19 = vrot.slane %v6560_v12, %v5466_v60  ;;  %v2817_v45 = vrot.slane %v6307_v7, %v5443_v38  ;;  %v6634_v30 = vpop.xlane.xlu0 %818  ;;  %v8235_v5 = vld [vmem:[#allocation56_spill] sm:$0xff] }
 0x389   : > { %v1890_v42 = vrot.slane %v6560_v12, %v5469_v48  ;;  %v2060_v11 = vrot.slane %v6560_v12, %v5472_v49  ;;  %v3089_v34 = vsel %vm1068_vm3, %v2986_v18, %v3088_v63  ;;  %v2995_v52 = vsel %vm1764_vm11, %v2994_v62, %v2990_v50  ;;  %8234 = vst [vmem:[#allocation26_spill] sm:$0xff] %v6634_v30  ;;  %v8243_v50 = vld [vmem:[#allocation44_spill] sm:$0xff] }
 0x38a   : > { %v1048_v20 = vsel %vm921_vm6, %v1047_v6, %v1043_v57  ;;  %v1716_v55 = vrot.slane %v735_v28, %v5443_v38  ;;  %v1886_v31 = vrot.slane %v735_v28, %v5446_v51  ;;  %v3090_v0 = vsel %vm1070_vm4, %v2995_v52, %v3089_v34  ;;  %v8246_v34 = vld [vmem:[#allocation71_spill] sm:$0xff] }
 0x38b   : > { %v1221_v7 = vsel %vm1094_vm7, %v1220_v26, %v1216_v33  ;;  %v1388_v14 = vsel %vm8050_vm8, %v1387_v35, %v1383_v29  ;;  %v1554_v12 = vsel %vm8049_vm9, %v1553_v56, %v1549_v9  ;;  %v2056_v63 = vrot.slane %v735_v28, %v5449_v43  ;;  %3103 = vst.msk [vmem:[#allocation2 + $0x121] sm:$0xfc] %vm1918_vm5, %v3090_v0  ;;  %v8236_v35 = vld [vmem:[#allocation62_spill] sm:$0xff] }
 0x38c   : > { %v2924_v53 = vsel %vm8042_vm1, %v2813_v58, %v8235_v5  ;;  %v1069_v1 = vsel %vm1068_vm3, %v976_v23, %v6530_v59  ;;  %v6642_v6 = vsel %vm1068_vm3, %v1149_v13, %v6534_v2  ;;  %v2822_v26 = vsel %vm1594_vm10, %v2821_v22, %v2817_v45  ;;  %v8237_v23 = vld [vmem:[#allocation63_spill] sm:$0xff]  ;;  %v8238_v22 = vld [vmem:[#allocation64_spill] sm:$0xff] }
 0x38d   : > { %v6647_v62 = vsel %vm1068_vm3, %v1316_v32, %v6538_v3  ;;  %v6651_v28 = vsel %vm1068_vm3, %v1482_v8, %v6546_v16  ;;  %v1736_v58 = vsel %vm1070_vm4, %v1649_v54, %v6550_v24  ;;  %v6657_v59 = vsel %vm1068_vm3, %v1048_v20, %v8236_v35  ;;  %v8239_v3 = vld [vmem:[#allocation65_spill] sm:$0xff]  ;;  %v6691_v54 = vpop.xlane.xlu1 %779 }
 0x38e   : > { %v6661_v2 = vsel %vm1068_vm3, %v1221_v7, %v8237_v23  ;;  %v6665_v13 = vsel %vm1068_vm3, %v1388_v14, %v8238_v22  ;;  %v6669_v32 = vsel %vm1068_vm3, %v1554_v12, %v8239_v3  ;;  %v6672_v16 = vsel %vm1594_vm10, %v1720_v19, %v1716_v55  ;;  %v8244_v19 = vld [vmem:[#allocation41_spill] sm:$0xff]  ;;  %v6702_v55 = vpop.xlane.xlu0 %776 }
 0x38f   : > { %8240 = vst [vmem:[#allocation29_spill] sm:$0xff] %v6672_v16  ;;  %v6675_v24 = vsel %vm1764_vm11, %v1890_v42, %v1886_v31  ;;  %v6678_v57 = vsel %vm1934_vm12, %v2060_v11, %v2056_v63  ;;  %v2925_v18 = vsel %vm1066_vm2, %v2822_v26, %v2924_v53  ;;  %v2893_v56 = vrot.slane %v8243_v50, %v5466_v60  ;;  %v8245_v42 = vld [vmem:[#allocation70_spill] sm:$0xff] }
 0x390   : > { %8241 = vst [vmem:[#allocation27_spill] sm:$0xff] %v6675_v24  ;;  %8242 = vst [vmem:[#allocation28_spill] sm:$0xff] %v6678_v57  ;;  %v3057_v33 = vrot.slane %v8243_v50, %v5469_v48  ;;  %v3221_v29 = vrot.slane %v8243_v50, %v5472_v49  ;;  %v2830_v9 = vrot.slane %v6576_v40, %v5466_v60  ;;  %v6700_v20 = vmul.f32 0.03125, %v6513_v39 }
 0x391   : > { %v2826_v8 = vrot.slane %v6584_v10, %v5443_v38  ;;  %v2889_v45 = vrot.slane %v8244_v19, %v5443_v38  ;;  %v984_v11 = vrot.slane %v8245_v42, %v5452_v47  ;;  %v980_v52 = vrot.slane %v8246_v34, %v5431_v36 }
 0x392   : > { %v3053_v31 = vrot.slane %v8244_v19, %v5446_v51  ;;  %v3217_v0 = vrot.slane %v8244_v19, %v5449_v43  ;;  %v6709_v7 = vmul.f32 0.03125, %v6526_v46  ;;  %vm1748_vm5 = vcmask 121857  }
 0x393   : > { %v1157_v14 = vrot.slane %v8245_v42, %v5455_v41  ;;  %v1324_v12 = vrot.slane %v8245_v42, %v5460_v4  ;;  %v1490_v39 = vrot.slane %v8245_v42, %v5463_v61  ;;  %v2839_v63 = vrot.slane %v6691_v54, %v5466_v60  ;;  %1749 = vst.msk [vmem:[#allocation2 + $0x62] sm:$0xfe] %vm1748_vm5, %v1736_v58 }
 0x394   : > { %v1153_v5 = vrot.slane %v8246_v34, %v5434_v37  ;;  %v1320_v46 = vrot.slane %v8246_v34, %v5440_v25  ;;  %v2831_v53 = vsel %vm1594_vm10, %v2830_v9, %v2826_v8  ;;  %v2835_v26 = vrot.slane %v6702_v55, %v5443_v38 }
 0x395   : > { %v985_v35 = vsel %vm921_vm6, %v984_v11, %v980_v52  ;;  %v1486_v23 = vrot.slane %v8246_v34, %v5437_v27  ;;  %v1056_v22 = vrot.slane %v6700_v20, %v5452_v47  ;;  %v1229_v58 = vrot.slane %v6700_v20, %v5455_v41 }
 0x396   : > { %v1396_v3 = vrot.slane %v6700_v20, %v5460_v4  ;;  %v1052_v50 = vrot.slane %v6709_v7, %v5431_v36  ;;  %v1225_v9 = vrot.slane %v6709_v7, %v5434_v37  ;;  %v1392_v8 = vrot.slane %v6709_v7, %v5440_v25 }
 0x397   : > { %v1562_v19 = vrot.slane %v6700_v20, %v5463_v61  ;;  %v1558_v42 = vrot.slane %v6709_v7, %v5437_v27  ;;  %v2926_v11 = vsel %vm1068_vm3, %v2831_v53, %v2925_v18  ;;  %v2840_v34 = vsel %vm1594_vm10, %v2839_v63, %v2835_v26 }
 0x398   : > { %v6749_v52 = vsel %vm1594_vm10, %v2893_v56, %v2889_v45  ;;  %v6752_v21 = vsel %vm1764_vm11, %v3057_v33, %v3053_v31  ;;  %v6755_v24 = vsel %vm1934_vm12, %v3221_v29, %v3217_v0  ;;  %v2927_v16 = vsel %vm1070_vm4, %v2840_v34, %v2926_v11 }
 0x399   : > { %v1158_v17 = vsel %vm1094_vm7, %v1157_v14, %v1153_v5  ;;  %v1325_v57 = vsel %vm8050_vm8, %v1324_v12, %v1320_v46  ;;  %v1491_v30 = vsel %vm8049_vm9, %v1490_v39, %v1486_v23  ;;  %v2178_v18 = vrot.slane %v6576_v40, %v5452_v47  ;;  %2939 = vst.msk [vmem:[#allocation2 + $0x10a] sm:$0xfe] %vm1748_vm5, %v2927_v16 }
 0x39a   : > { %v1071_v56 = vsel %vm1070_vm4, %v985_v35, %v1069_v1  ;;  %v1057_v33 = vsel %vm921_vm6, %v1056_v22, %v1052_v50  ;;  %v1230_v29 = vsel %vm1094_vm7, %v1229_v58, %v1225_v9  ;;  %v1397_v45 = vsel %vm8050_vm8, %v1396_v3, %v1392_v8  ;;  %v6819_v3 = vpop.xlane.xlu0 %824  ;;  %v8247_v50 = vld [vmem:[#allocation55_spill] sm:$0xff] }
 0x39b   : > { %v1563_v31 = vsel %vm8049_vm9, %v1562_v19, %v1558_v42  ;;  %v2341_v0 = vrot.slane %v6576_v40, %v5455_v41  ;;  %v2174_v14 = vrot.slane %v6584_v10, %v5431_v36  ;;  %v2337_v12 = vrot.slane %v6584_v10, %v5434_v37 }
 0x39c   : > { %v2504_v1 = vrot.slane %v6576_v40, %v5460_v4  ;;  %v2667_v16 = vrot.slane %v6576_v40, %v5463_v61  ;;  %v2500_v39 = vrot.slane %v6584_v10, %v5440_v25  ;;  %v2663_v63 = vrot.slane %v6584_v10, %v5437_v27 }
 0x39d   : > { %v1237_v5 = vsel %vm1070_vm4, %v1158_v17, %v6642_v6  ;;  %v1404_v46 = vsel %vm1070_vm4, %v1325_v57, %v6647_v62  ;;  %v1570_v53 = vsel %vm1070_vm4, %v1491_v30, %v6651_v28  ;;  %v1729_v26 = vrot.slane %v6700_v20, %v5466_v60 }
 0x39e   : > { %v1078_v35 = vsel %vm1070_vm4, %v1057_v33, %v6657_v59  ;;  %v1244_v23 = vsel %vm1070_vm4, %v1230_v29, %v6661_v2  ;;  %v1411_v22 = vsel %vm1070_vm4, %v1397_v45, %v6665_v13  ;;  %v1577_v17 = vsel %vm1070_vm4, %v1563_v31, %v6669_v32  ;;  %v6805_v59 = vpop.xlane.xlu1 %827  ;;  %1249 = vst.msk [vmem:[#allocation2 + $0x1b] sm:$0xff] %vm8045_vm0, %v1237_v5  ;;  %v8249_v29 = vld [vmem:[#allocation35_spill] sm:$0xff]  ;;  %v8250_v31 = vld [vmem:[#allocation36_spill] sm:$0xff] }
 0x39f   : > { %v3158_v6 = vrot.slane %v6576_v40, %v5472_v49  ;;  %v2179_v30 = vsel %vm921_vm6, %v2178_v18, %v2174_v14  ;;  %v2342_v62 = vsel %vm1094_vm7, %v2341_v0, %v2337_v12  ;;  %v3154_v28 = vrot.slane %v6584_v10, %v5449_v43  ;;  %1250 = vst.msk [vmem:[#allocation2 + $0x23] sm:$0xff] %vm8045_vm0, %v1244_v23  ;;  %v8251_v14 = vld [vmem:[#allocation37_spill] sm:$0xff] }
 0x3a0   : > { %v2505_v2 = vsel %vm8050_vm8, %v2504_v1, %v2500_v39  ;;  %v2668_v57 = vsel %vm8049_vm9, %v2667_v16, %v2663_v63  ;;  %v2187_v13 = vrot.slane %v6691_v54, %v5452_v47  ;;  %v2350_v32 = vrot.slane %v6691_v54, %v5455_v41 }
 0x3a1   : > { %v2513_v40 = vrot.slane %v6691_v54, %v5460_v4  ;;  %v2676_v58 = vrot.slane %v6691_v54, %v5463_v61  ;;  %v2183_v10 = vrot.slane %v6702_v55, %v5431_v36  ;;  %vm8046_vm5 = vcmask 154648  }
 0x3a2   : > { %1082 = vst.msk [vmem:[#allocation2 + $0x3] sm:$0xff] %vm8046_vm5, %v1071_v56  ;;  %1083 = vst.msk [vmem:[#allocation2 + $0xb] sm:$0xff] %vm8046_vm5, %v1078_v35  ;;  %vm8047_vm1 = vcmask 138248   ;;  %vm8048_vm15 = vcmask 130048   ;;  %v2081_v9 = vsel %vm1070_vm4, %v8247_v50, %v6511_v15  ;;  %v2346_v8 = vrot.slane %v6702_v55, %v5434_v37  ;;  %v8248_v56 = vld [vmem:[#allocation47_spill] sm:$0xff]  ;;  %v786_v1 = vpop.xlane.xlu1 %785 }
 0x3a3   : > { %v2509_v19 = vrot.slane %v6702_v55, %v5440_v25  ;;  %v2672_v42 = vrot.slane %v6702_v55, %v5437_v27  ;;  %1416 = vst.msk [vmem:[#allocation2 + $0x33] sm:$0xff] %vm8047_vm1, %v1404_v46  ;;  %1417 = vst.msk [vmem:[#allocation2 + $0x3b] sm:$0xff] %vm8047_vm1, %v1411_v22  ;;  %vm2090_vm14 = vcmask 105472   ;;  %v1899_v15 = vrot.slane %v6700_v20, %v5469_v48  ;;  %v783_v22 = vpop.xlane.xlu0 %782 }
 0x3a4   : > { %1582 = vst.msk [vmem:[#allocation2 + $0x4b] sm:$0xff] %vm8048_vm15, %v1570_v53  ;;  %1583 = vst.msk [vmem:[#allocation2 + $0x53] sm:$0xff] %vm8048_vm15, %v1577_v17  ;;  %v2069_v11 = vrot.slane %v6700_v20, %v5472_v49  ;;  %v1895_v34 = vrot.slane %v6709_v7, %v5446_v51  ;;  %v2065_v18 = vrot.slane %v6709_v7, %v5449_v43 }
 0x3a5   : > { %2091 = vst.msk [vmem:[#allocation2 + $0x98] sm:$0xff] %vm2090_vm14, %v2081_v9  ;;  %v2274_v33 = vsel %vm1066_vm2, %v2179_v30, %v8248_v56  ;;  %v2437_v45 = vsel %vm1066_vm2, %v2342_v62, %v8249_v29  ;;  %v2600_v0 = vsel %vm1066_vm2, %v2505_v2, %v8250_v31  ;;  %v2763_v12 = vsel %vm1066_vm2, %v2668_v57, %v8251_v14 }
 0x3a6   : > { %v3159_v16 = vsel %vm1934_vm12, %v3158_v6, %v3154_v28  ;;  %v2902_v39 = vrot.slane %v6627_v44, %v5466_v60  ;;  %v3167_v63 = vrot.slane %v6691_v54, %v5472_v49  ;;  %v2188_v5 = vsel %vm921_vm6, %v2187_v13, %v2183_v10  ;;  %v8252_v6 = vld [vmem:[#allocation26_spill] sm:$0xff] }
 0x3a7   : > { %v2351_v46 = vsel %vm1094_vm7, %v2350_v32, %v2346_v8  ;;  %v2514_v53 = vsel %vm8050_vm8, %v2513_v40, %v2509_v19  ;;  %v2677_v35 = vsel %vm8049_vm9, %v2676_v58, %v2672_v42  ;;  %v3163_v23 = vrot.slane %v6702_v55, %v5449_v43 }
 0x3a8   : > { %v3066_v17 = vrot.slane %v6627_v44, %v5469_v48  ;;  %v2898_v30 = vrot.slane %v8252_v6, %v5443_v38  ;;  %v3062_v62 = vrot.slane %v8252_v6, %v5446_v51  ;;  %v2196_v28 = vrot.slane %v786_v1, %v5452_v47 }
 0x3a9   : > { %v3003_v2 = vrot.slane %v6691_v54, %v5469_v48  ;;  %v2275_v57 = vsel %vm1068_vm3, %v2188_v5, %v2274_v33  ;;  %v2999_v13 = vrot.slane %v6702_v55, %v5446_v51  ;;  %v2359_v32 = vrot.slane %v786_v1, %v5455_v41 }
 0x3aa   : > { %v2438_v40 = vsel %vm1068_vm3, %v2351_v46, %v2437_v45  ;;  %v2601_v58 = vsel %vm1068_vm3, %v2514_v53, %v2600_v0  ;;  %v2764_v10 = vsel %vm1068_vm3, %v2677_v35, %v2763_v12  ;;  %v2192_v50 = vrot.slane %v783_v22, %v5431_v36 }
 0x3ab   : > { %v3168_v9 = vsel %vm1934_vm12, %v3167_v63, %v3163_v23  ;;  %v2522_v54 = vrot.slane %v786_v1, %v5460_v4  ;;  %v2685_v8 = vrot.slane %v786_v1, %v5463_v61  ;;  %v2355_v55 = vrot.slane %v783_v22, %v5434_v37 }
 0x3ac   : > { %v2848_v19 = vrot.slane %v786_v1, %v5466_v60  ;;  %v3012_v42 = vrot.slane %v786_v1, %v5469_v48  ;;  %v3176_v56 = vrot.slane %v786_v1, %v5472_v49  ;;  %v2197_v33 = vsel %vm921_vm6, %v2196_v28, %v2192_v50 }
 0x3ad   : > { %v2276_v29 = vsel %vm1070_vm4, %v2197_v33, %v2275_v57  ;;  %v2360_v45 = vsel %vm1094_vm7, %v2359_v32, %v2355_v55  ;;  %v2518_v31 = vrot.slane %v783_v22, %v5440_v25  ;;  %v2681_v0 = vrot.slane %v783_v22, %v5437_v27  ;;  %v8253_v57 = vld [vmem:[#allocation43_spill] sm:$0xff]  ;;  %v3270_v55 = vld [vmem:[#allocation2] sm:$0xff] }
 0x3ae   : > { %2287 = vst.msk [vmem:[#allocation2 + $0xab] sm:$0xff] %vm8046_vm5, %v2276_v29  ;;  %v2439_v14 = vsel %vm1070_vm4, %v2360_v45, %v2438_v40  ;;  %v2844_v12 = vrot.slane %v783_v22, %v5443_v38  ;;  %v3008_v1 = vrot.slane %v783_v22, %v5446_v51  ;;  %v3172_v63 = vrot.slane %v783_v22, %v5449_v43  ;;  %v8261_v33 = vld [vmem:[#allocation49_spill] sm:$0xff]  ;;  %v8263_v45 = vld [vmem:[#allocation46_spill] sm:$0xff] }
 0x3af   : > { %v3004_v5 = vsel %vm1764_vm11, %v3003_v2, %v2999_v13  ;;  %v3254_v46 = vsel %vm1058_vm13, %v3168_v9, %v3159_v16  ;;  %2450 = vst.msk [vmem:[#allocation2 + $0xc3] sm:$0xff] %vm8045_vm0, %v2439_v14  ;;  %v2523_v53 = vsel %vm8050_vm8, %v2522_v54, %v2518_v31  ;;  %v2686_v35 = vsel %vm8049_vm9, %v2685_v8, %v2681_v0  ;;  %v8256_v9 = vld [vmem:[#allocation45_spill] sm:$0xff] }
 0x3b0   : > { %v2602_v23 = vsel %vm1070_vm4, %v2523_v53, %v2601_v58  ;;  %v2765_v22 = vsel %vm1070_vm4, %v2686_v35, %v2764_v10  ;;  %v2849_v28 = vsel %vm1594_vm10, %v2848_v19, %v2844_v12  ;;  %v3013_v16 = vsel %vm1764_vm11, %v3012_v42, %v3008_v1  ;;  %v8254_v10 = vld [vmem:[#allocation48_spill] sm:$0xff]  ;;  %v8259_v42 = vld [vmem:[#allocation59_spill] sm:$0xff]  ;;  %v8265_v14 = vld [vmem:[#allocation73_spill] sm:$0xff] }
 0x3b1   : > { %v2911_v2 = vrot.slane %v6805_v59, %v5466_v60  ;;  %2613 = vst.msk [vmem:[#allocation2 + $0xdb] sm:$0xff] %vm8047_vm1, %v2602_v23  ;;  %v2928_v13 = vsel %vm1058_vm13, %v8253_v57, %v2849_v28  ;;  %v3091_v32 = vsel %vm1058_vm13, %v3013_v16, %v3004_v5  ;;  %v3177_v40 = vsel %vm1934_vm12, %v3176_v56, %v3172_v63  ;;  %v8267_v1 = vld [vmem:[#allocation60_spill] sm:$0xff]  ;;  %v8269_v5 = vld [vmem:[#allocation50_spill] sm:$0xff]  ;;  %v8272_v16 = vld [vmem:[#allocation61_spill] sm:$0xff] }
 0x3b2   : > { %2776 = vst.msk [vmem:[#allocation2 + $0xf3] sm:$0xff] %vm8048_vm15, %v2765_v22  ;;  %v3273_v58 = vstv %s6882_s22  ;;  %vm8255_vm0 = vcmask 1042434   ;;  %v3281_v19 = vstv %s6888_s23  ;;  %vm8260_vm15 = vcmask 1043459   ;;  %v3286_v53 = vld [vmem:[#allocation2 + $0x18] sm:$0xff]  ;;  %v8271_v22 = vld [vmem:[#allocation74_spill] sm:$0xff]  ;;  %s7305_s22 = sld [smem:[#allocation7 + $0x15]] }
 0x3b3   : > { %v2929_v50 = vsel %vm8255_vm0, %v8254_v10, %v2928_v13  ;;  %vm8257_vm5 = vmmov %vm8255_vm0  ;;  %v2907_v0 = vrot.slane %v6819_v3, %v5443_v38  ;;  %v3289_v35 = vstv %s6895_s5  ;;  %v8273_v10 = vld [vmem:[#allocation75_spill] sm:$0xff]  ;;  %s7311_s23 = sld [smem:[#allocation7 + $0x46]] }
 0x3b4   : > { %v3092_v54 = vsel %vm8257_vm5, %v8256_v9, %v3091_v32  ;;  %vm8258_vm1 = vmmov %vm8255_vm0  ;;  %v2930_v56 = vsel %vm8260_vm15, %v8259_v42, %v2929_v50  ;;  %vm8266_vm0 = vcmask 1044484   ;;  %v2903_v32 = vsel %vm1594_vm10, %v2902_v39, %v2898_v30  ;;  %s7319_s5 = sld [smem:[#allocation7 + $0x16]] }
 0x3b5   : > { %v3255_v8 = vsel %vm8258_vm1, %v3177_v40, %v3254_v46  ;;  %vm8262_vm9 = vmmov %vm8260_vm15  ;;  %v2931_v12 = vsel %vm8266_vm0, %v8265_v14, %v2930_v56  ;;  %v3278_v13 = vld [vmem:[#allocation2 + $0xa8] sm:$0xff]  ;;  %v3274_v40 = vmul.f32 %v3273_v58, %v3270_v55  ;;  %v1725_v9 = vrot.slane %v6709_v7, %v5443_v38  ;;  %v3302_v55 = vld [vmem:[#allocation2 + $0x30] sm:$0xff] }
 0x3b6   : > { %v3093_v29 = vsel %vm8262_vm9, %v8261_v33, %v3092_v54  ;;  %vm8264_vm8 = vmmov %vm8262_vm9  ;;  %v2932_v23 = vsel %vm1066_vm2, %v6749_v52, %v2931_v12  ;;  %v3282_v50 = vmul.f32 %v3281_v19, %v3278_v13  ;;  %v3297_v54 = vstv %s6908_s10  ;;  %v3294_v39 = vld [vmem:[#allocation2 + $0xc0] sm:$0xff]  ;;  %s7325_s10 = sld [smem:[#allocation7 + $0x47]] }
 0x3b7   : > { %v3256_v31 = vsel %vm8264_vm8, %v8263_v45, %v3255_v8  ;;  %vm8268_vm1 = vmmov %vm8266_vm0  ;;  %v2933_v8 = vsel %vm1068_vm3, %v2903_v32, %v2932_v23  ;;  %v3290_v30 = vmul.f32 %v3289_v35, %v3286_v53  ;;  %v3305_v56 = vstv %s6913_s29  ;;  %v8274_v45 = vld [vmem:[#allocation68_spill] sm:$0xff]  ;;  %v3318_v23 = vld [vmem:[#allocation2 + $0x48] sm:$0xff]  ;;  %s7333_s29 = sld [smem:[#allocation7 + $0x17]] }
 0x3b8   : > { %v3094_v63 = vsel %vm8268_vm1, %v8267_v1, %v3093_v29  ;;  %vm8270_vm5 = vmmov %vm8266_vm0  ;;  %v3284_v29 = vadd.f32 %v3282_v50, %v3274_v40  ;;  %v2912_v12 = vsel %vm1594_vm10, %v2911_v2, %v2907_v0  ;;  %v3298_v1 = vmul.f32 %v3297_v54, %v3294_v39  ;;  %v3342_v39 = vld [vmem:[#allocation2 + $0x108] sm:$0xff] }
 0x3b9   : > { %v3257_v46 = vsel %vm8270_vm5, %v8269_v5, %v3256_v31  ;;  %v3095_v28 = vsel %vm1066_vm2, %v8271_v22, %v3094_v63  ;;  %v8275_v31 = vld [vmem:[#allocation28_spill] sm:$0xff]  ;;  %v3321_v2 = vstv %s6928_s9  ;;  %vm1750_vm8 = vcmask 121856   ;;  %v8278_v22 = vld [vmem:[#allocation27_spill] sm:$0xff]  ;;  %s7340_s9 = sld [smem:[#allocation7 + $0x48]] }
 0x3ba   : > { %v3258_v57 = vsel %vm1066_vm2, %v8272_v16, %v3257_v46  ;;  %v3096_v33 = vsel %vm1068_vm3, %v6752_v21, %v3095_v28  ;;  %v2082_v14 = vsel %vm1058_vm13, %v8275_v31, %v8274_v45  ;;  %v2070_v21 = vsel %vm1934_vm12, %v2069_v11, %v2065_v18  ;;  %v3310_v63 = vld [vmem:[#allocation2 + $0xd8] sm:$0xff]  ;;  %v8277_v46 = vld [vmem:[#allocation29_spill] sm:$0xff]  ;;  %v8279_v16 = vld [vmem:[#allocation58_spill] sm:$0xff] }
 0x3bb   : > { %v3259_v52 = vsel %vm1068_vm3, %v8273_v10, %v3258_v57  ;;  %v3292_v7 = vadd.f32 %v3290_v30, %v3284_v29  ;;  %v3306_v11 = vmul.f32 %v3305_v56, %v3302_v55  ;;  %v3313_v18 = vstv %s6936_s26  ;;  %v3326_v32 = vld [vmem:[#allocation2 + $0xf0] sm:$0xff]  ;;  %s7349_s26 = sld [smem:[#allocation7 + $0x18]] }
 0x3bc   : > { %v3260_v42 = vsel %vm1070_vm4, %v6755_v24, %v3259_v52  ;;  %v1900_v24 = vsel %vm1764_vm11, %v1899_v15, %v1895_v34  ;;  %v3067_v15 = vsel %vm1764_vm11, %v3066_v17, %v3062_v62  ;;  %v2934_v34 = vsel %vm1070_vm4, %v2912_v12, %v2933_v8  ;;  %v8276_v62 = vld [vmem:[#allocation72_spill] sm:$0xff]  ;;  %v3334_v52 = vld [vmem:[#allocation2 + $0x60] sm:$0xff] }
 0x3bd   : > { %3268 = vst.msk [vmem:[#allocation2 + $0x140] sm:$0xff] %vm2090_vm14, %v3260_v42  ;;  %v3097_v0 = vsel %vm1070_vm4, %v3067_v15, %v3096_v33  ;;  %v3300_v5 = vadd.f32 %v3298_v1, %v3292_v7  ;;  %v1730_v17 = vsel %vm1594_vm10, %v1729_v26, %v1725_v9  ;;  %v1743_v53 = vsel %vm1070_vm4, %v8277_v46, %v8276_v62  ;;  %v3350_v33 = vld [vmem:[#allocation2 + $0x78] sm:$0xff]  ;;  %v3366_v15 = vld [vmem:[#allocation2 + $0x90] sm:$0xff] }
 0x3be   : > { %1751 = vst.msk [vmem:[#allocation2 + $0x6a] sm:$0xff] %vm1750_vm8, %v1743_v53  ;;  %vm1752_vm9 = vcmask 114688   ;;  %v1913_v28 = vsel %vm1058_vm13, %v1900_v24, %v8278_v22  ;;  %vm1920_vm14 = vcmask 113664   ;;  %vm1922_vm15 = vcmask 107520   ;;  %2940 = vst.msk [vmem:[#allocation2 + $0x112] sm:$0xff] %vm1750_vm8, %v2934_v34  ;;  %v3358_v24 = vld [vmem:[#allocation2 + $0x120] sm:$0xff] }
 0x3bf   : > { %v3308_v20 = vadd.f32 %v3306_v11, %v3300_v5  ;;  %v3314_v26 = vmul.f32 %v3313_v18, %v3310_v63  ;;  %1753 = vst.msk [vmem:[#allocation2 + $0x72] sm:$0x1] %vm1752_vm9, %v1730_v17  ;;  %vm8280_vm0 = vcmask 1042434   ;;  %vm2092_vm1 = vcmask 100352   ;;  %v3382_v17 = vld [vmem:[#allocation2 + $0x1] sm:$0xff]  ;;  %v3390_v22 = vld [vmem:[#allocation2 + $0xa9] sm:$0xff] }
 0x3c0   : > { %1921 = vst.msk [vmem:[#allocation2 + $0x81] sm:$0xff] %vm1920_vm14, %v8279_v16  ;;  %v2083_v57 = vsel %vm8280_vm0, %v2070_v21, %v2082_v14  ;;  %3104 = vst.msk [vmem:[#allocation2 + $0x129] sm:$0xff] %vm1920_vm14, %v3097_v0  ;;  %v3329_v13 = vstv %s6975_s20  ;;  %v3322_v40 = vmul.f32 %v3321_v2, %v3318_v23  ;;  %v3337_v50 = vstv %s7004_s25  ;;  %v3374_v0 = vld [vmem:[#allocation2 + $0x138] sm:$0xff]  ;;  %s7354_s20 = sld [smem:[#allocation7 + $0x49]] }
 0x3c1   : > { %1923 = vst.msk [vmem:[#allocation2 + $0x89] sm:$0x3] %vm1922_vm15, %v1913_v28  ;;  %v3316_v10 = vadd.f32 %v3314_v26, %v3308_v20  ;;  %v3330_v8 = vmul.f32 %v3329_v13, %v3326_v32  ;;  %v3345_v42 = vstv %s7016_s30  ;;  %v3338_v30 = vmul.f32 %v3337_v50, %v3334_v52  ;;  %v3398_v26 = vld [vmem:[#allocation2 + $0x19] sm:$0xff]  ;;  %s7363_s25 = sld [smem:[#allocation7 + $0x19]] }
 0x3c2   : > { %2093 = vst.msk [vmem:[#allocation2 + $0xa0] sm:$0x7] %vm2092_vm1, %v2083_v57  ;;  %v3353_v29 = vstv %s7030_s12  ;;  %v3346_v45 = vmul.f32 %v3345_v42, %v3342_v39  ;;  %v3361_v14 = vstv %s7040_s8  ;;  %v3369_v34 = vstv %s7046_s13  ;;  %s7370_s30 = sld [smem:[#allocation7 + $0x4a]] }
 0x3c3   : > { %v3324_v9 = vadd.f32 %v3322_v40, %v3316_v10  ;;  %v3354_v21 = vmul.f32 %v3353_v29, %v3350_v33  ;;  %v3362_v7 = vmul.f32 %v3361_v14, %v3358_v24  ;;  %v3377_v11 = vstv %s7051_s14  ;;  %v3406_v10 = vld [vmem:[#allocation2 + $0xc1] sm:$0xff]  ;;  %s7377_s12 = sld [smem:[#allocation7 + $0x1a]] }
 0x3c4   : > { %v3370_v63 = vmul.f32 %v3369_v34, %v3366_v15  ;;  %v3385_v62 = vstv %s7057_s7  ;;  %v3378_v46 = vmul.f32 %v3377_v11, %v3374_v0  ;;  %v8077_v23 = vstv %s7062_s0  ;;  %v3462_v0 = vld [vmem:[#allocation2 + $0x79] sm:$0xff]  ;;  %s7384_s8 = sld [smem:[#allocation7 + $0x4b]] }
 0x3c5   : > { %v3332_v55 = vadd.f32 %v3330_v8, %v3324_v9  ;;  %v3386_v28 = vmul.f32 %v3385_v62, %v3382_v17  ;;  %v8076_v16 = vstv %s7067_s1  ;;  %v3394_v32 = vmul.f32 %v8077_v23, %v3390_v22  ;;  %v3414_v8 = vld [vmem:[#allocation2 + $0x31] sm:$0xff]  ;;  %s7389_s13 = sld [smem:[#allocation7 + $0x1b]] }
 0x3c6   : > { %v8075_v40 = vstv %s7072_s2  ;;  %v3402_v52 = vmul.f32 %v8076_v16, %v3398_v26  ;;  %v8072_v39 = vstv %s7077_s3  ;;  %v8071_v33 = vstv %s7082_s24  ;;  %s7398_s7 = sld [smem:[#allocation7 + $0x4c]] }
 0x3c7   : > { %v3340_v31 = vadd.f32 %v3338_v30, %v3332_v55  ;;  %v3410_v55 = vmul.f32 %v8075_v40, %v3406_v10  ;;  %v2413_v15 = vrot.slane %v6627_v44, %v5455_v41  ;;  %v2572_v22 = vrot.slane %v8252_v6, %v5440_v25  ;;  %v8293_v40 = vld [vmem:[#allocation57_spill] sm:$0xff]  ;;  %s7426_s14 = sld [smem:[#allocation7 + $0x4e]] }
 0x3c8   : > { %v3473_v26 = vstv %s7096_s18  ;;  %vm8285_vm5 = vcmask 138312   ;;  %vm8291_vm8 = vcmask 130112   ;;  %s7473_s18 = sld [smem:[#allocation7 + $0x21]] }
 0x3c9   : > { %v3348_v12 = vadd.f32 %v3346_v45, %v3340_v31  ;;  %v3422_v45 = vld [vmem:[#allocation2 + $0xd9] sm:$0xff]  ;;  %v3418_v31 = vmul.f32 %v8072_v39, %v3414_v8  ;;  %v2735_v8 = vrot.slane %v8252_v6, %v5437_v27  ;;  %vm8295_vm14 = vmmov %vm8285_vm5 }
 0x3ca   : > { %vm8296_vm0 = vmmov %vm8291_vm8  ;;  %8307 = sst [smem:[#allocation87_spill]] %s7384_s8 }
 0x3cb   : > { %v3356_v1 = vadd.f32 %v3354_v21, %v3348_v12  ;;  %v8060_v21 = vstv %s7084_s17  ;;  %v2250_v12 = vrot.slane %v6627_v44, %v5452_v47  ;;  %s7186_s17 = sld [smem:[#allocation7 + $0x41]] }
 0x3cc   : > { %8308 = sst [smem:[#allocation88_spill]] %s7389_s13 }
 0x3cd   : > { %v3364_v5 = vadd.f32 %v3362_v7, %v3356_v1  ;;  %v3430_v7 = vld [vmem:[#allocation2 + $0x49] sm:$0xff]  ;;  %v8070_v1 = vstv %s7089_s16 }
 0x3cf   : > { %v3372_v53 = vadd.f32 %v3370_v63, %v3364_v5  ;;  %v2246_v63 = vrot.slane %v8252_v6, %v5431_v36  ;;  %v2409_v5 = vrot.slane %v8252_v6, %v5434_v37 }
 0x3d1   : > { %v3380_v20 = vadd.f32 %v3378_v46, %v3372_v53  ;;  %v3426_v46 = vmul.f32 %v8071_v33, %v3422_v45  ;;  %v2576_v53 = vrot.slane %v6627_v44, %v5460_v4  ;;  %v2251_v45 = vsel %vm921_vm6, %v2250_v12, %v2246_v63  ;;  %v8290_v33 = vld [vmem:[#allocation52_spill] sm:$0xff]  ;;  %8292 = sst [smem:[#allocation83_spill]] %s7186_s17 }
 0x3d2   : > { %v2585_v12 = vrot.slane %v6805_v59, %v5460_v4 }
 0x3d3   : > { %v3388_v57 = vadd.f32 %v3386_v28, %v3380_v20  ;;  %v8069_v28 = vstv %s7094_s21  ;;  %v3438_v20 = vld [vmem:[#allocation2 + $0xf1] sm:$0xff] }
 0x3d5   : > { %v3396_v9 = vadd.f32 %v3394_v32, %v3388_v57  ;;  %v2739_v57 = vrot.slane %v6627_v44, %v5463_v61  ;;  %v3434_v32 = vmul.f32 %v8070_v1, %v3430_v7  ;;  %v3442_v7 = vmul.f32 %v8069_v28, %v3438_v20  ;;  %v8289_v28 = vld [vmem:[#allocation51_spill] sm:$0xff] }
 0x3d6   : > { %v2418_v20 = vrot.slane %v6819_v3, %v5434_v37  ;;  %v2281_v1 = vsel %vm1066_vm2, %v2251_v45, %v8289_v28 }
 0x3d7   : > { %v3404_v30 = vadd.f32 %v3402_v52, %v3396_v9  ;;  %v3466_v52 = vmul.f32 %v8060_v21, %v3462_v0  ;;  %v3230_v9 = vrot.slane %v6627_v44, %v5472_v49  ;;  %v2577_v0 = vsel %vm8285_vm5, %v2576_v53, %v2572_v22  ;;  %v3454_v44 = vld [vmem:[#allocation2 + $0x109] sm:$0xff] }
 0x3d8   : > { %v2422_v21 = vrot.slane %v6805_v59, %v5455_v41  ;;  %v2748_v53 = vrot.slane %v6805_v59, %v5463_v61  ;;  %v3239_v22 = vrot.slane %v6805_v59, %v5472_v49  ;;  %v2607_v16 = vsel %vm1066_vm2, %v2577_v0, %v8293_v40  ;;  %v8298_v0 = vld [vmem:[#allocation69_spill] sm:$0xff] }
 0x3d9   : > { %v3412_v24 = vadd.f32 %v3410_v55, %v3404_v30  ;;  %v3446_v30 = vld [vmem:[#allocation2 + $0x61] sm:$0xff]  ;;  %v8068_v55 = vstv %s7101_s28  ;;  %s7204_s28 = sld [smem:[#allocation7 + $0x10]] }
 0x3da   : > { %v3450_v63 = vmul.f32 %v8068_v55, %v3446_v30  ;;  %v2744_v30 = vrot.slane %v6819_v3, %v5437_v27  ;;  %v3470_v55 = vld [vmem:[#allocation2 + $0x121] sm:$0xff] }
 0x3db   : > { %v3420_v17 = vadd.f32 %v3418_v31, %v3412_v24  ;;  %v2414_v31 = vsel %vm1094_vm7, %v2413_v15, %v2409_v5  ;;  %v2255_v15 = vrot.slane %v6819_v3, %v5431_v36  ;;  %v3474_v40 = vmul.f32 %v3473_v26, %v3470_v55 }
 0x3dc   : > { %v2444_v39 = vsel %vm1066_vm2, %v2414_v31, %v8290_v33  ;;  %v2423_v33 = vsel %vm1094_vm7, %v2422_v21, %v2418_v20  ;;  %v3489_v55 = vstv %s7151_s27  ;;  %s7234_s27 = sld [smem:[#allocation7 + $0x11]] }
 0x3dd   : > { %v3428_v10 = vadd.f32 %v3426_v46, %v3420_v17  ;;  %v8073_v17 = vstv %s7105_s15  ;;  %v2259_v46 = vrot.slane %v6805_v59, %v5452_v47  ;;  %s7193_s15 = sld [smem:[#allocation7 + $0xf]] }
 0x3df   : > { %v3436_v24 = vadd.f32 %v3434_v32, %v3428_v10  ;;  %v2581_v32 = vrot.slane %v6819_v3, %v5440_v25  ;;  %v3458_v10 = vmul.f32 %v8073_v17, %v3454_v44  ;;  %v2740_v44 = vsel %vm8291_vm8, %v2739_v57, %v2735_v8  ;;  %v3478_v57 = vld [vmem:[#allocation2 + $0x91] sm:$0xff]  ;;  %8297 = sst [smem:[#allocation85_spill]] %s7204_s28 }
 0x3e0   : > { %v3226_v17 = vrot.slane %v8252_v6, %v5449_v43  ;;  %v3071_v6 = vrot.slane %v6819_v3, %v5446_v51  ;;  %v3481_v8 = vstv %s7139_s4  ;;  %v2770_v21 = vsel %vm1066_vm2, %v2740_v44, %v8298_v0  ;;  %v3502_v44 = vld [vmem:[#allocation2 + $0xaa] sm:$0xff]  ;;  %s7242_s4 = sld [smem:[#allocation7 + $0x42]] }
 0x3e1   : > { %v3444_v5 = vadd.f32 %v3442_v7, %v3436_v24  ;;  %v3235_v24 = vrot.slane %v6819_v3, %v5449_v43  ;;  %v2586_v28 = vsel %vm8295_vm14, %v2585_v12, %v2581_v32  ;;  %v3486_v12 = vld [vmem:[#allocation2 + $0x139] sm:$0xff]  ;;  %vm8300_vm2 = vcmask 154648  }
 0x3e2   : > { %v3231_v3 = vsel %vm1934_vm12, %v3230_v9, %v3226_v17  ;;  %v3494_v17 = vld [vmem:[#allocation2 + $0x2] sm:$0xff]  ;;  %8299 = sst [smem:[#allocation86_spill]] %s7234_s27  ;;  %vm8305_vm8 = vcmask 130048   ;;  %vm8306_vm14 = vcmask 1042434  }
 0x3e3   : > { %v3452_v7 = vadd.f32 %v3450_v63, %v3444_v5  ;;  %v3075_v63 = vrot.slane %v6805_v59, %v5469_v48  ;;  %v2260_v5 = vsel %vm921_vm6, %v2259_v46, %v2255_v15  ;;  %8294 = sst [smem:[#allocation84_spill]] %s7193_s15  ;;  %v2749_v59 = vsel %vm8296_vm0, %v2748_v53, %v2744_v30 }
 0x3e4   : > { %v3240_v45 = vsel %vm1934_vm12, %v3239_v22, %v3235_v24  ;;  %v2282_v46 = vsel %vm1068_vm3, %v2260_v5, %v2281_v1  ;;  %v2445_v15 = vsel %vm1068_vm3, %v2423_v33, %v2444_v39  ;;  %v3482_v22 = vmul.f32 %v3481_v8, %v3478_v57  ;;  %v3518_v5 = vld [vmem:[#allocation2 + $0xc2] sm:$0xff] }
 0x3e5   : > { %v3460_v23 = vadd.f32 %v3458_v10, %v3452_v7  ;;  %v2771_v20 = vsel %vm1068_vm3, %v2749_v59, %v2770_v21  ;;  %v3076_v32 = vsel %vm1764_vm11, %v3075_v63, %v3071_v6  ;;  %v3261_v9 = vsel %vm1058_vm13, %v3240_v45, %v3231_v3  ;;  %v3510_v6 = vld [vmem:[#allocation2 + $0x1a] sm:$0xff] }
 0x3e6   : > { %v3497_v1 = vstv %s7169_s6  ;;  %v3505_v10 = vstv %s7159_s19  ;;  %v3521_v30 = vstv %s7177_s11  ;;  %v3490_v39 = vmul.f32 %v3489_v55, %v3486_v12  ;;  %s7252_s11 = sld [smem:[#allocation7 + $0x12]] }
 0x3e7   : > { %v3468_v31 = vadd.f32 %v3466_v52, %v3460_v23  ;;  %v2608_v23 = vsel %vm1068_vm3, %v2586_v28, %v2607_v16  ;;  %v834_v52 = vpop.xlane.xlu1 %833  ;;  %v831_v16 = vpop.xlane.xlu0 %830  ;;  %v3537_v7 = vstv %s7186_s17  ;;  %v3498_v59 = vmul.f32 %v3497_v1, %v3494_v17  ;;  %v3526_v17 = vld [vmem:[#allocation2 + $0x32] sm:$0xff]  ;;  %vm8301_vm3 = vmmov %vm8285_vm5  ;;  %s7277_s19 = sld [smem:[#allocation7 + $0x13]] }
 0x3e8   : > { %v2268_v33 = vrot.slane %v834_v52, %v5452_v47  ;;  %v2431_v63 = vrot.slane %v834_v52, %v5455_v41  ;;  %v2594_v28 = vrot.slane %v834_v52, %v5460_v4  ;;  %v2757_v57 = vrot.slane %v834_v52, %v5463_v61  ;;  %s7291_s17 = sld [smem:[#allocation7 + $0x14]] }
 0x3e9   : > { %v3476_v53 = vadd.f32 %v3474_v40, %v3468_v31  ;;  %v3513_v45 = vstv %s7193_s15  ;;  %v2920_v31 = vrot.slane %v834_v52, %v5466_v60  ;;  %v3084_v0 = vrot.slane %v834_v52, %v5469_v48  ;;  %s7262_s15 = sld [smem:[#allocation7 + $0x43]] }
 0x3ea   : > { %v3248_v21 = vrot.slane %v834_v52, %v5472_v49  ;;  %v2264_v47 = vrot.slane %v831_v16, %v5431_v36  ;;  %v3506_v41 = vmul.f32 %v3505_v10, %v3502_v44  ;;  %v3522_v4 = vmul.f32 %v3521_v30, %v3518_v5  ;;  %v3534_v5 = vld [vmem:[#allocation2 + $0xda] sm:$0xff]  ;;  %s7515_s6 = sld [smem:[#allocation7 + $0x24]] }
 0x3eb   : > { %v3484_v24 = vadd.f32 %v3482_v22, %v3476_v53  ;;  %v3529_v61 = vstv %s7204_s28  ;;  %v3514_v12 = vmul.f32 %v3513_v45, %v3510_v6  ;;  %v2427_v48 = vrot.slane %v831_v16, %v5434_v37  ;;  %s7284_s28 = sld [smem:[#allocation7 + $0x44]] }
 0x3ec   : > { %v2269_v60 = vsel %vm921_vm6, %v2268_v33, %v2264_v47  ;;  %v2590_v49 = vrot.slane %v831_v16, %v5440_v25  ;;  %v2753_v36 = vrot.slane %v831_v16, %v5437_v27  ;;  %v2916_v22 = vrot.slane %v831_v16, %v5443_v38  ;;  %vm8302_vm6 = vmmov %vm8296_vm0 }
 0x3ed   : > { %v3492_v40 = vadd.f32 %v3490_v39, %v3484_v24  ;;  %v2283_v53 = vsel %vm1070_vm4, %v2269_v60, %v2282_v46  ;;  %v2432_v24 = vsel %vm1094_vm7, %v2431_v63, %v2427_v48  ;;  %v3080_v37 = vrot.slane %v831_v16, %v5446_v51 }
 0x3ee   : > { %2288 = vst.msk [vmem:[#allocation2 + $0xb3] sm:$0xff] %vm8300_vm2, %v2283_v53  ;;  %v2595_v39 = vsel %vm8301_vm3, %v2594_v28, %v2590_v49  ;;  %v3244_v25 = vrot.slane %v831_v16, %v5449_v43  ;;  %v2446_v46 = vsel %vm1070_vm4, %v2432_v24, %v2445_v15  ;;  %v2758_v38 = vsel %vm8302_vm6, %v2757_v57, %v2753_v36  ;;  %v3566_v53 = vld [vmem:[#allocation2 + $0x10a] sm:$0xff] }
 0x3ef   : > { %v3500_v3 = vadd.f32 %v3498_v59, %v3492_v40  ;;  %v2609_v27 = vsel %vm1070_vm4, %v2595_v39, %v2608_v23  ;;  %vm8303_vm5 = vcmask 146448   ;;  %vm8304_vm7 = vcmask 138248   ;;  %v3271_v40 = vld [vmem:[#allocation2 + $0x8] sm:$0xff] }
 0x3f0   : > { %2451 = vst.msk [vmem:[#allocation2 + $0xcb] sm:$0xff] %vm8303_vm5, %v2446_v46  ;;  %v2772_v51 = vsel %vm1070_vm4, %v2758_v38, %v2771_v20  ;;  %v2921_v43 = vsel %vm1594_vm10, %v2920_v31, %v2916_v22  ;;  %v3085_v16 = vsel %vm1764_vm11, %v3084_v0, %v3080_v37  ;;  %v3249_v15 = vsel %vm1934_vm12, %v3248_v21, %v3244_v25  ;;  %v3542_v20 = vld [vmem:[#allocation2 + $0x4a] sm:$0xff]  ;;  %v3550_v31 = vld [vmem:[#allocation2 + $0xf2] sm:$0xff]  ;;  %v3582_v38 = vld [vmem:[#allocation2 + $0x122] sm:$0xff] }
 0x3f1   : > { %v3508_v52 = vadd.f32 %v3506_v41, %v3500_v3  ;;  %2614 = vst.msk [vmem:[#allocation2 + $0xe3] sm:$0xff] %vm8304_vm7, %v2609_v27  ;;  %v3530_v33 = vmul.f32 %v3529_v61, %v3526_v17  ;;  %v3098_v63 = vsel %vm1058_vm13, %v3085_v16, %v3076_v32  ;;  %v3262_v28 = vsel %vm8306_vm14, %v3249_v15, %v3261_v9  ;;  %v3287_v9 = vld [vmem:[#allocation2 + $0x20] sm:$0xff]  ;;  %v3303_v22 = vld [vmem:[#allocation2 + $0x38] sm:$0xff] }
 0x3f2   : > { %2777 = vst.msk [vmem:[#allocation2 + $0xfb] sm:$0xff] %vm8305_vm8, %v2772_v51  ;;  %v3545_v6 = vstv %s7234_s27  ;;  %v3538_v57 = vmul.f32 %v3537_v7, %v3534_v5  ;;  %v3553_v32 = vstv %s7242_s4  ;;  %v3558_v41 = vld [vmem:[#allocation2 + $0x62] sm:$0xff]  ;;  %v3561_v3 = vstv %s7252_s11  ;;  %s7300_s27 = sld [smem:[#allocation7 + $0x45]] }
 0x3f3   : > { %v3516_v44 = vadd.f32 %v3514_v12, %v3508_v52  ;;  %2941 = vst.msk [vmem:[#allocation2 + $0x11a] sm:$0x1] %vm1752_vm9, %v2921_v43  ;;  %v3546_v21 = vmul.f32 %v3545_v6, %v3542_v20  ;;  %v3554_v60 = vmul.f32 %v3553_v32, %v3550_v31  ;;  %v3569_v52 = vstv %s7262_s15  ;;  %v3319_v43 = vld [vmem:[#allocation2 + $0x50] sm:$0xff]  ;;  %s7545_s4 = sld [smem:[#allocation7 + $0x26]] }
 0x3f4   : > { %3105 = vst.msk [vmem:[#allocation2 + $0x131] sm:$0x3] %vm1922_vm15, %v3098_v63  ;;  %v3291_v36 = vmul.f32 %v3289_v35, %v3287_v9  ;;  %v3562_v24 = vmul.f32 %v3561_v3, %v3558_v41  ;;  %v3577_v39 = vstv %s7277_s19  ;;  %v3570_v35 = vmul.f32 %v3569_v52, %v3566_v53  ;;  %v3335_v9 = vld [vmem:[#allocation2 + $0x68] sm:$0xff]  ;;  %s7552_s11 = sld [smem:[#allocation7 + $0x57]] }
 0x3f5   : > { %v3524_v23 = vadd.f32 %v3522_v4, %v3516_v44  ;;  %3269 = vst.msk [vmem:[#allocation2 + $0x148] sm:$0x7] %vm2092_vm1, %v3262_v28  ;;  %v3279_v47 = vld [vmem:[#allocation2 + $0xb0] sm:$0xff]  ;;  %v3275_v4 = vmul.f32 %v3273_v58, %v3271_v40  ;;  %v3307_v27 = vmul.f32 %v3305_v56, %v3303_v22  ;;  %v3585_v5 = vstv %s7284_s28  ;;  %v3598_v40 = vld [vmem:[#allocation2 + $0x13a] sm:$0xff]  ;;  %s7557_s15 = sld [smem:[#allocation7 + $0x27]] }
 0x3f6   : > { %v3283_v12 = vmul.f32 %v3281_v19, %v3279_v47  ;;  %v3574_v19 = vld [vmem:[#allocation2 + $0x7a] sm:$0xff]  ;;  %v3586_v28 = vmul.f32 %v3585_v5, %v3582_v38  ;;  %v3609_v47 = vstv %s7305_s22  ;;  %v3339_v53 = vmul.f32 %v3337_v50, %v3335_v9  ;;  %s7566_s19 = sld [smem:[#allocation7 + $0x58]] }
 0x3f7   : > { %v3532_v59 = vadd.f32 %v3530_v33, %v3524_v23  ;;  %v3295_v49 = vld [vmem:[#allocation2 + $0xc8] sm:$0xff]  ;;  %v3578_v15 = vmul.f32 %v3577_v39, %v3574_v19  ;;  %v3593_v23 = vstv %s7291_s17  ;;  %v3625_v19 = vstv %s7319_s5  ;;  %v3367_v38 = vld [vmem:[#allocation2 + $0x98] sm:$0xff]  ;;  %s7571_s28 = sld [smem:[#allocation7 + $0x28]] }
 0x3f8   : > { %v3285_v58 = vadd.f32 %v3283_v12, %v3275_v4  ;;  %v3299_v25 = vmul.f32 %v3297_v54, %v3295_v49  ;;  %v3311_v46 = vld [vmem:[#allocation2 + $0xe0] sm:$0xff]  ;;  %v3590_v54 = vld [vmem:[#allocation2 + $0x92] sm:$0xff]  ;;  %s7580_s17 = sld [smem:[#allocation7 + $0x59]]  ;;  %vm8368_vm10 = vcmask 261120  }
 0x3f9   : > { %v3540_v0 = vadd.f32 %v3538_v57, %v3532_v59  ;;  %v3315_v63 = vmul.f32 %v3313_v18, %v3311_v46  ;;  %v3327_v20 = vld [vmem:[#allocation2 + $0xf8] sm:$0xff]  ;;  %v3323_v57 = vmul.f32 %v3321_v2, %v3319_v43  ;;  %v3601_v59 = vstv %s7300_s27  ;;  %v3606_v18 = vld [vmem:[#allocation2 + $0x3] sm:$0xff]  ;;  %v3343_v12 = vld [vmem:[#allocation2 + $0x110] sm:$0xff]  ;;  %s7585_s27 = sld [smem:[#allocation7 + $0x29]] }
 0x3fa   : > { %v3293_v37 = vadd.f32 %v3291_v36, %v3285_v58  ;;  %v3331_v4 = vmul.f32 %v3329_v13, %v3327_v20  ;;  %v3614_v49 = vld [vmem:[#allocation2 + $0xab] sm:$0xff]  ;;  %v3351_v58 = vld [vmem:[#allocation2 + $0x80] sm:$0xff]  ;;  %s7594_s22 = sld [smem:[#allocation7 + $0x5a]]  ;;  %vm8369_vm11 = vmmov %vm8368_vm10 }
 0x3fb   : > { %v3548_v48 = vadd.f32 %v3546_v21, %v3540_v0  ;;  %v3594_v21 = vmul.f32 %v3593_v23, %v3590_v54  ;;  %v3622_v13 = vld [vmem:[#allocation2 + $0x1b] sm:$0xff]  ;;  %v3630_v46 = vld [vmem:[#allocation2 + $0xc3] sm:$0xff]  ;;  %v3641_v54 = vstv %s7333_s29  ;;  %s7608_s5 = sld [smem:[#allocation7 + $0x5b]]  ;;  %vm8370_vm12 = vmmov %vm8368_vm10 }
 0x3fc   : > { %v3301_v51 = vadd.f32 %v3299_v25, %v3293_v37  ;;  %v3626_v43 = vmul.f32 %v3625_v19, %v3622_v13  ;;  %v3646_v20 = vld [vmem:[#allocation2 + $0xdb] sm:$0xff]  ;;  %s7622_s29 = sld [smem:[#allocation7 + $0x5c]]  ;;  %vm8371_vm13 = vmmov %vm8368_vm10 }
 0x3fd   : > { %v3556_v17 = vadd.f32 %v3554_v60, %v3548_v48  ;;  %v3602_v60 = vmul.f32 %v3601_v59, %v3598_v40  ;;  %v3617_v48 = vstv %s7311_s23  ;;  %v3383_v40 = vld [vmem:[#allocation2 + $0x9] sm:$0xff]  ;;  %s7599_s23 = sld [smem:[#allocation7 + $0x2a]]  ;;  %vm8372_vm4 = vmmov %vm8368_vm10 }
 0x3fe   : > { %v3309_v33 = vadd.f32 %v3307_v27, %v3301_v51  ;;  %v3618_v25 = vmul.f32 %v3617_v48, %v3614_v49  ;;  %v3355_v27 = vmul.f32 %v3353_v29, %v3351_v58  ;;  %v3387_v49 = vmul.f32 %v3385_v62, %v3383_v40  ;;  %vm8373_vm9 = vmmov %vm8372_vm4 }
 0x3ff   : > { %v3564_v44 = vadd.f32 %v3562_v24, %v3556_v17  ;;  %v3610_v17 = vmul.f32 %v3609_v47, %v3606_v18  ;;  %v3347_v24 = vmul.f32 %v3345_v42, %v3343_v12  ;;  %v3657_v18 = vstv %s7349_s26  ;;  %v3391_v12 = vld [vmem:[#allocation2 + $0xb1] sm:$0xff]  ;;  %s7636_s26 = sld [smem:[#allocation7 + $0x5d]]  ;;  %vm8374_vm15 = vmmov %vm8372_vm4 }
 0x400   : > { %v3317_v31 = vadd.f32 %v3315_v63, %v3309_v33  ;;  %v3375_v63 = vld [vmem:[#allocation2 + $0x140] sm:$0xff]  ;;  %v8313_v40 = vstv %s7077_s3  ;;  %s8317_s3 = sld [smem:[#allocation77_spill]]  ;;  %vm8375_vm1 = vmmov %vm8372_vm4 }
 0x401   : > { %v3572_v16 = vadd.f32 %v3570_v35, %v3564_v44  ;;  %v3359_v35 = vld [vmem:[#allocation2 + $0x128] sm:$0xff]  ;;  %v3633_v44 = vstv %s7325_s10  ;;  %8318 = sst [smem:[#allocation77_spill]] %s7426_s14  ;;  %vm8376_vm0 = vmmov %vm8375_vm1 }
 0x402   : > { %v3325_v41 = vadd.f32 %v3323_v57, %v3317_v31  ;;  %v3371_v57 = vmul.f32 %v3369_v34, %v3367_v38  ;;  %8338 = sst [smem:[#allocation80_spill]] %s7594_s22  ;;  %vm8377_vm2 = vmmov %vm8376_vm0 }
 0x403   : > { %v3580_v56 = vadd.f32 %v3578_v15, %v3572_v16  ;;  %v3638_v16 = vld [vmem:[#allocation2 + $0x33] sm:$0xff]  ;;  %v3363_v15 = vmul.f32 %v3361_v14, %v3359_v35  ;;  %v3407_v35 = vld [vmem:[#allocation2 + $0xc9] sm:$0xff]  ;;  %8339 = sst [smem:[#allocation81_spill]] %s7599_s23  ;;  %vm8378_vm3 = vmmov %vm8376_vm0 }
 0x404   : > { %v3333_v36 = vadd.f32 %v3331_v4, %v3325_v41  ;;  %v3642_v9 = vmul.f32 %v3641_v54, %v3638_v16  ;;  %s7613_s10 = sld [smem:[#allocation7 + $0x2b]]  ;;  %vm8379_vm6 = vmmov %vm8376_vm0 }
 0x405   : > { %v3588_v0 = vadd.f32 %v3586_v28, %v3580_v56  ;;  %v3634_v56 = vmul.f32 %v3633_v44, %v3630_v46  ;;  %v3649_v28 = vstv %s7340_s9  ;;  %s7627_s9 = sld [smem:[#allocation7 + $0x2c]]  ;;  %vm8380_vm5 = vmmov %vm8376_vm0 }
 0x406   : > { %v3341_v37 = vadd.f32 %v3339_v53, %v3333_v36  ;;  %v3650_v34 = vmul.f32 %v3649_v28, %v3646_v20  ;;  %v3399_v53 = vld [vmem:[#allocation2 + $0x21] sm:$0xff]  ;;  %8342 = sst [smem:[#allocation85_spill]] %s7636_s26  ;;  %vm8381_vm7 = vmmov %vm8376_vm0 }
 0x407   : > { %v3596_v2 = vadd.f32 %v3594_v21, %v3588_v0  ;;  %v3654_v0 = vld [vmem:[#allocation2 + $0x4b] sm:$0xff]  ;;  %v3379_v21 = vmul.f32 %v3377_v11, %v3375_v63  ;;  %vm8382_vm8 = vmmov %vm8376_vm0 }
 0x408   : > { %v3349_v42 = vadd.f32 %v3347_v24, %v3341_v37  ;;  %v3658_v58 = vmul.f32 %v3657_v18, %v3654_v0  ;;  %v8309_v24 = vstv %s7062_s0  ;;  %s7403_s0 = sld [smem:[#allocation7 + $0x1c]]  ;;  %v3697_v0 = vstv %s7384_s8  ;;  %vm8383_vm14 = vmmov %vm8376_vm0 }
 0x409   : > { %v3604_v22 = vadd.f32 %v3602_v60, %v3596_v2  ;;  %v3665_v2 = vstv %s7354_s20  ;;  %v3662_v60 = vld [vmem:[#allocation2 + $0xf3] sm:$0xff]  ;;  %v3395_v37 = vmul.f32 %v8309_v24, %v3391_v12  ;;  %s7431_s8 = sld [smem:[#allocation7 + $0x1e]] }
 0x40a   : > { %v3357_v33 = vadd.f32 %v3355_v27, %v3349_v42  ;;  %v3666_v62 = vmul.f32 %v3665_v2, %v3662_v60  ;;  %v3678_v27 = vld [vmem:[#allocation2 + $0x10b] sm:$0xff]  ;;  %v3681_v42 = vstv %s7370_s30  ;;  %v3702_v12 = vld [vmem:[#allocation2 + $0x93] sm:$0xff]  ;;  %v3705_v60 = vstv %s7389_s13  ;;  %s7440_s13 = sld [smem:[#allocation7 + $0x4f]] }
 0x40b   : > { %v3612_v50 = vadd.f32 %v3610_v17, %v3604_v22  ;;  %v3670_v22 = vld [vmem:[#allocation2 + $0x63] sm:$0xff]  ;;  %v3673_v17 = vstv %s7363_s25  ;;  %8340 = sst [smem:[#allocation84_spill]] %s7613_s10 }
 0x40c   : > { %v3365_v14 = vadd.f32 %v3363_v15, %v3357_v33  ;;  %v3674_v16 = vmul.f32 %v3673_v17, %v3670_v22  ;;  %v3686_v15 = vld [vmem:[#allocation2 + $0x7b] sm:$0xff]  ;;  %v3689_v33 = vstv %s7377_s12  ;;  %8341 = sst [smem:[#allocation82_spill]] %s7627_s9 }
 0x40d   : > { %v3620_v51 = vadd.f32 %v3618_v25, %v3612_v50  ;;  %v8310_v50 = vstv %s7067_s1  ;;  %s7412_s1 = sld [smem:[#allocation7 + $0x4d]]  ;;  %v3439_v22 = vld [vmem:[#allocation2 + $0xf9] sm:$0xff] }
 0x40e   : > { %v3373_v41 = vadd.f32 %v3371_v57, %v3365_v14  ;;  %v3403_v46 = vmul.f32 %v8310_v50, %v3399_v53  ;;  %8311 = sst [smem:[#allocation89_spill]] %s7403_s0  ;;  %v3682_v57 = vmul.f32 %v3681_v42, %v3678_v27  ;;  %v3423_v14 = vld [vmem:[#allocation2 + $0xe1] sm:$0xff] }
 0x40f   : > { %v3628_v29 = vadd.f32 %v3626_v43, %v3620_v51  ;;  %v3415_v51 = vld [vmem:[#allocation2 + $0x39] sm:$0xff]  ;;  %v3718_v27 = vld [vmem:[#allocation2 + $0x4] sm:$0xff]  ;;  %s7641_s20 = sld [smem:[#allocation7 + $0x2d]] }
 0x410   : > { %v3381_v11 = vadd.f32 %v3379_v21, %v3373_v41  ;;  %v3431_v41 = vld [vmem:[#allocation2 + $0x51] sm:$0xff]  ;;  %s7655_s30 = sld [smem:[#allocation7 + $0x2e]] }
 0x411   : > { %v3636_v31 = vadd.f32 %v3634_v56, %v3628_v29  ;;  %v8312_v56 = vstv %s7072_s2  ;;  %s7417_s2 = sld [smem:[#allocation7 + $0x1d]] }
 0x412   : > { %v3389_v13 = vadd.f32 %v3387_v49, %v3381_v11  ;;  %v3411_v29 = vmul.f32 %v8312_v56, %v3407_v35  ;;  %v8315_v11 = vstv %s7082_s24  ;;  %v3447_v35 = vld [vmem:[#allocation2 + $0x69] sm:$0xff]  ;;  %s8319_s24 = sld [smem:[#allocation78_spill]] }
 0x413   : > { %v3644_v4 = vadd.f32 %v3642_v9, %v3636_v31  ;;  %v3419_v31 = vmul.f32 %v8313_v40, %v3415_v51  ;;  %v3694_v9 = vld [vmem:[#allocation2 + $0x123] sm:$0xff]  ;;  %v3427_v53 = vmul.f32 %v8315_v11, %v3423_v14  ;;  %8320 = sst [smem:[#allocation78_spill]] %s7431_s8  ;;  %v3726_v40 = vld [vmem:[#allocation2 + $0xac] sm:$0xff] }
 0x414   : > { %v3397_v38 = vadd.f32 %v3395_v37, %v3389_v13  ;;  %v8316_v13 = vstv %s7089_s16  ;;  %v3710_v37 = vld [vmem:[#allocation2 + $0x13b] sm:$0xff]  ;;  %s8323_s16 = sld [smem:[#allocation76_spill]]  ;;  %v3471_v11 = vld [vmem:[#allocation2 + $0x129] sm:$0xff] }
 0x415   : > { %v3652_v36 = vadd.f32 %v3650_v34, %v3644_v4  ;;  %v3690_v4 = vmul.f32 %v3689_v33, %v3686_v15  ;;  %v3435_v24 = vmul.f32 %v8316_v13, %v3431_v41  ;;  %v3455_v15 = vld [vmem:[#allocation2 + $0x111] sm:$0xff]  ;;  %8324 = sst [smem:[#allocation76_spill]] %s7440_s13  ;;  %v3745_v13 = vstv %s7426_s14 }
 0x416   : > { %v3405_v63 = vadd.f32 %v3403_v46, %v3397_v38  ;;  %v3706_v46 = vmul.f32 %v3705_v60, %v3702_v12  ;;  %v3721_v38 = vstv %s7403_s0  ;;  %s7454_s0 = sld [smem:[#allocation7 + $0x50]] }
 0x417   : > { %v3660_v25 = vadd.f32 %v3658_v58, %v3652_v36  ;;  %8314 = sst [smem:[#allocation90_spill]] %s7417_s2  ;;  %v3698_v58 = vmul.f32 %v3697_v0, %v3694_v9  ;;  %v3737_v12 = vstv %s7417_s2 }
 0x418   : > { %v3413_v21 = vadd.f32 %v3411_v29, %v3405_v63  ;;  %v8322_v29 = vstv %s8317_s3  ;;  %v8325_v41 = vstv %s8319_s24  ;;  %s7461_s24 = sld [smem:[#allocation7 + $0x20]] }
 0x419   : > { %v3668_v43 = vadd.f32 %v3666_v62, %v3660_v25  ;;  %v3713_v62 = vstv %s7398_s7  ;;  %s7468_s2 = sld [smem:[#allocation7 + $0x51]] }
 0x41a   : > { %v3421_v49 = vadd.f32 %v3419_v31, %v3413_v21  ;;  %v3714_v56 = vmul.f32 %v3713_v62, %v3710_v37  ;;  %v3463_v31 = vld [vmem:[#allocation2 + $0x81] sm:$0xff]  ;;  %v3722_v21 = vmul.f32 %v3721_v38, %v3718_v27  ;;  %v3750_v27 = vld [vmem:[#allocation2 + $0x34] sm:$0xff]  ;;  %s7482_s14 = sld [smem:[#allocation7 + $0x52]] }
 0x41b   : > { %v3676_v20 = vadd.f32 %v3674_v16, %v3668_v43  ;;  %v8321_v43 = vstv %s7094_s21  ;;  %s7447_s21 = sld [smem:[#allocation7 + $0x1f]]  ;;  %v3742_v37 = vld [vmem:[#allocation2 + $0xc4] sm:$0xff] }
 0x41c   : > { %v3429_v25 = vadd.f32 %v3427_v53, %v3421_v49  ;;  %v3443_v16 = vmul.f32 %v8321_v43, %v3439_v22  ;;  %8329 = sst [smem:[#allocation79_spill]] %s7454_s0 }
 0x41d   : > { %v3684_v34 = vadd.f32 %v3682_v57, %v3676_v20  ;;  %v3451_v20 = vmul.f32 %v8322_v29, %v3447_v35  ;;  %v3729_v57 = vstv %s7412_s1  ;;  %v3761_v29 = vstv %s7440_s13  ;;  %s7496_s13 = sld [smem:[#allocation7 + $0x53]] }
 0x41e   : > { %v3437_v51 = vadd.f32 %v3435_v24, %v3429_v25  ;;  %v3479_v25 = vld [vmem:[#allocation2 + $0x99] sm:$0xff]  ;;  %8330 = sst [smem:[#allocation92_spill]] %s7461_s24 }
 0x41f   : > { %v3692_v36 = vadd.f32 %v3690_v4, %v3684_v34  ;;  %v3459_v34 = vmul.f32 %v8325_v41, %v3455_v15  ;;  %v3734_v4 = vld [vmem:[#allocation2 + $0x1c] sm:$0xff]  ;;  %s7501_s3 = sld [smem:[#allocation7 + $0x23]] }
 0x420   : > { %v3445_v14 = vadd.f32 %v3443_v16, %v3437_v51  ;;  %v3738_v35 = vmul.f32 %v3737_v12, %v3734_v4  ;;  %v3753_v51 = vstv %s7431_s8  ;;  %v3487_v16 = vld [vmem:[#allocation2 + $0x141] sm:$0xff]  ;;  %s7529_s8 = sld [smem:[#allocation7 + $0x25]] }
 0x421   : > { %v3700_v50 = vadd.f32 %v3698_v58, %v3692_v36  ;;  %8326 = sst [smem:[#allocation91_spill]] %s7447_s21  ;;  %v3730_v36 = vmul.f32 %v3729_v57, %v3726_v40  ;;  %v8327_v58 = vstv %s8323_s16  ;;  %v3754_v40 = vmul.f32 %v3753_v51, %v3750_v27 }
 0x422   : > { %v3453_v49 = vadd.f32 %v3451_v20, %v3445_v14  ;;  %v3467_v22 = vmul.f32 %v8327_v58, %v3463_v31  ;;  %v3758_v20 = vld [vmem:[#allocation2 + $0xdc] sm:$0xff]  ;;  %v3495_v14 = vld [vmem:[#allocation2 + $0xa] sm:$0xff]  ;;  %v3774_v58 = vld [vmem:[#allocation2 + $0xf4] sm:$0xff]  ;;  %s7487_s16 = sld [smem:[#allocation7 + $0x22]] }
 0x423   : > { %v3708_v63 = vadd.f32 %v3706_v46, %v3700_v50  ;;  %v3475_v46 = vmul.f32 %v3473_v26, %v3471_v11  ;;  %v3499_v11 = vmul.f32 %v3497_v1, %v3495_v14  ;;  %v3801_v14 = vstv %s7473_s18  ;;  %8343 = sst [smem:[#allocation83_spill]] %s7641_s20 }
 0x424   : > { %v3461_v24 = vadd.f32 %v3459_v34, %v3453_v49  ;;  %v3503_v34 = vld [vmem:[#allocation2 + $0xb2] sm:$0xff]  ;;  %v3762_v49 = vmul.f32 %v3761_v29, %v3758_v20  ;;  %v3798_v20 = vld [vmem:[#allocation2 + $0x7c] sm:$0xff]  ;;  %8346 = sst [smem:[#allocation86_spill]] %s7655_s30 }
 0x425   : > { %v3716_v9 = vadd.f32 %v3714_v56, %v3708_v63  ;;  %v3746_v63 = vmul.f32 %v3745_v13, %v3742_v37  ;;  %v3483_v56 = vmul.f32 %v3481_v8, %v3479_v25  ;;  %v3491_v8 = vmul.f32 %v3489_v55, %v3487_v16  ;;  %v3782_v37 = vld [vmem:[#allocation2 + $0x64] sm:$0xff]  ;;  %v3790_v16 = vld [vmem:[#allocation2 + $0x10c] sm:$0xff]  ;;  %s7669_s25 = sld [smem:[#allocation7 + $0x2f]] }
 0x426   : > { %v3469_v43 = vadd.f32 %v3467_v22, %v3461_v24  ;;  %v3511_v22 = vld [vmem:[#allocation2 + $0x22] sm:$0xff]  ;;  %v3785_v25 = vstv %s7461_s24  ;;  %v3507_v1 = vmul.f32 %v3505_v10, %v3503_v34  ;;  %s7538_s24 = sld [smem:[#allocation7 + $0x56]] }
 0x427   : > { %v3724_v53 = vadd.f32 %v3722_v21, %v3716_v9  ;;  %v3766_v9 = vld [vmem:[#allocation2 + $0x4c] sm:$0xff]  ;;  %v3769_v21 = vstv %s7447_s21  ;;  %v3806_v34 = vld [vmem:[#allocation2 + $0x124] sm:$0xff]  ;;  %s7524_s21 = sld [smem:[#allocation7 + $0x55]] }
 0x428   : > { %v3477_v26 = vadd.f32 %v3475_v46, %v3469_v43  ;;  %v3770_v24 = vmul.f32 %v3769_v21, %v3766_v9  ;;  %v3515_v43 = vmul.f32 %v3513_v45, %v3511_v22  ;;  %v3535_v9 = vld [vmem:[#allocation2 + $0xe2] sm:$0xff]  ;;  %v3817_v22 = vstv %s7487_s16  ;;  %s7683_s7 = sld [smem:[#allocation7 + $0x30]] }
 0x429   : > { %v3732_v50 = vadd.f32 %v3730_v36, %v3724_v53  ;;  %v3777_v53 = vstv %s7454_s0  ;;  %s7510_s0 = sld [smem:[#allocation7 + $0x54]] }
 0x42a   : > { %v3485_v41 = vadd.f32 %v3483_v56, %v3477_v26  ;;  %v3778_v27 = vmul.f32 %v3777_v53, %v3774_v58  ;;  %v3527_v56 = vld [vmem:[#allocation2 + $0x3a] sm:$0xff]  ;;  %v3786_v26 = vmul.f32 %v3785_v25, %v3782_v37 }
 0x42b   : > { %v3740_v15 = vadd.f32 %v3738_v35, %v3732_v50  ;;  %v3519_v50 = vld [vmem:[#allocation2 + $0xca] sm:$0xff]  ;;  %v3814_v58 = vld [vmem:[#allocation2 + $0x94] sm:$0xff] }
 0x42c   : > { %v3493_v36 = vadd.f32 %v3491_v8, %v3485_v41  ;;  %v3523_v45 = vmul.f32 %v3521_v30, %v3519_v50  ;;  %v3531_v8 = vmul.f32 %v3529_v61, %v3527_v56  ;;  %v3539_v61 = vmul.f32 %v3537_v7, %v3535_v9  ;;  %v3551_v37 = vld [vmem:[#allocation2 + $0xfa] sm:$0xff] }
 0x42d   : > { %v3748_v31 = vadd.f32 %v3746_v63, %v3740_v15  ;;  %v3793_v15 = vstv %s7468_s2  ;;  %v3822_v50 = vld [vmem:[#allocation2 + $0x13c] sm:$0xff]  ;;  %v3833_v56 = vstv %s7501_s3 }
 0x42e   : > { %v3501_v35 = vadd.f32 %v3499_v11, %v3493_v36  ;;  %v3543_v11 = vld [vmem:[#allocation2 + $0x52] sm:$0xff]  ;;  %v3802_v36 = vmul.f32 %v3801_v14, %v3798_v20 }
 0x42f   : > { %v3756_v4 = vadd.f32 %v3754_v40, %v3748_v31  ;;  %v3794_v31 = vmul.f32 %v3793_v15, %v3790_v16  ;;  %v3818_v16 = vmul.f32 %v3817_v22, %v3814_v58 }
 0x430   : > { %v3509_v63 = vadd.f32 %v3507_v1, %v3501_v35  ;;  %v3547_v1 = vmul.f32 %v3545_v6, %v3543_v11  ;;  %v3555_v6 = vmul.f32 %v3553_v32, %v3551_v37  ;;  %v3846_v11 = vld [vmem:[#allocation2 + $0x1d] sm:$0xff]  ;;  %v3854_v37 = vld [vmem:[#allocation2 + $0xc5] sm:$0xff] }
 0x431   : > { %v3764_v55 = vadd.f32 %v3762_v49, %v3756_v4  ;;  %v3809_v4 = vstv %s7482_s14 }
 0x432   : > { %v3517_v40 = vadd.f32 %v3515_v43, %v3509_v63  ;;  %v3559_v43 = vld [vmem:[#allocation2 + $0x6a] sm:$0xff] }
 0x433   : > { %v3772_v46 = vadd.f32 %v3770_v24, %v3764_v55  ;;  %v3810_v55 = vmul.f32 %v3809_v4, %v3806_v34  ;;  %v3830_v63 = vld [vmem:[#allocation2 + $0x5] sm:$0xff] }
 0x434   : > { %v3525_v49 = vadd.f32 %v3523_v45, %v3517_v40  ;;  %v3563_v45 = vmul.f32 %v3561_v3, %v3559_v43  ;;  %v3834_v34 = vmul.f32 %v3833_v56, %v3830_v63  ;;  %v3865_v43 = vstv %s7529_s8 }
 0x435   : > { %v3780_v10 = vadd.f32 %v3778_v27, %v3772_v46  ;;  %v3825_v46 = vstv %s7496_s13 }
 0x436   : > { %v3533_v24 = vadd.f32 %v3531_v8, %v3525_v49  ;;  %v3826_v20 = vmul.f32 %v3825_v46, %v3822_v50  ;;  %v3575_v8 = vld [vmem:[#allocation2 + $0x82] sm:$0xff] }
 0x437   : > { %v3788_v41 = vadd.f32 %v3786_v26, %v3780_v10  ;;  %v3567_v10 = vld [vmem:[#allocation2 + $0x112] sm:$0xff] }
 0x438   : > { %v3541_v27 = vadd.f32 %v3539_v61, %v3533_v24  ;;  %v3571_v32 = vmul.f32 %v3569_v52, %v3567_v10  ;;  %v3579_v61 = vmul.f32 %v3577_v39, %v3575_v8  ;;  %v3873_v10 = vstv %s7538_s24 }
 0x439   : > { %v3796_v30 = vadd.f32 %v3794_v31, %v3788_v41  ;;  %v3841_v31 = vstv %s7510_s0  ;;  %v3838_v41 = vld [vmem:[#allocation2 + $0xad] sm:$0xff]  ;;  %v3881_v8 = vstv %s7545_s4  ;;  %s8393_s4 = sld [smem:[#allocation16_spill]] }
 0x43a   : > { %v3549_v26 = vadd.f32 %v3547_v1, %v3541_v27  ;;  %v3842_v24 = vmul.f32 %v3841_v31, %v3838_v41  ;;  %v3862_v27 = vld [vmem:[#allocation2 + $0x35] sm:$0xff]  ;;  %v3878_v41 = vld [vmem:[#allocation2 + $0x4d] sm:$0xff] }
 0x43b   : > { %v3804_v35 = vadd.f32 %v3802_v36, %v3796_v30  ;;  %v3849_v36 = vstv %s7515_s6  ;;  %v3583_v30 = vld [vmem:[#allocation2 + $0x12a] sm:$0xff]  ;;  %s8364_s6 = sld [smem:[#allocation22_spill]] }
 0x43c   : > { %v3557_v9 = vadd.f32 %v3555_v6, %v3549_v26  ;;  %v3850_v1 = vmul.f32 %v3849_v36, %v3846_v11  ;;  %v3587_v39 = vmul.f32 %v3585_v5, %v3583_v30  ;;  %v3889_v30 = vstv %s7552_s11 }
 0x43d   : > { %v3812_v7 = vadd.f32 %v3810_v55, %v3804_v35  ;;  %v3857_v55 = vstv %s7524_s21  ;;  %v3591_v35 = vld [vmem:[#allocation2 + $0x9a] sm:$0xff]  ;;  %s8365_s21 = sld [smem:[#allocation21_spill]] }
 0x43e   : > { %v3565_v3 = vadd.f32 %v3563_v45, %v3557_v9  ;;  %v3858_v26 = vmul.f32 %v3857_v55, %v3854_v37  ;;  %v3595_v6 = vmul.f32 %v3593_v23, %v3591_v35  ;;  %v3607_v45 = vld [vmem:[#allocation2 + $0xb] sm:$0xff]  ;;  %v3866_v9 = vmul.f32 %v3865_v43, %v3862_v27 }
 0x43f   : > { %v3820_v40 = vadd.f32 %v3818_v16, %v3812_v7  ;;  %v3599_v7 = vld [vmem:[#allocation2 + $0x142] sm:$0xff]  ;;  %v3897_v35 = vstv %s7557_s15  ;;  %s4589_s11 = sshll.u32 %s8393_s4, 12 }
 0x440   : > { %v3573_v52 = vadd.f32 %v3571_v32, %v3565_v3  ;;  %v3603_v23 = vmul.f32 %v3601_v59, %v3599_v7  ;;  %v3611_v3 = vmul.f32 %v3609_v47, %v3607_v45  ;;  %v3894_v37 = vld [vmem:[#allocation2 + $0x65] sm:$0xff]  ;;  %v3902_v7 = vld [vmem:[#allocation2 + $0x10d] sm:$0xff]  ;;  %v3913_v45 = vstv %s7571_s28 }
 0x441   : > { %v3828_v49 = vadd.f32 %v3826_v20, %v3820_v40  ;;  %v3870_v40 = vld [vmem:[#allocation2 + $0xdd] sm:$0xff] }
 0x442   : > { %v3581_v16 = vadd.f32 %v3579_v61, %v3573_v52  ;;  %v3874_v11 = vmul.f32 %v3873_v10, %v3870_v40  ;;  %v3623_v61 = vld [vmem:[#allocation2 + $0x23] sm:$0xff]  ;;  %v3882_v52 = vmul.f32 %v3881_v8, %v3878_v41 }
 0x443   : > { %v3836_v58 = vadd.f32 %v3834_v34, %v3828_v49  ;;  %v3615_v49 = vld [vmem:[#allocation2 + $0xb3] sm:$0xff]  ;;  %v3910_v40 = vld [vmem:[#allocation2 + $0x7d] sm:$0xff]  ;;  %s8367_s8 = sshll.u32 %s8365_s21, 8 }
 0x444   : > { %v3589_v20 = vadd.f32 %v3587_v39, %v3581_v16  ;;  %v3619_v47 = vmul.f32 %v3617_v48, %v3615_v49  ;;  %v3627_v39 = vmul.f32 %v3625_v19, %v3623_v61  ;;  %v3647_v41 = vld [vmem:[#allocation2 + $0xe3] sm:$0xff]  ;;  %v3929_v61 = vstv %s7585_s27  ;;  %s7835_s24 = scalar_lea.vmem [#allocation8], %s8367_s8  ;;  %s8399_s27 = sld [smem:[#allocation97_spill]] }
 0x445   : > { %v3844_v50 = vadd.f32 %v3842_v24, %v3836_v58  ;;  %v3886_v24 = vld [vmem:[#allocation2 + $0xf5] sm:$0xff]  ;;  %v3918_v49 = vld [vmem:[#allocation2 + $0x125] sm:$0xff]  ;;  %s4384_s15 = sshll.u32 %s7835_s24, 4  ;;  %s7962_s15 = int_to_ptr.vmem [resolvable:$true] %s4384_s15 }
 0x446   : > { %v3597_v34 = vadd.f32 %v3595_v6, %v3589_v20  ;;  %v3890_v16 = vmul.f32 %v3889_v30, %v3886_v24  ;;  %v3639_v6 = vld [vmem:[#allocation2 + $0x3b] sm:$0xff]  ;;  %v3898_v20 = vmul.f32 %v3897_v35, %v3894_v37 }
 0x447   : > { %v3852_v63 = vadd.f32 %v3850_v1, %v3844_v50  ;;  %v3631_v50 = vld [vmem:[#allocation2 + $0xcb] sm:$0xff]  ;;  %v3926_v24 = vld [vmem:[#allocation2 + $0x95] sm:$0xff] }
 0x448   : > { %v3605_v58 = vadd.f32 %v3603_v23, %v3597_v34  ;;  %v3635_v19 = vmul.f32 %v3633_v44, %v3631_v50  ;;  %v3643_v23 = vmul.f32 %v3641_v54, %v3639_v6  ;;  %v3651_v54 = vmul.f32 %v3649_v28, %v3647_v41  ;;  %v3663_v37 = vld [vmem:[#allocation2 + $0xfb] sm:$0xff] }
 0x449   : > { %v3860_v5 = vadd.f32 %v3858_v26, %v3852_v63  ;;  %v3905_v63 = vstv %s7566_s19  ;;  %v3934_v50 = vld [vmem:[#allocation2 + $0x13d] sm:$0xff]  ;;  %v3945_v6 = vstv %s7599_s23  ;;  %s8397_s19 = sld [smem:[#allocation19_spill]] }
 0x44a   : > { %v3613_v1 = vadd.f32 %v3611_v3, %v3605_v58  ;;  %v3655_v3 = vld [vmem:[#allocation2 + $0x53] sm:$0xff]  ;;  %v3914_v58 = vmul.f32 %v3913_v45, %v3910_v40 }
 0x44b   : > { %v3868_v32 = vadd.f32 %v3866_v9, %v3860_v5  ;;  %v3906_v5 = vmul.f32 %v3905_v63, %v3902_v7  ;;  %v3930_v7 = vmul.f32 %v3929_v61, %v3926_v24  ;;  %v3679_v40 = vld [vmem:[#allocation2 + $0x113] sm:$0xff] }
 0x44c   : > { %v3621_v26 = vadd.f32 %v3619_v47, %v3613_v1  ;;  %v3659_v47 = vmul.f32 %v3657_v18, %v3655_v3  ;;  %v3667_v18 = vmul.f32 %v3665_v2, %v3663_v37  ;;  %v3961_v3 = vstv %s7613_s10  ;;  %s7664_s10 = sld [smem:[#allocation7 + $0x5f]] }
 0x44d   : > { %v3876_v59 = vadd.f32 %v3874_v11, %v3868_v32  ;;  %v3921_v32 = vstv %s7580_s17 }
 0x44e   : > { %v3629_v9 = vadd.f32 %v3627_v39, %v3621_v26  ;;  %v3671_v39 = vld [vmem:[#allocation2 + $0x6b] sm:$0xff] }
 0x44f   : > { %v3884_v27 = vadd.f32 %v3882_v52, %v3876_v59  ;;  %v3922_v59 = vmul.f32 %v3921_v32, %v3918_v49  ;;  %v3942_v26 = vld [vmem:[#allocation2 + $0x6] sm:$0xff]  ;;  %p8402_p0 = scmp.ne.s32.totalorder %s8397_s19, 0 }
 0x450   : > { %v3637_v11 = vadd.f32 %v3635_v19, %v3629_v9  ;;  %v3675_v19 = vmul.f32 %v3673_v17, %v3671_v39  ;;  %v3946_v49 = vmul.f32 %v3945_v6, %v3942_v26  ;;  %v3683_v17 = vmul.f32 %v3681_v42, %v3679_v40 }
 0x451   : > { %v3892_v48 = vadd.f32 %v3890_v16, %v3884_v27  ;;  %v3937_v27 = vstv %s7594_s22  ;;  %s7650_s22 = sld [smem:[#allocation7 + $0x5e]]  ;;  %v3977_v39 = vstv %s7627_s9 }
 0x452   : > { %v3645_v52 = vadd.f32 %v3643_v23, %v3637_v11  ;;  %v3687_v23 = vld [vmem:[#allocation2 + $0x83] sm:$0xff]  ;;  %s7678_s9 = sld [smem:[#allocation7 + $0x60]] }
 0x453   : > { %v3900_v34 = vadd.f32 %v3898_v20, %v3892_v48  ;;  %v3938_v48 = vmul.f32 %v3937_v27, %v3934_v50  ;;  %v3958_v11 = vld [vmem:[#allocation2 + $0x1e] sm:$0xff] }
 0x454   : > { %v3653_v16 = vadd.f32 %v3651_v54, %v3645_v52  ;;  %v3691_v54 = vmul.f32 %v3689_v33, %v3687_v23  ;;  %v3962_v50 = vmul.f32 %v3961_v3, %v3958_v11  ;;  %v3993_v23 = vstv %s7641_s20  ;;  %s7692_s20 = sld [smem:[#allocation7 + $0x61]] }
 0x455   : > { %v3908_v44 = vadd.f32 %v3906_v5, %v3900_v34  ;;  %v3953_v5 = vstv %s7608_s5  ;;  %v3950_v34 = vld [vmem:[#allocation2 + $0xae] sm:$0xff]  ;;  %s4371_s5 = scalar_lea.sflag [#allocation5], %s8365_s21 }
 0x456   : > { %v3661_v20 = vadd.f32 %v3659_v47, %v3653_v16  ;;  %v3954_v52 = vmul.f32 %v3953_v5, %v3950_v34  ;;  %v3703_v47 = vld [vmem:[#allocation2 + $0x9b] sm:$0xff]  ;;  %v3990_v34 = vld [vmem:[#allocation2 + $0x4e] sm:$0xff] }
 0x457   : > { %v3916_v1 = vadd.f32 %v3914_v58, %v3908_v44  ;;  %v3695_v44 = vld [vmem:[#allocation2 + $0x12b] sm:$0xff]  ;;  %v3974_v16 = vld [vmem:[#allocation2 + $0x36] sm:$0xff] }
 0x458   : > { %v3669_v41 = vadd.f32 %v3667_v18, %v3661_v20  ;;  %v3699_v33 = vmul.f32 %v3697_v0, %v3695_v44  ;;  %v3707_v18 = vmul.f32 %v3705_v60, %v3703_v47  ;;  %v4001_v44 = vstv %s7650_s22  ;;  %s7960_s22 = scalar_lea.hbm %s8399_s27, %s4589_s11 }
 0x459   : > { %v3924_v28 = vadd.f32 %v3922_v59, %v3916_v1  ;;  %v3969_v59 = vstv %s7622_s29  ;;  %v3966_v1 = vld [vmem:[#allocation2 + $0xc6] sm:$0xff]  ;;  %v4009_v47 = vstv %s7655_s30  ;;  %s4839_s29 = smov [#allocation8]  }
 0x45a   : > { %v3677_v58 = vadd.f32 %v3675_v19, %v3669_v41  ;;  %v3970_v20 = vmul.f32 %v3969_v59, %v3966_v1  ;;  %v3719_v19 = vld [vmem:[#allocation2 + $0xc] sm:$0xff]  ;;  %v3978_v41 = vmul.f32 %v3977_v39, %v3974_v16 }
 0x45b   : > { %v3932_v9 = vadd.f32 %v3930_v7, %v3924_v28  ;;  %v3711_v28 = vld [vmem:[#allocation2 + $0x143] sm:$0xff] }
 0x45c   : > { %v3685_v37 = vadd.f32 %v3683_v17, %v3677_v58  ;;  %v3715_v60 = vmul.f32 %v3713_v62, %v3711_v28  ;;  %v3723_v17 = vmul.f32 %v3721_v38, %v3719_v19  ;;  %v4006_v1 = vld [vmem:[#allocation2 + $0x66] sm:$0xff]  ;;  %v4014_v28 = vld [vmem:[#allocation2 + $0x10e] sm:$0xff]  ;;  %v4025_v19 = vstv %s7669_s25 }
 0x45d   : > { %v3940_v2 = vadd.f32 %v3938_v48, %v3932_v9  ;;  %v3985_v48 = vstv %s7636_s26  ;;  %v3982_v9 = vld [vmem:[#allocation2 + $0xde] sm:$0xff] }
 0x45e   : > { %v3693_v7 = vadd.f32 %v3691_v54, %v3685_v37  ;;  %v3986_v58 = vmul.f32 %v3985_v48, %v3982_v9  ;;  %v3735_v54 = vld [vmem:[#allocation2 + $0x24] sm:$0xff]  ;;  %v3994_v37 = vmul.f32 %v3993_v23, %v3990_v34 }
 0x45f   : > { %v3948_v24 = vadd.f32 %v3946_v49, %v3940_v2  ;;  %v3727_v2 = vld [vmem:[#allocation2 + $0xb4] sm:$0xff]  ;;  %v3759_v34 = vld [vmem:[#allocation2 + $0xe4] sm:$0xff] }
 0x460   : > { %v3701_v40 = vadd.f32 %v3699_v33, %v3693_v7  ;;  %v3731_v38 = vmul.f32 %v3729_v57, %v3727_v2  ;;  %v3739_v33 = vmul.f32 %v3737_v12, %v3735_v54  ;;  %v4022_v57 = vld [vmem:[#allocation2 + $0x7e] sm:$0xff]  ;;  %v4030_v2 = vld [vmem:[#allocation2 + $0x126] sm:$0xff]  ;;  %v4038_v54 = vld [vmem:[#allocation2 + $0x96] sm:$0xff] }
 0x461   : > { %v3956_v42 = vadd.f32 %v3954_v52, %v3948_v24  ;;  %v3998_v52 = vld [vmem:[#allocation2 + $0xf6] sm:$0xff] }
 0x462   : > { %v3709_v49 = vadd.f32 %v3707_v18, %v3701_v40  ;;  %v4002_v7 = vmul.f32 %v4001_v44, %v3998_v52  ;;  %v3751_v18 = vld [vmem:[#allocation2 + $0x3c] sm:$0xff]  ;;  %v4010_v40 = vmul.f32 %v4009_v47, %v4006_v1 }
 0x463   : > { %v3964_v26 = vadd.f32 %v3962_v50, %v3956_v42  ;;  %v3743_v42 = vld [vmem:[#allocation2 + $0xcc] sm:$0xff] }
 0x464   : > { %v3717_v24 = vadd.f32 %v3715_v60, %v3709_v49  ;;  %v3755_v60 = vmul.f32 %v3753_v51, %v3751_v18  ;;  %v3775_v51 = vld [vmem:[#allocation2 + $0xfc] sm:$0xff] }
 0x465   : > { %v3972_v0 = vadd.f32 %v3970_v20, %v3964_v26  ;;  %v4017_v26 = vstv %s7664_s10  ;;  %s4763_s10 = scalar_lea.vmem %s7962_s15, 4096 }
 0x466   : > { %v3725_v50 = vadd.f32 %v3723_v17, %v3717_v24  ;;  %v4018_v12 = vmul.f32 %v4017_v26, %v4014_v28  ;;  %v3767_v17 = vld [vmem:[#allocation2 + $0x54] sm:$0xff]  ;;  %v4026_v24 = vmul.f32 %v4025_v19, %v4022_v57  ;;  %p4764_p12 = scmp.ne.s32.totalorder %s7962_s15, %s4763_s10 }
 0x467   : > { %v3980_v11 = vadd.f32 %v3978_v41, %v3972_v0  ;;  %v3747_v0 = vmul.f32 %v3745_v13, %v3743_v42  ;;  %v4041_v13 = vstv %s7683_s7  ;;  %v4046_v42 = vld [vmem:[#allocation2 + $0x13e] sm:$0xff] }
 0x468   : > { %v3733_v20 = vadd.f32 %v3731_v38, %v3725_v50  ;;  %v3771_v38 = vmul.f32 %v3769_v21, %v3767_v17  ;;  %v4042_v28 = vmul.f32 %v4041_v13, %v4038_v54  ;;  %v3815_v17 = vld [vmem:[#allocation2 + $0x9c] sm:$0xff]  ;;  %p4765_p2 = pnand %p4764_p12, %p8402_p0 }
 0x469   : > { %v3988_v62 = vadd.f32 %v3986_v58, %v3980_v11  ;;  %v4033_v11 = vstv %s7678_s9  ;;  %v3819_v54 = vmul.f32 %v3817_v22, %v3815_v17  ;;  %v3919_v17 = vld [vmem:[#allocation2 + $0x12d] sm:$0xff]  ;;  %s4767_s9 = sshll.u32 %s4839_s29, 4  ;;  %s4768_s9 = int_to_ptr.vmem [resolvable:$false] %s4767_s9 }
 0x46a   : > { %v3741_v41 = vadd.f32 %v3739_v33, %v3733_v20  ;;  %v4034_v1 = vmul.f32 %v4033_v11, %v4030_v2  ;;  %v3783_v33 = vld [vmem:[#allocation2 + $0x6c] sm:$0xff]  ;;  %p4766_p7 = pneg %p4765_p2  ;;  %s4769_s26 = scalar_lea.vmem %s4768_s9, 8192 }
 0x46b   : > { %v3996_v16 = vadd.f32 %v3994_v37, %v3988_v62  ;;  %v3763_v62 = vmul.f32 %v3761_v29, %v3759_v34  ;;  %v3787_v21 = vmul.f32 %v3785_v25, %v3783_v33  ;;  %p4770_p8 = scmp.lt.s32.totalorder %s7962_s15, %s4768_s9  ;;  %p4771_p9 = scmp.lt.s32.totalorder %s4769_s26, %s4763_s10 }
 0x46c   : > { %v3749_v58 = vadd.f32 %v3747_v0, %v3741_v41  ;;  %v3799_v0 = vld [vmem:[#allocation2 + $0x84] sm:$0xff] }
 0x46d   : > { %v4004_v9 = vadd.f32 %v4002_v7, %v3996_v16  ;;  %v4049_v16 = vstv %s7692_s20  ;;  %p4772_p10 = por %p4771_p9, %p4770_p8 }
 0x46e   : > { %v3757_v37 = vadd.f32 %v3755_v60, %v3749_v58  ;;  %v4050_v29 = vmul.f32 %v4049_v16, %v4046_v42  ;;  %v3807_v60 = vld [vmem:[#allocation2 + $0x12c] sm:$0xff] }
 0x46f   : > { %v4012_v49 = vadd.f32 %v4010_v40, %v4004_v9  ;;  %v3779_v40 = vmul.f32 %v3777_v53, %v3775_v51  ;;  %v3791_v9 = vld [vmem:[#allocation2 + $0x114] sm:$0xff]  ;;  %v3803_v53 = vmul.f32 %v3801_v14, %v3799_v0  ;;  %v3811_v25 = vmul.f32 %v3809_v4, %v3807_v60  ;;  %p4773_p1 = pnand %p4772_p10, %p4766_p7 }
 0x470   : > { %v3765_v7 = vadd.f32 %v3763_v62, %v3757_v37  ;;  %v3831_v62 = vld [vmem:[#allocation2 + $0xd] sm:$0xff]  ;;  %v3839_v51 = vld [vmem:[#allocation2 + $0xb5] sm:$0xff] }
 0x471   : > { %v4020_v52 = vadd.f32 %v4018_v12, %v4012_v49  ;;  %v3795_v49 = vmul.f32 %v3793_v15, %v3791_v9  ;;  %v3835_v14 = vmul.f32 %v3833_v56, %v3831_v62  ;;  %v3855_v4 = vld [vmem:[#allocation2 + $0xcd] sm:$0xff] }
 0x472   : > { %v3773_v18 = vadd.f32 %v3771_v38, %v3765_v7  ;;  %v3847_v38 = vld [vmem:[#allocation2 + $0x25] sm:$0xff]  ;;  %v3843_v7 = vmul.f32 %v3841_v31, %v3839_v51  ;;  %v8358_v62 = vld [vmem:[#allocation23_spill] sm:$0xff] }
 0x473   : > { %v4028_v50 = vadd.f32 %v4026_v24, %v4020_v52  ;;  %v3823_v52 = vld [vmem:[#allocation2 + $0x144] sm:$0xff]  ;;  %v3851_v22 = vmul.f32 %v3849_v36, %v3847_v38  ;;  %v3943_v51 = vld [vmem:[#allocation2 + $0xe] sm:$0xff] }
 0x474   : > { %v3781_v41 = vadd.f32 %v3779_v40, %v3773_v18  ;;  %v3871_v40 = vld [vmem:[#allocation2 + $0xe5] sm:$0xff] }
 0x475   : > { %v4036_v20 = vadd.f32 %v4034_v1, %v4028_v50  ;;  %v3827_v1 = vmul.f32 %v3825_v46, %v3823_v52  ;;  %v3859_v46 = vmul.f32 %v3857_v55, %v3855_v4  ;;  %v3875_v36 = vmul.f32 %v3873_v10, %v3871_v40  ;;  %v3975_v40 = vld [vmem:[#allocation2 + $0x3e] sm:$0xff] }
 0x476   : > { %v3789_v34 = vadd.f32 %v3787_v21, %v3781_v41  ;;  %v3887_v21 = vld [vmem:[#allocation2 + $0xfd] sm:$0xff] }
 0x477   : > { %v4044_v57 = vadd.f32 %v4042_v28, %v4036_v20  ;;  %v3863_v28 = vld [vmem:[#allocation2 + $0x3d] sm:$0xff] }
 0x478   : > { %v3797_v58 = vadd.f32 %v3795_v49, %v3789_v34  ;;  %v3891_v34 = vmul.f32 %v3889_v30, %v3887_v21  ;;  %v3903_v49 = vld [vmem:[#allocation2 + $0x115] sm:$0xff]  ;;  %v3923_v30 = vmul.f32 %v3921_v32, %v3919_v17 }
 0x479   : > { %v4052_v12 = vadd.f32 %v4050_v29, %v4044_v57  ;;  %v3867_v29 = vmul.f32 %v3865_v43, %v3863_v28  ;;  %v3879_v57 = vld [vmem:[#allocation2 + $0x55] sm:$0xff] }
 0x47a   : > { %v3805_v24 = vadd.f32 %v3803_v53, %v3797_v58  ;;  %v3883_v41 = vmul.f32 %v3881_v8, %v3879_v57  ;;  %v3907_v58 = vmul.f32 %v3905_v63, %v3903_v49  ;;  %v4154_v63 = vsub.s32 2, %v8358_v62  ;;  %v3967_v28 = vld [vmem:[#allocation2 + $0xce] sm:$0xff] }
 0x47b   : > { %v4581_v2 = vmul.f32 -1.442695, %v4052_v12  ;;  %v3895_v12 = vld [vmem:[#allocation2 + $0x6d] sm:$0xff]  ;;  %v4187_v57 = vsub.s32 5, %v8358_v62 }
 0x47c   : > { %v3813_v37 = vadd.f32 %v3811_v25, %v3805_v24  ;;  %v3899_v43 = vmul.f32 %v3897_v35, %v3895_v12  ;;  %v3927_v24 = vld [vmem:[#allocation2 + $0x9d] sm:$0xff]  ;;  %v4198_v12 = vsub.s32 6, %v8358_v62 }
 0x47d   : > { %4680 = vpow2.f32 %v4581_v2  ;;  %v3911_v2 = vld [vmem:[#allocation2 + $0x85] sm:$0xff]  ;;  %v8357_v35 = vld [vmem:[#allocation24_spill] sm:$0xff] }
 0x47e   : > { %v3821_v15 = vadd.f32 %v3819_v54, %v3813_v37  ;;  %v3915_v10 = vmul.f32 %v3913_v45, %v3911_v2  ;;  %v3935_v54 = vld [vmem:[#allocation2 + $0x145] sm:$0xff]  ;;  %v4209_v2 = vsub.s32 7, %v8358_v62 }
 0x47f   : > { %v3939_v32 = vmul.f32 %v3937_v27, %v3935_v54 }
 0x480   : > { %v3829_v50 = vadd.f32 %v3827_v1, %v3821_v15  ;;  %v4143_v15 = vsub.s32 1, %v8358_v62  ;;  %v3931_v1 = vmul.f32 %v3929_v61, %v3927_v24  ;;  %v4165_v61 = vsub.s32 3, %v8358_v62 }
 0x482   : > { %v3837_v42 = vadd.f32 %v3835_v14, %v3829_v50  ;;  %v3951_v50 = vld [vmem:[#allocation2 + $0xb6] sm:$0xff] }
 0x484   : > { %v3845_v33 = vadd.f32 %v3843_v7, %v3837_v42  ;;  %v3947_v7 = vmul.f32 %v3945_v6, %v3943_v51 }
 0x486   : > { %v3853_v18 = vadd.f32 %v3851_v22, %v3845_v33  ;;  %v3959_v22 = vld [vmem:[#allocation2 + $0x26] sm:$0xff]  ;;  %v3955_v33 = vmul.f32 %v3953_v5, %v3951_v50 }
 0x488   : > { %v3861_v9 = vadd.f32 %v3859_v46, %v3853_v18  ;;  %v4176_v18 = vsub.s32 4, %v8358_v62  ;;  %v3963_v46 = vmul.f32 %v3961_v3, %v3959_v22 }
 0x48a   : > { %v4681_v20 = vpop.eup %4680  ;;  %v3869_v31 = vadd.f32 %v3867_v29, %v3861_v9  ;;  %v3971_v29 = vmul.f32 %v3969_v59, %v3967_v28  ;;  %v3983_v9 = vld [vmem:[#allocation2 + $0xe6] sm:$0xff]  ;;  %v4690_v28 = vld [vmem:[%s8364_s6 + $0x10] sm:$0xff] }
 0x48b   : > { %v4060_v56 = vadd.f32 1.0, %v4681_v20 }
 0x48c   : > { %v3877_v0 = vadd.f32 %v3875_v36, %v3869_v31  ;;  %v3979_v31 = vmul.f32 %v3977_v39, %v3975_v40  ;;  %v3991_v36 = vld [vmem:[#allocation2 + $0x56] sm:$0xff] }
 0x48d   : > { %4682 = vrcp.f32 %v4060_v56 }
 0x48e   : > { %v3885_v55 = vadd.f32 %v3883_v41, %v3877_v0  ;;  %v3987_v41 = vmul.f32 %v3985_v48, %v3983_v9  ;;  %v3999_v0 = vld [vmem:[#allocation2 + $0xfe] sm:$0xff] }
 0x490   : > { %v3893_v60 = vadd.f32 %v3891_v34, %v3885_v55  ;;  %v3995_v55 = vmul.f32 %v3993_v23, %v3991_v36  ;;  %v4007_v34 = vld [vmem:[#allocation2 + $0x6e] sm:$0xff]  ;;  %v4023_v23 = vld [vmem:[#allocation2 + $0x86] sm:$0xff] }
 0x491   : > { %v4027_v24 = vmul.f32 %v4025_v19, %v4023_v23 }
 0x492   : > { %v3901_v53 = vadd.f32 %v3899_v43, %v3893_v60  ;;  %v4003_v43 = vmul.f32 %v4001_v44, %v3999_v0  ;;  %v4015_v60 = vld [vmem:[#allocation2 + $0x116] sm:$0xff] }
 0x494   : > { %v3909_v8 = vadd.f32 %v3907_v58, %v3901_v53  ;;  %v4011_v53 = vmul.f32 %v4009_v47, %v4007_v34 }
 0x496   : > { %v3917_v52 = vadd.f32 %v3915_v10, %v3909_v8  ;;  %v4019_v10 = vmul.f32 %v4017_v26, %v4015_v60  ;;  %v4031_v8 = vld [vmem:[#allocation2 + $0x12e] sm:$0xff] }
 0x497   : > { %v4035_v47 = vmul.f32 %v4033_v11, %v4031_v8  ;;  %v4697_v8 = vld [vmem:[%s8364_s6 + $0x50] sm:$0xff] }
 0x498   : > { %v3925_v45 = vadd.f32 %v3923_v30, %v3917_v52  ;;  %v4039_v30 = vld [vmem:[#allocation2 + $0x9e] sm:$0xff] }
 0x49a   : > { %v7754_v25 = vpop.eup %4682  ;;  %v3933_v14 = vadd.f32 %v3931_v1, %v3925_v45  ;;  %v4043_v1 = vmul.f32 %v4041_v13, %v4039_v30 }
 0x49b   : > { %v4133_v37 = vrot.slane %v7754_v25, %v8357_v35  ;;  %v4144_v38 = vrot.slane %v7754_v25, %v4143_v15  ;;  %v4155_v42 = vrot.slane %v7754_v25, %v4154_v63  ;;  %v4166_v20 = vrot.slane %v7754_v25, %v4165_v61 }
 0x49c   : > { %v3941_v4 = vadd.f32 %v3939_v32, %v3933_v14  ;;  %v4177_v5 = vrot.slane %v7754_v25, %v4176_v18  ;;  %v4188_v59 = vrot.slane %v7754_v25, %v4187_v57  ;;  %v4199_v48 = vrot.slane %v7754_v25, %v4198_v12 }
 0x49d   : > { %4139 = vbcast.lane.b32.xlu1 %v4133_v37, 264  ;;  %4135 = vbcast.lane.b32.xlu0 %v4133_v37, 256  ;;  %v4210_v44 = vrot.slane %v7754_v25, %v4209_v2  ;;  %v4047_v37 = vld [vmem:[#allocation2 + $0x146] sm:$0xff] }
 0x49e   : > { %v3949_v27 = vadd.f32 %v3947_v7, %v3941_v4  ;;  %v4051_v26 = vmul.f32 %v4049_v16, %v4047_v37  ;;  %v4689_v4 = vld [vmem:[%s8364_s6] sm:$0xff] }
 0x49f   : > { %v4066_v22 = vmul.f32 %v4689_v4, %v4689_v4 }
 0x4a0   : > { %v3957_v6 = vadd.f32 %v3955_v33, %v3949_v27  ;;  %v8366_v27 = vld [vmem:[#allocation25_spill] sm:$0xff] }
 0x4a1   : > { %4146 = vbcast.lane.b32.xlu1 %v4144_v38, 256  ;;  %4157 = vbcast.lane.b32.xlu0 %v4155_v42, 256  ;;  %v4098_v62 = vmul.f32 %v4066_v22, %v8366_v27  ;;  %v4702_v22 = vld [vmem:[%s8364_s6 + $0x68] sm:$0xff] }
 0x4a2   : > { %v3965_v56 = vadd.f32 %v3963_v46, %v3957_v6 }
 0x4a4   : > { %v3973_v3 = vadd.f32 %v3971_v29, %v3965_v56 }
 0x4a5   : > { %4150 = vbcast.lane.b32.xlu1 %v4144_v38, 264  ;;  %4168 = vbcast.lane.b32.xlu0 %v4166_v20, 256 }
 0x4a6   : > { %v3981_v21 = vadd.f32 %v3979_v31, %v3973_v3  ;;  %v4693_v3 = vld [vmem:[%s8364_s6 + $0x30] sm:$0xff] }
 0x4a7   : > { %v4072_v36 = vmul.f32 %v4693_v3, %v4693_v3 }
 0x4a8   : > { %v3989_v39 = vadd.f32 %v3987_v41, %v3981_v21 }
 0x4a9   : > { %4161 = vbcast.lane.b32.xlu1 %v4155_v42, 264  ;;  %4179 = vbcast.lane.b32.xlu0 %v4177_v5, 256 }
 0x4aa   : > { %v3997_v49 = vadd.f32 %v3995_v55, %v3989_v39  ;;  %v4104_v55 = vmul.f32 %v4072_v36, %v8366_v27  ;;  %v4694_v39 = vld [vmem:[%s8364_s6 + $0x28] sm:$0xff] }
 0x4ab   : > { %v4071_v34 = vmul.f32 %v4694_v39, %v4694_v39  ;;  %v4705_v36 = vld [vmem:[%s8364_s6 + $0x88] sm:$0xff] }
 0x4ac   : > { %v4005_v58 = vadd.f32 %v4003_v43, %v3997_v49  ;;  %v4695_v49 = vld [vmem:[%s8364_s6 + $0x40] sm:$0xff] }
 0x4ad   : > { %4172 = vbcast.lane.b32.xlu1 %v4166_v20, 264  ;;  %4190 = vbcast.lane.b32.xlu0 %v4188_v59, 256  ;;  %v4068_v20 = vmul.f32 %v4690_v28, %v4690_v28  ;;  %v4074_v43 = vmul.f32 %v4695_v49, %v4695_v49 }
 0x4ae   : > { %v4013_v17 = vadd.f32 %v4011_v53, %v4005_v58  ;;  %v4103_v58 = vmul.f32 %v4071_v34, %v8366_v27 }
 0x4af   : > { %v4100_v9 = vmul.f32 %v4068_v20, %v8366_v27  ;;  %v4106_v23 = vmul.f32 %v4074_v43, %v8366_v27 }
 0x4b0   : > { %v4021_v52 = vadd.f32 %v4019_v10, %v4013_v17  ;;  %v4696_v17 = vld [vmem:[%s8364_s6 + $0x38] sm:$0xff] }
 0x4b1   : > { %4183 = vbcast.lane.b32.xlu1 %v4177_v5, 264  ;;  %4201 = vbcast.lane.b32.xlu0 %v4199_v48, 256  ;;  %v4073_v10 = vmul.f32 %v4696_v17, %v4696_v17 }
 0x4b2   : > { %v4029_v54 = vadd.f32 %v4027_v24, %v4021_v52 }
 0x4b4   : > { %v4037_v45 = vadd.f32 %v4035_v47, %v4029_v54  ;;  %v4105_v47 = vmul.f32 %v4073_v10, %v8366_v27 }
 0x4b5   : > { %4194 = vbcast.lane.b32.xlu1 %v4188_v59, 264  ;;  %4212 = vbcast.lane.b32.xlu0 %v4210_v44, 256 }
 0x4b6   : > { %v4045_v51 = vadd.f32 %v4043_v1, %v4037_v45  ;;  %v4698_v1 = vld [vmem:[%s8364_s6 + $0x48] sm:$0xff] }
 0x4b7   : > { %v4075_v45 = vmul.f32 %v4698_v1, %v4698_v1 }
 0x4b8   : > { %v4053_v14 = vadd.f32 %v4051_v26, %v4045_v51  ;;  %v4699_v51 = vld [vmem:[%s8364_s6 + $0x60] sm:$0xff] }
 0x4b9   : > { %4205 = vbcast.lane.b32.xlu1 %v4199_v48, 264  ;;  %v4078_v26 = vmul.f32 %v4699_v51, %v4699_v51 }
 0x4ba   : > { %v4582_v25 = vmul.f32 -1.442695, %v4053_v14 }
 0x4bc   : > { %4684 = vpow2.f32 %v4582_v25 }
 0x4bd   : > { %4216 = vbcast.lane.b32.xlu1 %v4210_v44, 264  ;;  %v4076_v44 = vmul.f32 %v4697_v8, %v4697_v8 }
 0x4bf   : > { %v4108_v37 = vmul.f32 %v4076_v44, %v8366_v27 }
 0x4c9   : > { %v4685_v19 = vpop.eup %4684 }
 0x4ca   : > { %v4061_v32 = vadd.f32 1.0, %v4685_v19 }
 0x4cc   : > { %4686 = vrcp.f32 %v4061_v32 }
 0x4d9   : > { %v4687_v50 = vpop.eup %4686 }
 0x4da   : > { %v4221_v38 = vrot.slane %v4687_v50, %v8357_v35  ;;  %v4232_v11 = vrot.slane %v4687_v50, %v4143_v15  ;;  %v4243_v13 = vrot.slane %v4687_v50, %v4154_v63  ;;  %v4254_v16 = vrot.slane %v4687_v50, %v4165_v61  ;;  %v4688_v61 = vld [vmem:[%s8364_s6 + $0x8] sm:$0xff] }
 0x4db   : > { %v4265_v35 = vrot.slane %v4687_v50, %v4176_v18  ;;  %v4276_v15 = vrot.slane %v4687_v50, %v4187_v57  ;;  %v4287_v63 = vrot.slane %v4687_v50, %v4198_v12  ;;  %v4298_v42 = vrot.slane %v4687_v50, %v4209_v2  ;;  %v4691_v18 = vld [vmem:[%s8364_s6 + $0x20] sm:$0xff]  ;;  %v4692_v57 = vld [vmem:[%s8364_s6 + $0x18] sm:$0xff] }
 0x4dc   : > { %4223 = vbcast.lane.b32.xlu0 %v4221_v38, 256  ;;  %4227 = vbcast.lane.b32.xlu1 %v4221_v38, 264  ;;  %v4067_v7 = vmul.f32 %v4688_v61, %v4688_v61  ;;  %v4070_v46 = vmul.f32 %v4691_v18, %v4691_v18  ;;  %v4069_v31 = vmul.f32 %v4692_v57, %v4692_v57 }
 0x4dd   : > { %v4107_v50 = vmul.f32 %v4075_v45, %v8366_v27  ;;  %v4110_v38 = vmul.f32 %v4078_v26, %v8366_v27 }
 0x4de   : > { %v4099_v33 = vmul.f32 %v4067_v7, %v8366_v27  ;;  %v4102_v5 = vmul.f32 %v4070_v46, %v8366_v27  ;;  %v4101_v12 = vmul.f32 %v4069_v31, %v8366_v27  ;;  %v4704_v31 = vld [vmem:[%s8364_s6 + $0x80] sm:$0xff] }
 0x4df   : > { %v4082_v3 = vmul.f32 %v4704_v31, %v4704_v31 }
 0x4e0   : > { %4234 = vbcast.lane.b32.xlu0 %v4232_v11, 256  ;;  %4238 = vbcast.lane.b32.xlu1 %v4232_v11, 264  ;;  %v4700_v11 = vld [vmem:[%s8364_s6 + $0x58] sm:$0xff] }
 0x4e4   : > { %4245 = vbcast.lane.b32.xlu0 %v4243_v13, 256  ;;  %4249 = vbcast.lane.b32.xlu1 %v4243_v13, 264  ;;  %v4077_v13 = vmul.f32 %v4700_v11, %v4700_v11 }
 0x4e6   : > { %v4109_v7 = vmul.f32 %v4077_v13, %v8366_v27 }
 0x4e8   : > { %4256 = vbcast.lane.b32.xlu0 %v4254_v16, 256  ;;  %4260 = vbcast.lane.b32.xlu1 %v4254_v16, 264  ;;  %v4701_v16 = vld [vmem:[%s8364_s6 + $0x70] sm:$0xff] }
 0x4ec   : > { %4267 = vbcast.lane.b32.xlu0 %v4265_v35, 256  ;;  %4271 = vbcast.lane.b32.xlu1 %v4265_v35, 264  ;;  %v4080_v35 = vmul.f32 %v4701_v16, %v4701_v16 }
 0x4ee   : > { %v4112_v4 = vmul.f32 %v4080_v35, %v8366_v27 }
 0x4f0   : > { %4278 = vbcast.lane.b32.xlu0 %v4276_v15, 256  ;;  %4282 = vbcast.lane.b32.xlu1 %v4276_v15, 264 }
 0x4f4   : > { %4289 = vbcast.lane.b32.xlu0 %v4287_v63, 256  ;;  %4293 = vbcast.lane.b32.xlu1 %v4287_v63, 264 }
 0x4f8   : > { %4300 = vbcast.lane.b32.xlu0 %v4298_v42, 256  ;;  %4304 = vbcast.lane.b32.xlu1 %v4298_v42, 264 }
 0x50f   : > { %v4140_v6 = vpop.permute.xlu1 %4139  ;;  %v4136_v40 = vpop.permute.xlu0 %4135 }
 0x510   : > { %v4307_v56 = vmul.f32 %v4140_v6, %v4099_v33  ;;  %v4306_v29 = vmul.f32 %v4136_v40, %v4098_v62  ;;  %v4079_v33 = vmul.f32 %v4702_v22, %v4702_v22  ;;  %v4703_v6 = vld [vmem:[%s8364_s6 + $0x78] sm:$0xff] }
 0x511   : > { %v4081_v40 = vmul.f32 %v4703_v6, %v4703_v6 }
 0x512   : > { %4339 = vst.msk [vmem:[%s7835_s24 + $0x8] sm:$0xff] %vm8368_vm10, %v4307_v56  ;;  %v4111_v46 = vmul.f32 %v4079_v33, %v8366_v27  ;;  %vm8384_vm10 = vmmov %vm8376_vm0 }
 0x513   : > { %4338 = vst.msk [vmem:[%s7835_s24] sm:$0xff] %vm8369_vm11, %v4306_v29  ;;  %v4147_v21 = vpop.permute.xlu1 %4146  ;;  %v4158_v41 = vpop.permute.xlu0 %4157  ;;  %vm8385_vm11 = vmmov %vm8376_vm0 }
 0x514   : > { %v4308_v0 = vmul.f32 %v4147_v21, %v4100_v9  ;;  %v4310_v59 = vmul.f32 %v4158_v41, %v4102_v5  ;;  %v4113_v9 = vmul.f32 %v4081_v40, %v8366_v27  ;;  %v4083_v21 = vmul.f32 %v4705_v36, %v4705_v36  ;;  %v4718_v36 = vld [vmem:[%s8364_s6 + $0xf0] sm:$0xff] }
 0x515   : > { %v4114_v41 = vmul.f32 %v4082_v3, %v8366_v27 }
 0x516   : > { %4340 = vst.msk [vmem:[%s7835_s24 + $0x10] sm:$0xff] %vm8370_vm12, %v4308_v0  ;;  %v4706_v0 = vld [vmem:[%s8364_s6 + $0x90] sm:$0xff]  ;;  %vm8386_vm12 = vmmov %vm8376_vm0 }
 0x517   : > { %4342 = vst.msk [vmem:[%s7835_s24 + $0x20] sm:$0xff] %vm8371_vm13, %v4310_v59  ;;  %v4151_v60 = vpop.permute.xlu1 %4150  ;;  %v4169_v48 = vpop.permute.xlu0 %4168  ;;  %v4084_v59 = vmul.f32 %v4706_v0, %v4706_v0  ;;  %vm8387_vm13 = vmmov %vm8376_vm0  ;;  %v4719_v0 = vld [vmem:[%s8364_s6 + $0xf8] sm:$0xff] }
 0x518   : > { %v4309_v2 = vmul.f32 %v4151_v60, %v4101_v12  ;;  %v4312_v53 = vmul.f32 %v4169_v48, %v4104_v55  ;;  %v4115_v12 = vmul.f32 %v4083_v21, %v8366_v27  ;;  %v4707_v55 = vld [vmem:[%s8364_s6 + $0x98] sm:$0xff]  ;;  %v4096_v21 = vmul.f32 %v4718_v36, %v4718_v36 }
 0x519   : > { %v4085_v39 = vmul.f32 %v4707_v55, %v4707_v55  ;;  %v4116_v48 = vmul.f32 %v4084_v59, %v8366_v27  ;;  %v4097_v59 = vmul.f32 %v4719_v0, %v4719_v0 }
 0x51a   : > { %4341 = vst.msk [vmem:[%s7835_s24 + $0x18] sm:$0xff] %vm8372_vm4, %v4309_v2  ;;  %v4708_v2 = vld [vmem:[%s8364_s6 + $0xa0] sm:$0xff]  ;;  %vm8388_vm4 = vmmov %vm8376_vm0 }
 0x51b   : > { %4344 = vst.msk [vmem:[%s7835_s24 + $0x30] sm:$0xff] %vm8373_vm9, %v4312_v53  ;;  %v4162_v24 = vpop.permute.xlu1 %4161  ;;  %v4180_v52 = vpop.permute.xlu0 %4179  ;;  %v4086_v53 = vmul.f32 %v4708_v2, %v4708_v2  ;;  %vm8389_vm9 = vmmov %vm8376_vm0 }
 0x51c   : > { %v4311_v30 = vmul.f32 %v4162_v24, %v4103_v58  ;;  %v4314_v54 = vmul.f32 %v4180_v52, %v4106_v23  ;;  %v4117_v58 = vmul.f32 %v4085_v39, %v8366_v27  ;;  %v4709_v23 = vld [vmem:[%s8364_s6 + $0xa8] sm:$0xff] }
 0x51d   : > { %v4087_v17 = vmul.f32 %v4709_v23, %v4709_v23  ;;  %v4118_v52 = vmul.f32 %v4086_v53, %v8366_v27 }
 0x51e   : > { %4343 = vst.msk [vmem:[%s7835_s24 + $0x28] sm:$0xff] %vm8374_vm15, %v4311_v30  ;;  %v4710_v30 = vld [vmem:[%s8364_s6 + $0xb0] sm:$0xff]  ;;  %vm8390_vm15 = vmmov %vm8376_vm0 }
 0x51f   : > { %4346 = vst.msk [vmem:[%s7835_s24 + $0x40] sm:$0xff] %vm8375_vm1, %v4314_v54  ;;  %v4173_v14 = vpop.permute.xlu1 %4172  ;;  %v4191_v25 = vpop.permute.xlu0 %4190  ;;  %v4088_v54 = vmul.f32 %v4710_v30, %v4710_v30  ;;  %vm8391_vm1 = vmmov %vm8376_vm0 }
 0x520   : > { %v4313_v19 = vmul.f32 %v4173_v14, %v4105_v47  ;;  %v4316_v32 = vmul.f32 %v4191_v25, %v4108_v37  ;;  %v4119_v47 = vmul.f32 %v4087_v17, %v8366_v27  ;;  %v4711_v37 = vld [vmem:[%s8364_s6 + $0xb8] sm:$0xff] }
 0x521   : > { %v4089_v1 = vmul.f32 %v4711_v37, %v4711_v37  ;;  %v4120_v25 = vmul.f32 %v4088_v54, %v8366_v27 }
 0x522   : > { %4345 = vst.msk [vmem:[%s7835_s24 + $0x38] sm:$0xff] %vm8376_vm0, %v4313_v19  ;;  %v4712_v19 = vld [vmem:[%s8364_s6 + $0xc0] sm:$0xff] }
 0x523   : > { %4348 = vst.msk [vmem:[%s7835_s24 + $0x50] sm:$0xff] %vm8377_vm2, %v4316_v32  ;;  %v4184_v15 = vpop.permute.xlu1 %4183  ;;  %v4202_v63 = vpop.permute.xlu0 %4201  ;;  %v4090_v32 = vmul.f32 %v4712_v19, %v4712_v19  ;;  %vm8392_vm2 = vmmov %vm8376_vm0 }
 0x524   : > { %v4315_v42 = vmul.f32 %v4184_v15, %v4107_v50  ;;  %v4318_v61 = vmul.f32 %v4202_v63, %v4110_v38  ;;  %v4121_v50 = vmul.f32 %v4089_v1, %v8366_v27  ;;  %v4713_v38 = vld [vmem:[%s8364_s6 + $0xc8] sm:$0xff] }
 0x525   : > { %v4091_v11 = vmul.f32 %v4713_v38, %v4713_v38  ;;  %v4122_v63 = vmul.f32 %v4090_v32, %v8366_v27 }
 0x526   : > { %4347 = vst.msk [vmem:[%s7835_s24 + $0x48] sm:$0xff] %vm8378_vm3, %v4315_v42  ;;  %v4714_v42 = vld [vmem:[%s8364_s6 + $0xd0] sm:$0xff]  ;;  %vm8394_vm3 = vmmov %vm8376_vm0 }
 0x527   : > { %4350 = vst.msk [vmem:[%s7835_s24 + $0x60] sm:$0xff] %vm8379_vm6, %v4318_v61  ;;  %v4195_v62 = vpop.permute.xlu1 %4194  ;;  %v4213_v28 = vpop.permute.xlu0 %4212  ;;  %v4092_v61 = vmul.f32 %v4714_v42, %v4714_v42  ;;  %vm8395_vm6 = vmmov %vm8376_vm0 }
 0x528   : > { %v4317_v20 = vmul.f32 %v4195_v62, %v4109_v7  ;;  %v4320_v18 = vmul.f32 %v4213_v28, %v4112_v4  ;;  %v4123_v7 = vmul.f32 %v4091_v11, %v8366_v27  ;;  %v4715_v4 = vld [vmem:[%s8364_s6 + $0xd8] sm:$0xff] }
 0x529   : > { %v4093_v22 = vmul.f32 %v4715_v4, %v4715_v4 }
 0x52a   : > { %4349 = vst.msk [vmem:[%s7835_s24 + $0x58] sm:$0xff] %vm8380_vm5, %v4317_v20  ;;  %vm8396_vm5 = vmmov %vm8376_vm0 }
 0x52b   : > { %4352 = vst.msk [vmem:[%s7835_s24 + $0x70] sm:$0xff] %vm8381_vm7, %v4320_v18  ;;  %v4206_v56 = vpop.permute.xlu1 %4205  ;;  %v4124_v18 = vmul.f32 %v4092_v61, %v8366_v27  ;;  %v4125_v40 = vmul.f32 %v4093_v22, %v8366_v27  ;;  %vm8398_vm7 = vmmov %vm8376_vm0 }
 0x52c   : > { %v4319_v29 = vmul.f32 %v4206_v56, %v4111_v46  ;;  %v4716_v46 = vld [vmem:[%s8364_s6 + $0xe0] sm:$0xff]  ;;  %v4717_v56 = vld [vmem:[%s8364_s6 + $0xe8] sm:$0xff] }
 0x52d   : > { %v4094_v6 = vmul.f32 %v4716_v46, %v4716_v46 }
 0x52e   : > { %4351 = vst.msk [vmem:[%s7835_s24 + $0x68] sm:$0xff] %vm8382_vm8, %v4319_v29  ;;  %v4095_v29 = vmul.f32 %v4717_v56, %v4717_v56  ;;  %vm8400_vm8 = vmmov %vm8376_vm0 }
 0x52f   : > { %v4217_v5 = vpop.permute.xlu1 %4216  ;;  %v4126_v3 = vmul.f32 %v4094_v6, %v8366_v27 }
 0x530   : > { %v4321_v57 = vmul.f32 %v4217_v5, %v4113_v9 }
 0x532   : > { %4353 = vst.msk [vmem:[%s7835_s24 + $0x78] sm:$0xff] %vm8383_vm14, %v4321_v57  ;;  %vm8401_vm14 = vmmov %vm8376_vm0 }
 0x54e   : > { %v4224_v34 = vpop.permute.xlu0 %4223  ;;  %v4228_v49 = vpop.permute.xlu1 %4227 }
 0x54f   : > { %v4322_v43 = vmul.f32 %v4224_v34, %v4114_v41  ;;  %v4323_v60 = vmul.f32 %v4228_v49, %v4115_v12  ;;  %v4127_v41 = vmul.f32 %v4095_v29, %v8366_v27  ;;  %v4128_v49 = vmul.f32 %v4096_v21, %v8366_v27 }
 0x551   : > { %4354 = vst.msk [vmem:[%s7835_s24 + $0x80] sm:$0xff] %vm8384_vm10, %v4322_v43  ;;  %v4129_v43 = vmul.f32 %v4097_v59, %v8366_v27 }
 0x552   : > { %4355 = vst.msk [vmem:[%s7835_s24 + $0x88] sm:$0xff] %vm8385_vm11, %v4323_v60  ;;  %v4235_v10 = vpop.permute.xlu0 %4234  ;;  %v4239_v8 = vpop.permute.xlu1 %4238 }
 0x553   : > { %v4324_v44 = vmul.f32 %v4235_v10, %v4116_v48  ;;  %v4325_v24 = vmul.f32 %v4239_v8, %v4117_v58 }
 0x555   : > { %4356 = vst.msk [vmem:[%s7835_s24 + $0x90] sm:$0xff] %vm8386_vm12, %v4324_v44 }
 0x556   : > { %4357 = vst.msk [vmem:[%s7835_s24 + $0x98] sm:$0xff] %vm8387_vm13, %v4325_v24  ;;  %v4246_v45 = vpop.permute.xlu0 %4245  ;;  %v4250_v51 = vpop.permute.xlu1 %4249 }
 0x557   : > { %v4326_v26 = vmul.f32 %v4246_v45, %v4118_v52  ;;  %v4327_v14 = vmul.f32 %v4250_v51, %v4119_v47 }
 0x559   : > { %4358 = vst.msk [vmem:[%s7835_s24 + $0xa0] sm:$0xff] %vm8388_vm4, %v4326_v26 }
 0x55a   : > { %4359 = vst.msk [vmem:[%s7835_s24 + $0xa8] sm:$0xff] %vm8389_vm9, %v4327_v14  ;;  %v4257_v13 = vpop.permute.xlu0 %4256  ;;  %v4261_v16 = vpop.permute.xlu1 %4260 }
 0x55b   : > { %v4328_v35 = vmul.f32 %v4257_v13, %v4120_v25  ;;  %v4329_v15 = vmul.f32 %v4261_v16, %v4121_v50 }
 0x55d   : > { %4360 = vst.msk [vmem:[%s7835_s24 + $0xb0] sm:$0xff] %vm8390_vm15, %v4328_v35 }
 0x55e   : > { %4361 = vst.msk [vmem:[%s7835_s24 + $0xb8] sm:$0xff] %vm8391_vm1, %v4329_v15  ;;  %v4268_v33 = vpop.permute.xlu0 %4267  ;;  %v4272_v62 = vpop.permute.xlu1 %4271 }
 0x55f   : > { %v4330_v28 = vmul.f32 %v4268_v33, %v4122_v63  ;;  %v4331_v20 = vmul.f32 %v4272_v62, %v4123_v7 }
 0x561   : > { %4362 = vst.msk [vmem:[%s7835_s24 + $0xc0] sm:$0xff] %vm8376_vm0, %v4330_v28 }
 0x562   : > { %4363 = vst.msk [vmem:[%s7835_s24 + $0xc8] sm:$0xff] %vm8392_vm2, %v4331_v20  ;;  %v4279_v9 = vpop.permute.xlu0 %4278  ;;  %v4283_v5 = vpop.permute.xlu1 %4282 }
 0x563   : > { %v4332_v57 = vmul.f32 %v4279_v9, %v4124_v18  ;;  %v4333_v31 = vmul.f32 %v4283_v5, %v4125_v40 }
 0x565   : > { %4364 = vst.msk [vmem:[%s7835_s24 + $0xd0] sm:$0xff] %vm8394_vm3, %v4332_v57 }
 0x566   : > { %4365 = vst.msk [vmem:[%s7835_s24 + $0xd8] sm:$0xff] %vm8395_vm6, %v4333_v31  ;;  %v4290_v12 = vpop.permute.xlu0 %4289  ;;  %v4294_v55 = vpop.permute.xlu1 %4293 }
 0x567   : > { %v4334_v39 = vmul.f32 %v4290_v12, %v4126_v3  ;;  %v4335_v34 = vmul.f32 %v4294_v55, %v4127_v41 }
 0x569   : > { %4366 = vst.msk [vmem:[%s7835_s24 + $0xe0] sm:$0xff] %vm8396_vm5, %v4334_v39 }
 0x56a   : > { %4367 = vst.msk [vmem:[%s7835_s24 + $0xe8] sm:$0xff] %vm8398_vm7, %v4335_v34  ;;  %v4301_v60 = vpop.permute.xlu0 %4300  ;;  %v4305_v48 = vpop.permute.xlu1 %4304 }
 0x56b   : > { %v4336_v2 = vmul.f32 %v4301_v60, %v4128_v49  ;;  %v4337_v53 = vmul.f32 %v4305_v48, %v4129_v43 }
 0x56d   : > { %4368 = vst.msk [vmem:[%s7835_s24 + $0xf0] sm:$0xff] %vm8400_vm8, %v4336_v2 }
 0x56e   : > { %4369 = vst.msk [vmem:[%s7835_s24 + $0xf8] sm:$0xff] %vm8401_vm14, %v4337_v53 }
 0x56f   : > { %4776 = shalt.err (!%p4773_p1)
}
 0x570   : > { %s4777_s20 = scalar_lea.hbm %s7960_s22, 4096  ;;  %s4781_s7 = scalar_lea.hbm %s8399_s27, 8192 }
 0x571   : > { %p4778_p4 = scmp.ne.s32.totalorder %s7960_s22, %s4777_s20  ;;  %p4782_p6 = scmp.lt.s32.totalorder %s7960_s22, %s8399_s27 }
 0x572   : > { %p4783_p13 = scmp.lt.s32.totalorder %s4781_s7, %s4777_s20 }
 0x573   : > { %p4779_p11 = pnand %p4778_p4, %p8402_p0 }
 0x574   : > { %p4784_p3 = por %p4783_p13, %p4782_p6 }
 0x575   : > { %p4780_p5 = pneg %p4779_p11 }
 0x577   : > { %p4785_p12 = pnand %p4784_p3, %p4780_p5 }
 0x579   : > { %4788 = shalt.err (!%p4785_p12)
}
 0x57a   : > { %s4840_s12 = smov 128   ;;  %s4841_s13 = smov 8  }
 0x57b   : > { %4619 = dma.vmem_to_hbm [thread:$0]  (%p8402_p0), %s7962_s15, 4096, %s7960_s22, %s4371_s5, %s4840_s12, %s4840_s12, %s4841_s13  }
 0x57c PF: > { %s8403_s0 = sld [smem:[#allocation12_spill]] }
 0x57d   : > { %s8404_s2 = sld [smem:[#allocation20_spill]] }
 0x57e   : > { %s8405_s14 = sld [smem:[#allocation15_spill]] }
 0x582   : > { %s4399_s18 = sand.u32 1, %s8403_s0  }
 0x583   : > { %p8406_p2 = scmp.ne.s32.totalorder %s8404_s2, 0  ;;  %s4400_s16 = scalar_lea.sflag [#allocation5], %s4399_s18 }
 0x584   : > { %p8407_p7 = scmp.ge.s32.totalorder %s8405_s14, 2 }
 0x586   : > { %p4630_p8 = pnand %p8407_p7, %p8406_p2 }
 0x588   : > { %p4631_p9 = pneg %p4630_p8 }
 0x58a   : > { %4814 = dma.done.wait (%p4631_p9), %s4400_s16, 4096  }
 0x58b   : > { %4816 = vsyncadd (%p4631_p9), %s4400_s16, 4294963200  ;;  %s8408_s18 = sld [smem:[#allocation17_spill]] }
 0x58c   : > { %s8409_s15 = sld [smem:[#allocation13_spill]] }
 0x58d   : > { %s8410_s16 = sld [smem:[#allocation14_spill]] }
 0x58e   : > { %s8411_s17 = sld [smem:[#allocation18_spill]] }
 0x591   : > { %p18_p10 = scmp.ge.s32.totalorder %s8408_s18, 4  }
 0x593   :  { %20 = sbr.rel (!%p18_p10) target bundleno = 12 (0xc), region = 99 }
 0x598   :  { %4405 = vsyncpa [#allocation4], 1 }
 0x599   :  { %4407 = vsyncpa [#allocation4 + $0x1], 1 }
 0x59a   :  { %4408 = vsyncpa [#allocation5], 1 }
 0x59b   :  { %4410 = vsyncpa [#allocation5 + $0x1], 1 }
 0x59c   :  { %4411 = vsyncpa [#allocation6], 1 }
 0x59d   :  { %4413 = vsyncpa [#allocation6 + $0x1], 1 }

</bundles_post_ra>
